<compile_context>
chip_gen: v6e
topology: v6e:2x2x1
jax: 0.10.0
libtpu: 0.0.40
codegen_flags: <defaults>
</compile_context>

<pallas_src>
import functools

import jax
import jax.numpy as jnp
import numpy as np
from jax.experimental import pallas as pl
from jax.experimental.pallas import tpu as pltpu


# -----------------------------------------------------------------------------
# Fused encoder kernel (one grid step == one image).
# -----------------------------------------------------------------------------
def _conv3_toeplitz(xin, t_ref, b_ref, ho):
    """3x3 valid conv in packed layout.

    xin:   (Hin, Win*Cin)  packed activation
    t_ref: (3, Win*Cin, Wo*Cout) block-Toeplitz weights (one slab per dy)
    b_ref: (1, Wo*Cout)    bias tiled along the packed width
    Returns (ho, Wo*Cout) in f32.
    """
    acc = jnp.dot(xin[0:ho, :], t_ref[0], preferred_element_type=jnp.float32)
    acc = acc + jnp.dot(xin[1:ho + 1, :], t_ref[1],
                        preferred_element_type=jnp.float32)
    acc = acc + jnp.dot(xin[2:ho + 2, :], t_ref[2],
                        preferred_element_type=jnp.float32)
    return acc + b_ref[...]


def _encoder_kernel(x_ref, *refs, nblocks):
    n_w = 4 * nblocks + 4 * (nblocks - 1)
    w_refs, out_refs = refs[:n_w], refs[n_w:]
    blk = [w_refs[4 * i:4 * i + 4] for i in range(nblocks)]
    pool = [w_refs[4 * nblocks + 4 * i:4 * nblocks + 4 * i + 4]
            for i in range(nblocks - 1)]

    cur = x_ref[0]  # (H, W*C) packed, f32, VMEM-resident
    for i in range(nblocks):
        t_a, b_a, t_b, b_b = blk[i]
        ho_a = cur.shape[0] - 2
        h = jnp.maximum(_conv3_toeplitz(cur, t_a, b_a, ho_a), 0.0)  # conv1+ReLU
        y = _conv3_toeplitz(h, t_b, b_b, ho_a - 2)                  # conv2
        out_refs[i][0] = y.astype(out_refs[i].dtype)                # lane-dense store
        if i != nblocks - 1:
            # Fused 2x2 max-pool: exact 0/1 selection matmuls (row pairs via
            # left-multiply, column/channel pairs via right-multiply).
            p_e, p_o, s_e, s_o = pool[i]
            r = jnp.maximum(
                jnp.dot(p_e[...], y, preferred_element_type=jnp.float32),
                jnp.dot(p_o[...], y, preferred_element_type=jnp.float32))
            cur = jnp.maximum(
                jnp.dot(r, s_e[...], preferred_element_type=jnp.float32),
                jnp.dot(r, s_o[...], preferred_element_type=jnp.float32))
        # Final pool of the PyTorch loop is discarded -> skipped.


# -----------------------------------------------------------------------------
# Wrapper-side operand construction (done once, outside the kernel).
# -----------------------------------------------------------------------------
def _toeplitz(w, w_in):
    """HWIO (3,3,cin,cout) -> (3, w_in*cin, (w_in-2)*cout) block-Toeplitz."""
    kh, kw, cin, cout = w.shape
    wo = w_in - kw + 1
    t = np.zeros((kh, w_in * cin, wo * cout), np.float32)
    w_np = np.asarray(w, np.float32)
    for dy in range(kh):
        for j in range(wo):
            for dx in range(kw):
                t[dy, (j + dx) * cin:(j + dx + 1) * cin,
                  j * cout:(j + 1) * cout] = w_np[dy, dx]
    return jnp.asarray(t)


def _pool_selectors(h_in, w_in, c):
    """0/1 gather matrices for a 2x2 max-pool in packed (H, W*C) layout."""
    ho, wo = h_in // 2, w_in // 2
    p_e = np.zeros((ho, h_in), np.float32)
    p_o = np.zeros((ho, h_in), np.float32)
    p_e[np.arange(ho), 2 * np.arange(ho)] = 1.0
    p_o[np.arange(ho), 2 * np.arange(ho) + 1] = 1.0
    s_e = np.zeros((w_in * c, wo * c), np.float32)
    s_o = np.zeros((w_in * c, wo * c), np.float32)
    for jo in range(wo):
        for cc in range(c):
            s_e[(2 * jo) * c + cc, jo * c + cc] = 1.0
            s_o[(2 * jo + 1) * c + cc, jo * c + cc] = 1.0
    return (jnp.asarray(p_e), jnp.asarray(p_o),
            jnp.asarray(s_e), jnp.asarray(s_o))


def encoder_forward(x_nchw, params):
    """x_nchw: (N, C, H, W); params: list of (w1,b1,w2,b2) HWIO weights.

    Returns the list of per-block features in NCHW (matching PyTorch Encoder).
    """
    N, cin, H, W = x_nchw.shape
    nblocks = len(params)

    # NCHW -> packed lane-dense (N, H, W*C).
    x_packed = jnp.transpose(x_nchw, (0, 2, 3, 1)).reshape(N, H, W * cin)

    blk_ops, pool_ops, out_meta = [], [], []
    h_cur, w_cur, c_cur = H, W, cin
    for i, (w1, b1, w2, b2) in enumerate(params):
        cout = w1.shape[-1]
        t_a = _toeplitz(w1, w_cur)
        bias_a = jnp.tile(jnp.asarray(b1, jnp.float32).reshape(-1),
                          w_cur - 2).reshape(1, -1)
        t_b = _toeplitz(w2, w_cur - 2)
        bias_b = jnp.tile(jnp.asarray(b2, jnp.float32).reshape(-1),
                          w_cur - 4).reshape(1, -1)
        blk_ops += [t_a, bias_a, t_b, bias_b]
        h_cur, w_cur, c_cur = h_cur - 4, w_cur - 4, cout
        out_meta.append((h_cur, w_cur, c_cur))
        if i != nblocks - 1:
            pool_ops += list(_pool_selectors(h_cur, w_cur, c_cur))
            h_cur, w_cur = h_cur // 2, w_cur // 2

    operands = [x_packed] + blk_ops + pool_ops

    def const_spec(arr):
        nd = arr.ndim
        return pl.BlockSpec(arr.shape, lambda n, _nd=nd: (0,) * _nd)

    in_specs = [pl.BlockSpec((1, H, W * cin), lambda n: (n, 0, 0))]
    in_specs += [const_spec(a) for a in blk_ops + pool_ops]

    out_shapes = tuple(jax.ShapeDtypeStruct((N, ho, wo * c), x_nchw.dtype)
                       for (ho, wo, c) in out_meta)
    out_specs = tuple(pl.BlockSpec((1, ho, wo * c), lambda n: (n, 0, 0))
                      for (ho, wo, c) in out_meta)

    kernel = functools.partial(_encoder_kernel, nblocks=nblocks)

    outs = pl.pallas_call(
        kernel,
        out_shape=out_shapes,
        grid=(N,),
        in_specs=in_specs,
        out_specs=out_specs,
        compiler_params=pltpu.CompilerParams(
            dimension_semantics=("parallel",)),
    )(*operands)

    # Unpack to NCHW only to match the public PyTorch interface (keep the
    # packed NHWC slabs if downstream allows).
    ftrs = []
    for o, (ho, wo, c) in zip(outs, out_meta):
        ftrs.append(jnp.transpose(o.reshape(N, ho, wo, c), (0, 3, 1, 2)))
    return ftrs


# -----------------------------------------------------------------------------
# Parameter init (PyTorch-style uniform, HWIO layout).
# -----------------------------------------------------------------------------
def init_conv_params(key, cin, cout):
    kw, kb = jax.random.split(key)
    fan_in = cin * 3 * 3
    bound = 1.0 / np.sqrt(fan_in)
    w = jax.random.uniform(kw, (3, 3, cin, cout), jnp.float32, -bound, bound)
    b = jax.random.uniform(kb, (1, cout), jnp.float32, -bound, bound)
    return w, b


def init_encoder_params(key, chs):
    params = []
    for i in range(len(chs) - 1):
        key, k1, k2 = jax.random.split(key, 3)
        w1, b1 = init_conv_params(k1, chs[i], chs[i + 1])
        w2, b2 = init_conv_params(k2, chs[i + 1], chs[i + 1])
        params.append((w1, b1, w2, b2))
    return params


# -----------------------------------------------------------------------------
# Pure-JAX reference (correctness check).
# -----------------------------------------------------------------------------
def _conv_ref(x, w, b):
    y = jax.lax.conv_general_dilated(
        x, w, window_strides=(1, 1), padding="VALID",
        dimension_numbers=("NHWC", "HWIO", "NHWC"))
    return y + b.reshape(1, 1, 1, -1)


def _pool_ref(x):
    return jax.lax.reduce_window(
        x, -jnp.inf, jax.lax.max, (1, 2, 2, 1), (1, 2, 2, 1), "VALID")


def encoder_ref(x_nchw, params):
    x = jnp.transpose(x_nchw, (0, 2, 3, 1))
    ftrs = []
    for (w1, b1, w2, b2) in params:
        x = _conv_ref(x, w1, b1)
        x = jnp.maximum(x, 0.0)
        x = _conv_ref(x, w2, b2)
        ftrs.append(jnp.transpose(x, (0, 3, 1, 2)))
        x = _pool_ref(x)
    return ftrs


if __name__ == "__main__":
    # chs=(3, 8, 16): two Blocks.  36x36 -> feat1 32x32 -> pool 16x16 -> feat2 12x12.
    chs = (3, 8, 16)
    N, H, W = 2, 36, 36

    key = jax.random.PRNGKey(0)
    kx, kp = jax.random.split(key)
    x_nchw = jax.random.normal(kx, (N, chs[0], H, W), jnp.float32)
    params = init_encoder_params(kp, chs)

    ftrs = encoder_forward(x_nchw, params)
    ftrs = [jax.block_until_ready(f) for f in ftrs]

    refs = encoder_ref(x_nchw, params)
    expected_shapes = [(N, 8, 32, 32), (N, 16, 12, 12)]
    assert len(ftrs) == len(refs)
    for f, r, es in zip(ftrs, refs, expected_shapes):
        assert f.shape == es, (f.shape, es)
        np.testing.assert_allclose(np.asarray(f), np.asarray(r),
                                   rtol=1e-4, atol=1e-4)

    print("KERNEL_OK")
</pallas_src>

<mosaic_0001>
module attributes {stable_mosaic.version = 11 : i64} {
  func.func @_encoder_kernel(%arg0: i32, %arg1: memref<1x36x108xf32, #tpu.memory_space<vmem>>, %arg2: memref<3x108x272xf32, #tpu.memory_space<vmem>>, %arg3: memref<1x272xf32, #tpu.memory_space<vmem>>, %arg4: memref<3x272x256xf32, #tpu.memory_space<vmem>>, %arg5: memref<1x256xf32, #tpu.memory_space<vmem>>, %arg6: memref<3x128x224xf32, #tpu.memory_space<vmem>>, %arg7: memref<1x224xf32, #tpu.memory_space<vmem>>, %arg8: memref<3x224x192xf32, #tpu.memory_space<vmem>>, %arg9: memref<1x192xf32, #tpu.memory_space<vmem>>, %arg10: memref<16x32xf32, #tpu.memory_space<vmem>>, %arg11: memref<16x32xf32, #tpu.memory_space<vmem>>, %arg12: memref<256x128xf32, #tpu.memory_space<vmem>>, %arg13: memref<256x128xf32, #tpu.memory_space<vmem>>, %arg14: memref<1x32x256xf32, #tpu.memory_space<vmem>>, %arg15: memref<1x12x192xf32, #tpu.memory_space<vmem>>) attributes {dimension_semantics = [#tpu.dimension_semantics<parallel>], iteration_bounds = array<i64: 2>, scalar_prefetch = 0 : i64, scratch_operands = 0 : i64, tpu.core_type = #tpu.core_type<tc>, window_params = [{transform_indices = @transform_0, window_bounds = array<i64: 1, 36, 108>}, {pipeline_mode = #tpu.pipeline_mode<synchronous>, transform_indices = @transform_1, window_bounds = array<i64: 3, 108, 272>}, {pipeline_mode = #tpu.pipeline_mode<synchronous>, transform_indices = @transform_2, window_bounds = array<i64: 1, 272>}, {pipeline_mode = #tpu.pipeline_mode<synchronous>, transform_indices = @transform_3, window_bounds = array<i64: 3, 272, 256>}, {pipeline_mode = #tpu.pipeline_mode<synchronous>, transform_indices = @transform_4, window_bounds = array<i64: 1, 256>}, {pipeline_mode = #tpu.pipeline_mode<synchronous>, transform_indices = @transform_5, window_bounds = array<i64: 3, 128, 224>}, {pipeline_mode = #tpu.pipeline_mode<synchronous>, transform_indices = @transform_6, window_bounds = array<i64: 1, 224>}, {pipeline_mode = #tpu.pipeline_mode<synchronous>, transform_indices = @transform_7, window_bounds = array<i64: 3, 224, 192>}, {pipeline_mode = #tpu.pipeline_mode<synchronous>, transform_indices = @transform_8, window_bounds = array<i64: 1, 192>}, {pipeline_mode = #tpu.pipeline_mode<synchronous>, transform_indices = @transform_9, window_bounds = array<i64: 16, 32>}, {pipeline_mode = #tpu.pipeline_mode<synchronous>, transform_indices = @transform_10, window_bounds = array<i64: 16, 32>}, {pipeline_mode = #tpu.pipeline_mode<synchronous>, transform_indices = @transform_11, window_bounds = array<i64: 256, 128>}, {pipeline_mode = #tpu.pipeline_mode<synchronous>, transform_indices = @transform_12, window_bounds = array<i64: 256, 128>}, {transform_indices = @transform_13, window_bounds = array<i64: 1, 32, 256>}, {transform_indices = @transform_14, window_bounds = array<i64: 1, 12, 192>}]} {
    %c0 = arith.constant 0 : index
    %c0_0 = arith.constant 0 : index
    %c0_1 = arith.constant 0 : index
    %0 = vector.load %arg1[%c0, %c0_0, %c0_1] : memref<1x36x108xf32, #tpu.memory_space<vmem>>, vector<1x36x108xf32>
    %1 = vector.shape_cast %0 : vector<1x36x108xf32> to vector<36x108xf32>
    %2 = vector.extract_strided_slice %1 {offsets = [0, 0], sizes = [34, 108], strides = [1, 1]} : vector<36x108xf32> to vector<34x108xf32>
    %c0_2 = arith.constant 0 : index
    %c0_3 = arith.constant 0 : index
    %c0_4 = arith.constant 0 : index
    %3 = vector.load %arg2[%c0_2, %c0_3, %c0_4] : memref<3x108x272xf32, #tpu.memory_space<vmem>>, vector<1x108x272xf32>
    %4 = vector.shape_cast %3 : vector<1x108x272xf32> to vector<108x272xf32>
    %cst = arith.constant dense<0.000000e+00> : vector<34x272xf32>
    %5 = tpu.matmul %2, %4, %cst {dimension_numbers = #tpu.dot_dimension_numbers<[1], [0], [0], [1], [0, 0, 1, 1], [], []>} : vector<34x108xf32>, vector<108x272xf32>, vector<34x272xf32> -> vector<34x272xf32>
    %6 = vector.extract_strided_slice %1 {offsets = [1, 0], sizes = [34, 108], strides = [1, 1]} : vector<36x108xf32> to vector<34x108xf32>
    %c1 = arith.constant 1 : index
    %c0_5 = arith.constant 0 : index
    %c0_6 = arith.constant 0 : index
    %7 = vector.load %arg2[%c1, %c0_5, %c0_6] : memref<3x108x272xf32, #tpu.memory_space<vmem>>, vector<1x108x272xf32>
    %8 = vector.shape_cast %7 : vector<1x108x272xf32> to vector<108x272xf32>
    %cst_7 = arith.constant dense<0.000000e+00> : vector<34x272xf32>
    %9 = tpu.matmul %6, %8, %cst_7 {dimension_numbers = #tpu.dot_dimension_numbers<[1], [0], [0], [1], [0, 0, 1, 1], [], []>} : vector<34x108xf32>, vector<108x272xf32>, vector<34x272xf32> -> vector<34x272xf32>
    %10 = arith.addf %5, %9 : vector<34x272xf32>
    %11 = vector.extract_strided_slice %1 {offsets = [2, 0], sizes = [34, 108], strides = [1, 1]} : vector<36x108xf32> to vector<34x108xf32>
    %c2 = arith.constant 2 : index
    %c0_8 = arith.constant 0 : index
    %c0_9 = arith.constant 0 : index
    %12 = vector.load %arg2[%c2, %c0_8, %c0_9] : memref<3x108x272xf32, #tpu.memory_space<vmem>>, vector<1x108x272xf32>
    %13 = vector.shape_cast %12 : vector<1x108x272xf32> to vector<108x272xf32>
    %cst_10 = arith.constant dense<0.000000e+00> : vector<34x272xf32>
    %14 = tpu.matmul %11, %13, %cst_10 {dimension_numbers = #tpu.dot_dimension_numbers<[1], [0], [0], [1], [0, 0, 1, 1], [], []>} : vector<34x108xf32>, vector<108x272xf32>, vector<34x272xf32> -> vector<34x272xf32>
    %15 = arith.addf %10, %14 : vector<34x272xf32>
    %c0_11 = arith.constant 0 : index
    %c0_12 = arith.constant 0 : index
    %16 = vector.load %arg3[%c0_11, %c0_12] : memref<1x272xf32, #tpu.memory_space<vmem>>, vector<1x272xf32>
    %17 = vector.broadcast %16 : vector<1x272xf32> to vector<34x272xf32>
    %18 = arith.addf %15, %17 : vector<34x272xf32>
    %cst_13 = arith.constant 0.000000e+00 : f32
    %19 = vector.broadcast %cst_13 : f32 to vector<34x272xf32>
    %20 = arith.maximumf %18, %19 : vector<34x272xf32>
    %21 = vector.extract_strided_slice %20 {offsets = [0, 0], sizes = [32, 272], strides = [1, 1]} : vector<34x272xf32> to vector<32x272xf32>
    %c0_14 = arith.constant 0 : index
    %c0_15 = arith.constant 0 : index
    %c0_16 = arith.constant 0 : index
    %22 = vector.load %arg4[%c0_14, %c0_15, %c0_16] : memref<3x272x256xf32, #tpu.memory_space<vmem>>, vector<1x272x256xf32>
    %23 = vector.shape_cast %22 : vector<1x272x256xf32> to vector<272x256xf32>
    %cst_17 = arith.constant dense<0.000000e+00> : vector<32x256xf32>
    %24 = tpu.matmul %21, %23, %cst_17 {dimension_numbers = #tpu.dot_dimension_numbers<[1], [0], [0], [1], [0, 0, 1, 1], [], []>} : vector<32x272xf32>, vector<272x256xf32>, vector<32x256xf32> -> vector<32x256xf32>
    %25 = vector.extract_strided_slice %20 {offsets = [1, 0], sizes = [32, 272], strides = [1, 1]} : vector<34x272xf32> to vector<32x272xf32>
    %c1_18 = arith.constant 1 : index
    %c0_19 = arith.constant 0 : index
    %c0_20 = arith.constant 0 : index
    %26 = vector.load %arg4[%c1_18, %c0_19, %c0_20] : memref<3x272x256xf32, #tpu.memory_space<vmem>>, vector<1x272x256xf32>
    %27 = vector.shape_cast %26 : vector<1x272x256xf32> to vector<272x256xf32>
    %cst_21 = arith.constant dense<0.000000e+00> : vector<32x256xf32>
    %28 = tpu.matmul %25, %27, %cst_21 {dimension_numbers = #tpu.dot_dimension_numbers<[1], [0], [0], [1], [0, 0, 1, 1], [], []>} : vector<32x272xf32>, vector<272x256xf32>, vector<32x256xf32> -> vector<32x256xf32>
    %29 = arith.addf %24, %28 : vector<32x256xf32>
    %30 = vector.extract_strided_slice %20 {offsets = [2, 0], sizes = [32, 272], strides = [1, 1]} : vector<34x272xf32> to vector<32x272xf32>
    %c2_22 = arith.constant 2 : index
    %c0_23 = arith.constant 0 : index
    %c0_24 = arith.constant 0 : index
    %31 = vector.load %arg4[%c2_22, %c0_23, %c0_24] : memref<3x272x256xf32, #tpu.memory_space<vmem>>, vector<1x272x256xf32>
    %32 = vector.shape_cast %31 : vector<1x272x256xf32> to vector<272x256xf32>
    %cst_25 = arith.constant dense<0.000000e+00> : vector<32x256xf32>
    %33 = tpu.matmul %30, %32, %cst_25 {dimension_numbers = #tpu.dot_dimension_numbers<[1], [0], [0], [1], [0, 0, 1, 1], [], []>} : vector<32x272xf32>, vector<272x256xf32>, vector<32x256xf32> -> vector<32x256xf32>
    %34 = arith.addf %29, %33 : vector<32x256xf32>
    %c0_26 = arith.constant 0 : index
    %c0_27 = arith.constant 0 : index
    %35 = vector.load %arg5[%c0_26, %c0_27] : memref<1x256xf32, #tpu.memory_space<vmem>>, vector<1x256xf32>
    %36 = vector.broadcast %35 : vector<1x256xf32> to vector<32x256xf32>
    %37 = arith.addf %34, %36 : vector<32x256xf32>
    %c0_28 = arith.constant 0 : index
    %c0_29 = arith.constant 0 : index
    %c0_30 = arith.constant 0 : index
    %38 = vector.load %arg14[%c0_28, %c0_29, %c0_30] : memref<1x32x256xf32, #tpu.memory_space<vmem>>, vector<1x32x256xf32>
    %39 = vector.shape_cast %38 : vector<1x32x256xf32> to vector<32x256xf32>
    %40 = vector.shape_cast %37 : vector<32x256xf32> to vector<1x32x256xf32>
    tpu.vector_store %arg14[%c0_28, %c0_29, %c0_30], %40 {strides = array<i32>} : memref<1x32x256xf32, #tpu.memory_space<vmem>>, vector<1x32x256xf32>,
    %c0_31 = arith.constant 0 : index
    %c0_32 = arith.constant 0 : index
    %41 = vector.load %arg10[%c0_31, %c0_32] : memref<16x32xf32, #tpu.memory_space<vmem>>, vector<16x32xf32>
    %cst_33 = arith.constant dense<0.000000e+00> : vector<16x256xf32>
    %42 = tpu.matmul %41, %37, %cst_33 {dimension_numbers = #tpu.dot_dimension_numbers<[1], [0], [0], [1], [0, 0, 1, 1], [], []>} : vector<16x32xf32>, vector<32x256xf32>, vector<16x256xf32> -> vector<16x256xf32>
    %c0_34 = arith.constant 0 : index
    %c0_35 = arith.constant 0 : index
    %43 = vector.load %arg11[%c0_34, %c0_35] : memref<16x32xf32, #tpu.memory_space<vmem>>, vector<16x32xf32>
    %cst_36 = arith.constant dense<0.000000e+00> : vector<16x256xf32>
    %44 = tpu.matmul %43, %37, %cst_36 {dimension_numbers = #tpu.dot_dimension_numbers<[1], [0], [0], [1], [0, 0, 1, 1], [], []>} : vector<16x32xf32>, vector<32x256xf32>, vector<16x256xf32> -> vector<16x256xf32>
    %45 = arith.maximumf %42, %44 : vector<16x256xf32>
    %c0_37 = arith.constant 0 : index
    %c0_38 = arith.constant 0 : index
    %46 = vector.load %arg12[%c0_37, %c0_38] : memref<256x128xf32, #tpu.memory_space<vmem>>, vector<256x128xf32>
    %cst_39 = arith.constant dense<0.000000e+00> : vector<16x128xf32>
    %47 = tpu.matmul %45, %46, %cst_39 {dimension_numbers = #tpu.dot_dimension_numbers<[1], [0], [0], [1], [0, 0, 1, 1], [], []>} : vector<16x256xf32>, vector<256x128xf32>, vector<16x128xf32> -> vector<16x128xf32>
    %c0_40 = arith.constant 0 : index
    %c0_41 = arith.constant 0 : index
    %48 = vector.load %arg13[%c0_40, %c0_41] : memref<256x128xf32, #tpu.memory_space<vmem>>, vector<256x128xf32>
    %cst_42 = arith.constant dense<0.000000e+00> : vector<16x128xf32>
    %49 = tpu.matmul %45, %48, %cst_42 {dimension_numbers = #tpu.dot_dimension_numbers<[1], [0], [0], [1], [0, 0, 1, 1], [], []>} : vector<16x256xf32>, vector<256x128xf32>, vector<16x128xf32> -> vector<16x128xf32>
    %50 = arith.maximumf %47, %49 : vector<16x128xf32>
    %51 = vector.extract_strided_slice %50 {offsets = [0, 0], sizes = [14, 128], strides = [1, 1]} : vector<16x128xf32> to vector<14x128xf32>
    %c0_43 = arith.constant 0 : index
    %c0_44 = arith.constant 0 : index
    %c0_45 = arith.constant 0 : index
    %52 = vector.load %arg6[%c0_43, %c0_44, %c0_45] : memref<3x128x224xf32, #tpu.memory_space<vmem>>, vector<1x128x224xf32>
    %53 = vector.shape_cast %52 : vector<1x128x224xf32> to vector<128x224xf32>
    %cst_46 = arith.constant dense<0.000000e+00> : vector<14x224xf32>
    %54 = tpu.matmul %51, %53, %cst_46 {dimension_numbers = #tpu.dot_dimension_numbers<[1], [0], [0], [1], [0, 0, 1, 1], [], []>} : vector<14x128xf32>, vector<128x224xf32>, vector<14x224xf32> -> vector<14x224xf32>
    %55 = vector.extract_strided_slice %50 {offsets = [1, 0], sizes = [14, 128], strides = [1, 1]} : vector<16x128xf32> to vector<14x128xf32>
    %c1_47 = arith.constant 1 : index
    %c0_48 = arith.constant 0 : index
    %c0_49 = arith.constant 0 : index
    %56 = vector.load %arg6[%c1_47, %c0_48, %c0_49] : memref<3x128x224xf32, #tpu.memory_space<vmem>>, vector<1x128x224xf32>
    %57 = vector.shape_cast %56 : vector<1x128x224xf32> to vector<128x224xf32>
    %cst_50 = arith.constant dense<0.000000e+00> : vector<14x224xf32>
    %58 = tpu.matmul %55, %57, %cst_50 {dimension_numbers = #tpu.dot_dimension_numbers<[1], [0], [0], [1], [0, 0, 1, 1], [], []>} : vector<14x128xf32>, vector<128x224xf32>, vector<14x224xf32> -> vector<14x224xf32>
    %59 = arith.addf %54, %58 : vector<14x224xf32>
    %60 = vector.extract_strided_slice %50 {offsets = [2, 0], sizes = [14, 128], strides = [1, 1]} : vector<16x128xf32> to vector<14x128xf32>
    %c2_51 = arith.constant 2 : index
    %c0_52 = arith.constant 0 : index
    %c0_53 = arith.constant 0 : index
    %61 = vector.load %arg6[%c2_51, %c0_52, %c0_53] : memref<3x128x224xf32, #tpu.memory_space<vmem>>, vector<1x128x224xf32>
    %62 = vector.shape_cast %61 : vector<1x128x224xf32> to vector<128x224xf32>
    %cst_54 = arith.constant dense<0.000000e+00> : vector<14x224xf32>
    %63 = tpu.matmul %60, %62, %cst_54 {dimension_numbers = #tpu.dot_dimension_numbers<[1], [0], [0], [1], [0, 0, 1, 1], [], []>} : vector<14x128xf32>, vector<128x224xf32>, vector<14x224xf32> -> vector<14x224xf32>
    %64 = arith.addf %59, %63 : vector<14x224xf32>
    %c0_55 = arith.constant 0 : index
    %c0_56 = arith.constant 0 : index
    %65 = vector.load %arg7[%c0_55, %c0_56] : memref<1x224xf32, #tpu.memory_space<vmem>>, vector<1x224xf32>
    %66 = vector.broadcast %65 : vector<1x224xf32> to vector<14x224xf32>
    %67 = arith.addf %64, %66 : vector<14x224xf32>
    %cst_57 = arith.constant 0.000000e+00 : f32
    %68 = vector.broadcast %cst_57 : f32 to vector<14x224xf32>
    %69 = arith.maximumf %67, %68 : vector<14x224xf32>
    %70 = vector.extract_strided_slice %69 {offsets = [0, 0], sizes = [12, 224], strides = [1, 1]} : vector<14x224xf32> to vector<12x224xf32>
    %c0_58 = arith.constant 0 : index
    %c0_59 = arith.constant 0 : index
    %c0_60 = arith.constant 0 : index
    %71 = vector.load %arg8[%c0_58, %c0_59, %c0_60] : memref<3x224x192xf32, #tpu.memory_space<vmem>>, vector<1x224x192xf32>
    %72 = vector.shape_cast %71 : vector<1x224x192xf32> to vector<224x192xf32>
    %cst_61 = arith.constant dense<0.000000e+00> : vector<12x192xf32>
    %73 = tpu.matmul %70, %72, %cst_61 {dimension_numbers = #tpu.dot_dimension_numbers<[1], [0], [0], [1], [0, 0, 1, 1], [], []>} : vector<12x224xf32>, vector<224x192xf32>, vector<12x192xf32> -> vector<12x192xf32>
    %74 = vector.extract_strided_slice %69 {offsets = [1, 0], sizes = [12, 224], strides = [1, 1]} : vector<14x224xf32> to vector<12x224xf32>
    %c1_62 = arith.constant 1 : index
    %c0_63 = arith.constant 0 : index
    %c0_64 = arith.constant 0 : index
    %75 = vector.load %arg8[%c1_62, %c0_63, %c0_64] : memref<3x224x192xf32, #tpu.memory_space<vmem>>, vector<1x224x192xf32>
    %76 = vector.shape_cast %75 : vector<1x224x192xf32> to vector<224x192xf32>
    %cst_65 = arith.constant dense<0.000000e+00> : vector<12x192xf32>
    %77 = tpu.matmul %74, %76, %cst_65 {dimension_numbers = #tpu.dot_dimension_numbers<[1], [0], [0], [1], [0, 0, 1, 1], [], []>} : vector<12x224xf32>, vector<224x192xf32>, vector<12x192xf32> -> vector<12x192xf32>
    %78 = arith.addf %73, %77 : vector<12x192xf32>
    %79 = vector.extract_strided_slice %69 {offsets = [2, 0], sizes = [12, 224], strides = [1, 1]} : vector<14x224xf32> to vector<12x224xf32>
    %c2_66 = arith.constant 2 : index
    %c0_67 = arith.constant 0 : index
    %c0_68 = arith.constant 0 : index
    %80 = vector.load %arg8[%c2_66, %c0_67, %c0_68] : memref<3x224x192xf32, #tpu.memory_space<vmem>>, vector<1x224x192xf32>
    %81 = vector.shape_cast %80 : vector<1x224x192xf32> to vector<224x192xf32>
    %cst_69 = arith.constant dense<0.000000e+00> : vector<12x192xf32>
    %82 = tpu.matmul %79, %81, %cst_69 {dimension_numbers = #tpu.dot_dimension_numbers<[1], [0], [0], [1], [0, 0, 1, 1], [], []>} : vector<12x224xf32>, vector<224x192xf32>, vector<12x192xf32> -> vector<12x192xf32>
    %83 = arith.addf %78, %82 : vector<12x192xf32>
    %c0_70 = arith.constant 0 : index
    %c0_71 = arith.constant 0 : index
    %84 = vector.load %arg9[%c0_70, %c0_71] : memref<1x192xf32, #tpu.memory_space<vmem>>, vector<1x192xf32>
    %85 = vector.broadcast %84 : vector<1x192xf32> to vector<12x192xf32>
    %86 = arith.addf %83, %85 : vector<12x192xf32>
    %c0_72 = arith.constant 0 : index
    %c0_73 = arith.constant 0 : index
    %c0_74 = arith.constant 0 : index
    %87 = vector.load %arg15[%c0_72, %c0_73, %c0_74] : memref<1x12x192xf32, #tpu.memory_space<vmem>>, vector<1x12x192xf32>
    %88 = vector.shape_cast %87 : vector<1x12x192xf32> to vector<12x192xf32>
    %89 = vector.shape_cast %86 : vector<12x192xf32> to vector<1x12x192xf32>
    tpu.vector_store %arg15[%c0_72, %c0_73, %c0_74], %89 {strides = array<i32>} : memref<1x12x192xf32, #tpu.memory_space<vmem>>, vector<1x12x192xf32>,
    return
  }
  func.func @transform_0(%arg0: i32) -> (i32, i32, i32) {
    %c0_i32 = arith.constant 0 : i32
    %c0_i32_0 = arith.constant 0 : i32
    %c0_i32_1 = arith.constant 0 : i32
    return %arg0, %c0_i32, %c0_i32_0 : i32, i32, i32
  }
  func.func @transform_1(%arg0: i32) -> (i32, i32, i32) {
    %c0_i32 = arith.constant 0 : i32
    %c0_i32_0 = arith.constant 0 : i32
    %c0_i32_1 = arith.constant 0 : i32
    %c0_i32_2 = arith.constant 0 : i32
    return %c0_i32, %c0_i32_0, %c0_i32_1 : i32, i32, i32
  }
  func.func @transform_2(%arg0: i32) -> (i32, i32) {
    %c0_i32 = arith.constant 0 : i32
    %c0_i32_0 = arith.constant 0 : i32
    %c0_i32_1 = arith.constant 0 : i32
    return %c0_i32, %c0_i32_0 : i32, i32
  }
  func.func @transform_3(%arg0: i32) -> (i32, i32, i32) {
    %c0_i32 = arith.constant 0 : i32
    %c0_i32_0 = arith.constant 0 : i32
    %c0_i32_1 = arith.constant 0 : i32
    %c0_i32_2 = arith.constant 0 : i32
    return %c0_i32, %c0_i32_0, %c0_i32_1 : i32, i32, i32
  }
  func.func @transform_4(%arg0: i32) -> (i32, i32) {
    %c0_i32 = arith.constant 0 : i32
    %c0_i32_0 = arith.constant 0 : i32
    %c0_i32_1 = arith.constant 0 : i32
    return %c0_i32, %c0_i32_0 : i32, i32
  }
  func.func @transform_5(%arg0: i32) -> (i32, i32, i32) {
    %c0_i32 = arith.constant 0 : i32
    %c0_i32_0 = arith.constant 0 : i32
    %c0_i32_1 = arith.constant 0 : i32
    %c0_i32_2 = arith.constant 0 : i32
    return %c0_i32, %c0_i32_0, %c0_i32_1 : i32, i32, i32
  }
  func.func @transform_6(%arg0: i32) -> (i32, i32) {
    %c0_i32 = arith.constant 0 : i32
    %c0_i32_0 = arith.constant 0 : i32
    %c0_i32_1 = arith.constant 0 : i32
    return %c0_i32, %c0_i32_0 : i32, i32
  }
  func.func @transform_7(%arg0: i32) -> (i32, i32, i32) {
    %c0_i32 = arith.constant 0 : i32
    %c0_i32_0 = arith.constant 0 : i32
    %c0_i32_1 = arith.constant 0 : i32
    %c0_i32_2 = arith.constant 0 : i32
    return %c0_i32, %c0_i32_0, %c0_i32_1 : i32, i32, i32
  }
  func.func @transform_8(%arg0: i32) -> (i32, i32) {
    %c0_i32 = arith.constant 0 : i32
    %c0_i32_0 = arith.constant 0 : i32
    %c0_i32_1 = arith.constant 0 : i32
    return %c0_i32, %c0_i32_0 : i32, i32
  }
  func.func @transform_9(%arg0: i32) -> (i32, i32) {
    %c0_i32 = arith.constant 0 : i32
    %c0_i32_0 = arith.constant 0 : i32
    %c0_i32_1 = arith.constant 0 : i32
    return %c0_i32, %c0_i32_0 : i32, i32
  }
  func.func @transform_10(%arg0: i32) -> (i32, i32) {
    %c0_i32 = arith.constant 0 : i32
    %c0_i32_0 = arith.constant 0 : i32
    %c0_i32_1 = arith.constant 0 : i32
    return %c0_i32, %c0_i32_0 : i32, i32
  }
  func.func @transform_11(%arg0: i32) -> (i32, i32) {
    %c0_i32 = arith.constant 0 : i32
    %c0_i32_0 = arith.constant 0 : i32
    %c0_i32_1 = arith.constant 0 : i32
    return %c0_i32, %c0_i32_0 : i32, i32
  }
  func.func @transform_12(%arg0: i32) -> (i32, i32) {
    %c0_i32 = arith.constant 0 : i32
    %c0_i32_0 = arith.constant 0 : i32
    %c0_i32_1 = arith.constant 0 : i32
    return %c0_i32, %c0_i32_0 : i32, i32
  }
  func.func @transform_13(%arg0: i32) -> (i32, i32, i32) {
    %c0_i32 = arith.constant 0 : i32
    %c0_i32_0 = arith.constant 0 : i32
    %c0_i32_1 = arith.constant 0 : i32
    return %arg0, %c0_i32, %c0_i32_0 : i32, i32, i32
  }
  func.func @transform_14(%arg0: i32) -> (i32, i32, i32) {
    %c0_i32 = arith.constant 0 : i32
    %c0_i32_0 = arith.constant 0 : i32
    %c0_i32_1 = arith.constant 0 : i32
    return %arg0, %c0_i32, %c0_i32_0 : i32, i32, i32
  }
}

</mosaic_0001>

<bundles_post_ra>
// kernel: tpu_custom_call.1
= control target key start
LH: loop header
LB: loop body
LE: loop exit
PB: predicated region body
PF: predicated region fallthrough
CT: control target
= control target key end

     0   :  { %20 = vsyncpa [#allocation3], 0  ;;  %s7033_s0 = inlined_call_operand.vmem [shape: f32[2,36,108], index: 0, kind: input, shape index: {}]   ;;  %s7034_s1 = inlined_call_operand.vmem [shape: f32[3,108,272], index: 1, kind: input, shape index: {}]   ;;  %s7035_s2 = inlined_call_operand.vmem [shape: f32[1,272], index: 2, kind: input, shape index: {}]   ;;  %s7036_s3 = inlined_call_operand.vmem [shape: f32[3,272,256], index: 3, kind: input, shape index: {}]   ;;  %s7037_s4 = inlined_call_operand.vmem [shape: f32[1,256], index: 4, kind: input, shape index: {}]   ;;  %s7038_s5 = inlined_call_operand.vmem [shape: f32[3,128,224], index: 5, kind: input, shape index: {}]   ;;  %s7039_s6 = inlined_call_operand.vmem [shape: f32[1,224], index: 6, kind: input, shape index: {}]   ;;  %s7040_s7 = inlined_call_operand.vmem [shape: f32[3,224,192], index: 7, kind: input, shape index: {}]   ;;  %s7041_s8 = inlined_call_operand.vmem [shape: f32[1,192], index: 8, kind: input, shape index: {}]   ;;  %s7042_s9 = inlined_call_operand.vmem [shape: f32[16,32], index: 9, kind: input, shape index: {}]   ;;  %s7043_s10 = inlined_call_operand.vmem [shape: f32[16,32], index: 10, kind: input, shape index: {}]   ;;  %s7044_s11 = inlined_call_operand.vmem [shape: f32[256,128], index: 11, kind: input, shape index: {}]   ;;  %s7045_s12 = inlined_call_operand.vmem [shape: f32[256,128], index: 12, kind: input, shape index: {}]   ;;  %s7046_s13 = inlined_call_operand.hbm [shape: f32[2,32,256], index: 13, kind: output, shape index: {0}]   ;;  %s7047_s14 = inlined_call_operand.vmem [shape: f32[2,12,192], index: 14, kind: output, shape index: {1}]  }
   0x1   :  { %22 = vsyncpa [#allocation3 + $0x1], 0  ;;  %s4444_s29 = smov 0   ;;  %s4446_s30 = smov 0  }
   0x2   :  { %s4448_s15 = smov 0   ;;  %s4450_s16 = smov 0  }
   0x3 LB: > { %7054 = sst [smem:[#allocation5_spill]] %s4350_s29  ;;  %s4465_s17 = sadd.s32 4294967295, %s4362_s16   ;;  %s4362_s16 = sphi %s4450_s16, %s7065_s16   ;;  %s4358_s15 = sphi %s4448_s15, %s7067_s15   ;;  %s4354_s30 = sphi %s4446_s30, %s7069_s30   ;;  %s4350_s29 = sphi %s4444_s29, %s7068_s29  }
   0x4   : > { %7055 = sst [smem:[#allocation6_spill]] %s4358_s15  ;;  %s3524_s18 = sadd.s32 4294967294, %s4362_s16  }
   0x5   : > { %7056 = sst [smem:[#allocation7_spill]] %s4362_s16  ;;  %s4469_s19 = sadd.s32 1, %s4362_s16  }
   0x6   : > { %7057 = sst [smem:[#allocation8_spill]] %s4469_s19  ;;  %s313_s20 = sadd.s32 1, %s4358_s15 }
   0x7   : > { %s310_s21 = ssub.s32 %s4362_s16, %s4469_s19  ;;  %p323_p0 = scmp.ne.s32.totalorder %s4358_s15, %s4354_s30 }
   0x8   : > { %p311_p1 = scmp.eq.s32.totalorder %s310_s21, 0  ;;  %p324_p2 = scmp.eq.s32.totalorder %s4465_s17, 1 }
   0x9   : > { %p329_p3 = scmp.ne.s32.totalorder %s4354_s30, %s4350_s29  ;;  %p330_p4 = scmp.eq.s32.totalorder %s3524_s18, 1 }
   0xa   : > { %s4480_s22 = scalar_select %p311_p1, %s4358_s15, %s313_s20  }
   0xb   : > { %p4482_p5 = por %p324_p2, %p323_p0  ;;  %p4486_p6 = por %p330_p4, %p329_p3 }
   0xc   : > { %7058 = sst [smem:[#allocation9_spill]] %s4480_s22  ;;  %p3527_p7 = scmp.ge.s32.totalorder %s4362_s16, 1 }
   0xd   : > { %s7060_s24 = scalar_select %p4486_p6, 1, 0 }
   0xe   : > { %p418_p8 = scmp.lt.s32.totalorder %s4362_s16, 3 }
   0xf   : > { %7061 = sst [smem:[#allocation10_spill]] %s7060_s24 }
  0x10   : > { %p419_p9 = pnand %p3527_p7, %p418_p8 }
  0x11   : > { %p469_p10 = scmp.lt.s32.totalorder (!%p419_p9), %s4465_s17, 1  ;;  %s3995_s21 = sshll.u32 (!%p419_p9), %s4465_s17, 10 }
  0x12   : > { %422 = sbr.rel (%p419_p9) target bundleno = 1572 (0x624), region = 72  ;;  %s6978_s27 = scalar_lea.hbm (!%p419_p9), %s7046_s13, %s3995_s21 }
  0x17   : > { %v3572_v0 = vld [vmem:[%s7034_s1 + $0x290] sm:$0xf]  ;;  %vm595_vm0 = vcmask 1043456   ;;  %v524_v1 = vld [vmem:[%s7034_s1 + $0x140] sm:$0xf]  ;;  %v3569_v2 = vld [vmem:[%s7034_s1 + $0x278] sm:$0xff] }
  0x18   : > { %3574 = vmatprep.subr.msk.mxu1 %vm595_vm0, %v3572_v0  ;;  %3587 = vmatprep.subr.msk.mxu0 %vm595_vm0, %v524_v1  ;;  %v3571_v3 = vld [vmem:[%s7034_s1 + $0x288] sm:$0xf]  ;;  %v523_v4 = vld [vmem:[%s7034_s1 + $0x138] sm:$0xf]  ;;  %v3568_v6 = vld [vmem:[%s7034_s1 + $0x270] sm:$0xff]  ;;  %s4572_s19 = scalar_select %p469_p10, %s4465_s17, 1 }
  0x19   : > { %v521_v5 = vld [vmem:[%s7034_s1 + $0x128] sm:$0xff]  ;;  %3575 = vmatpush1.msk.msra.mxu1 %vm595_vm0, %v3571_v3  ;;  %3588 = vmatpush1.msk.msra.mxu0 %vm595_vm0, %v523_v4  ;;  %v520_v7 = vld [vmem:[%s7034_s1 + $0x120] sm:$0xff]  ;;  %v518_v9 = vld [vmem:[%s7034_s1 + $0x110] sm:$0xff]  ;;  %vm574_vm1 = vcmask 1046528   ;;  %vm584_vm2 = vcmask 883712   ;;  %v4364_v61 = vmov 0.0  }
  0x1a   : > { %v3566_v8 = vld [vmem:[%s7034_s1 + $0x260] sm:$0xff]  ;;  %611 = vmatprep.subr.mxu1 %v3569_v2  ;;  %815 = vmatprep.subr.mxu0 %v521_v5  ;;  %v3565_v10 = vld [vmem:[%s7034_s1 + $0x258] sm:$0xff]  ;;  %v517_v11 = vld [vmem:[%s7034_s1 + $0x108] sm:$0xff]  ;;  %s4258_s20 = smul.u32 40, %s4572_s19  ;;  %vm1037_vm3 = vcmask 1045504   ;;  %vm4365_vm4 = vmmov 0  }
  0x1b   : > { %612 = vmatpush1.msra.mxu1 %v3568_v6  ;;  %816 = vmatpush1.msra.mxu0 %v520_v7  ;;  %v3563_v12 = vld [vmem:[%s7034_s1 + $0x248] sm:$0xff]  ;;  %v515_v13 = vld [vmem:[%s7034_s1 + $0xf8] sm:$0xff]  ;;  %v3562_v14 = vld [vmem:[%s7034_s1 + $0x240] sm:$0xff]  ;;  %vm1500_vm5 = vcmask 130048   ;;  %vm2201_vm6 = vcmask 261120   ;;  %vm3080_vm7 = vcmask 785408  }
  0x1c   : > { %613 = vmatprep.subr.mxu1 %v3566_v8  ;;  %817 = vmatprep.subr.mxu0 %v518_v9  ;;  %v514_v15 = vld [vmem:[%s7034_s1 + $0xf0] sm:$0xff]  ;;  %v512_v17 = vld [vmem:[%s7034_s1 + $0xe0] sm:$0xff]  ;;  %v3559_v18 = vld [vmem:[%s7034_s1 + $0x228] sm:$0xff]  ;;  %s4626_s16 = scalar_lea.vmem %s7033_s0, %s4258_s20  ;;  %s4366_s17 = smov [#allocation2]  }
  0x1d   : > { %614 = vmatpush1.msra.mxu1 %v3565_v10  ;;  %818 = vmatpush1.msra.mxu0 %v517_v11  ;;  %v3560_v16 = vld [vmem:[%s7034_s1 + $0x230] sm:$0xff]  ;;  %v511_v19 = vld [vmem:[%s7034_s1 + $0xd8] sm:$0xff]  ;;  %v509_v21 = vld [vmem:[%s7034_s1 + $0xc8] sm:$0xff] }
  0x1e   : > { %615 = vmatprep.subr.mxu1 %v3563_v12  ;;  %819 = vmatprep.subr.mxu0 %v515_v13  ;;  %v3557_v20 = vld [vmem:[%s7034_s1 + $0x218] sm:$0xff]  ;;  %v3556_v22 = vld [vmem:[%s7034_s1 + $0x210] sm:$0xff]  ;;  %v508_v23 = vld [vmem:[%s7034_s1 + $0xc0] sm:$0xff] }
  0x1f   : > { %616 = vmatpush1.msra.mxu1 %v3562_v14  ;;  %820 = vmatpush1.msra.mxu0 %v514_v15  ;;  %v3554_v24 = vld [vmem:[%s7034_s1 + $0x200] sm:$0xff]  ;;  %v506_v25 = vld [vmem:[%s7034_s1 + $0xb0] sm:$0xff]  ;;  %v3553_v26 = vld [vmem:[%s7034_s1 + $0x1f8] sm:$0xff] }
  0x20   : > { %617 = vmatprep.subr.mxu1 %v3560_v16  ;;  %821 = vmatprep.subr.mxu0 %v512_v17  ;;  %v505_v27 = vld [vmem:[%s7034_s1 + $0xa8] sm:$0xff]  ;;  %v503_v29 = vld [vmem:[%s7034_s1 + $0x98] sm:$0xff]  ;;  %v3550_v30 = vld [vmem:[%s7034_s1 + $0x1e0] sm:$0xff] }
  0x21   : > { %618 = vmatpush1.msra.mxu1 %v3559_v18  ;;  %822 = vmatpush1.msra.mxu0 %v511_v19  ;;  %v3551_v28 = vld [vmem:[%s7034_s1 + $0x1e8] sm:$0xff]  ;;  %v502_v31 = vld [vmem:[%s7034_s1 + $0x90] sm:$0xff]  ;;  %v500_v33 = vld [vmem:[%s7034_s1 + $0x80] sm:$0xff] }
  0x22   : > { %619 = vmatprep.subr.mxu1 %v3557_v20  ;;  %823 = vmatprep.subr.mxu0 %v509_v21  ;;  %v3548_v32 = vld [vmem:[%s7034_s1 + $0x1d0] sm:$0xff]  ;;  %v3547_v34 = vld [vmem:[%s7034_s1 + $0x1c8] sm:$0xff]  ;;  %v499_v35 = vld [vmem:[%s7034_s1 + $0x78] sm:$0xff] }
  0x23   : > { %620 = vmatpush1.msra.mxu1 %v3556_v22  ;;  %824 = vmatpush1.msra.mxu0 %v508_v23  ;;  %v3545_v36 = vld [vmem:[%s7034_s1 + $0x1b8] sm:$0xff]  ;;  %v497_v37 = vld [vmem:[%s7034_s1 + $0x68] sm:$0xff]  ;;  %v3544_v38 = vld [vmem:[%s7034_s1 + $0x1b0] sm:$0xff] }
  0x24   : > { %621 = vmatprep.subr.mxu1 %v3554_v24  ;;  %825 = vmatprep.subr.mxu0 %v506_v25  ;;  %v496_v39 = vld [vmem:[%s7034_s1 + $0x60] sm:$0xff]  ;;  %v494_v41 = vld [vmem:[%s7034_s1 + $0x50] sm:$0xff]  ;;  %v3541_v42 = vld [vmem:[%s7034_s1 + $0x198] sm:$0xff] }
  0x25   : > { %622 = vmatpush1.msra.mxu1 %v3553_v26  ;;  %826 = vmatpush1.msra.mxu0 %v505_v27  ;;  %v3542_v40 = vld [vmem:[%s7034_s1 + $0x1a0] sm:$0xff]  ;;  %v493_v43 = vld [vmem:[%s7034_s1 + $0x48] sm:$0xff]  ;;  %v491_v45 = vld [vmem:[%s7034_s1 + $0x38] sm:$0xff] }
  0x26   : > { %623 = vmatprep.subr.mxu1 %v3551_v28  ;;  %827 = vmatprep.subr.mxu0 %v503_v29  ;;  %v3539_v44 = vld [vmem:[%s7034_s1 + $0x188] sm:$0xff]  ;;  %v4647_v46 = vld [vmem:[%s4626_s16] sm:$0xff]  ;;  %v490_v49 = vld [vmem:[%s7034_s1 + $0x30] sm:$0xff] }
  0x27   : > { %624 = vmatpush1.msra.mxu1 %v3550_v30  ;;  %828 = vmatpush1.msra.mxu0 %v502_v31  ;;  %v4650_v47 = vld [vmem:[%s4626_s16 + $0x8] sm:$0xff]  ;;  %v3538_v48 = vld [vmem:[%s7034_s1 + $0x180] sm:$0xff]  ;;  %v3536_v50 = vld [vmem:[%s7034_s1 + $0x170] sm:$0xff]  ;;  %v575_v54 = vrot.slane %v4647_v46, 1 }
  0x28   : > { %625 = vmatprep.subr.mxu1 %v3548_v32  ;;  %829 = vmatprep.subr.mxu0 %v500_v33  ;;  %v488_v51 = vld [vmem:[%s7034_s1 + $0x20] sm:$0xff]  ;;  %v3535_v52 = vld [vmem:[%s7034_s1 + $0x168] sm:$0xff]  ;;  %v487_v53 = vld [vmem:[%s7034_s1 + $0x18] sm:$0xff]  ;;  %v576_v55 = vrot.slane %v4650_v47, 1 }
  0x29   : > { %626 = vmatpush1.msra.mxu1 %v3547_v34  ;;  %830 = vmatpush1.msra.mxu0 %v499_v35  ;;  %v3533_v56 = vld [vmem:[%s7034_s1 + $0x158] sm:$0xff]  ;;  %v485_v57 = vld [vmem:[%s7034_s1 + $0x8] sm:$0xff]  ;;  %v3532_v58 = vld [vmem:[%s7034_s1 + $0x150] sm:$0xff] }
  0x2a   : > { %627 = vmatprep.subr.mxu1 %v3545_v36  ;;  %831 = vmatprep.subr.mxu0 %v497_v37  ;;  %v484_v59 = vld [vmem:[%s7034_s1] sm:$0xff]  ;;  %v4687_v60 = vsel %vm574_vm1, %v575_v54, %v576_v55  ;;  %v3573_v63 = vld [vmem:[%s7034_s1 + $0x298] sm:$0xf]  ;;  %v3637_v1 = vld [vmem:[%s7034_s1 + $0x3c8] sm:$0xff] }
  0x2b   : > { %628 = vmatpush1.msra.mxu1 %v3544_v38  ;;  %832 = vmatpush1.msra.mxu0 %v496_v39  ;;  %v3640_v62 = vld [vmem:[%s7034_s1 + $0x3e0] sm:$0xf]  ;;  %v3639_v0 = vld [vmem:[%s7034_s1 + $0x3d8] sm:$0xf]  ;;  %v3634_v4 = vld [vmem:[%s7034_s1 + $0x3b0] sm:$0xff] }
  0x2c   : > { %629 = vmatprep.subr.mxu1 %v3542_v40  ;;  %833 = vmatprep.subr.mxu0 %v494_v41  ;;  %v3570_v2 = vld [vmem:[%s7034_s1 + $0x280] sm:$0xff]  ;;  %v3567_v5 = vld [vmem:[%s7034_s1 + $0x268] sm:$0xff]  ;;  %v4728_v7 = vld [vmem:[%s4626_s16 + $0x10] sm:$0xff] }
  0x2d   : > { %630 = vmatpush1.msra.mxu1 %v3541_v42  ;;  %834 = vmatpush1.msra.mxu0 %v493_v43  ;;  %v3636_v3 = vld [vmem:[%s7034_s1 + $0x3c0] sm:$0xff]  ;;  %v3633_v6 = vld [vmem:[%s7034_s1 + $0x3a8] sm:$0xff]  ;;  %v3631_v8 = vld [vmem:[%s7034_s1 + $0x398] sm:$0xff]  ;;  %v578_v12 = vrot.slane %v4728_v7, 1 }
  0x2e   : > { %631 = vmatprep.subr.mxu1 %v3539_v44  ;;  %835 = vmatprep.subr.mxu0 %v491_v45  ;;  %v3564_v9 = vld [vmem:[%s7034_s1 + $0x250] sm:$0xff]  ;;  %v3628_v11 = vld [vmem:[%s7034_s1 + $0x380] sm:$0xff]  ;;  %v3561_v13 = vld [vmem:[%s7034_s1 + $0x238] sm:$0xff] }
  0x2f   : > { %632 = vmatpush1.msra.mxu1 %v3538_v48  ;;  %836 = vmatpush1.msra.mxu0 %v490_v49  ;;  %v3630_v10 = vld [vmem:[%s7034_s1 + $0x390] sm:$0xff]  ;;  %v3627_v14 = vld [vmem:[%s7034_s1 + $0x378] sm:$0xff]  ;;  %v3625_v15 = vld [vmem:[%s7034_s1 + $0x368] sm:$0xff]  ;;  %v4761_v17 = vsel %vm574_vm1, %v576_v55, %v578_v12  ;;  %v1038_v49 = vrot.slane %v4647_v46, 2  ;;  %v1041_v55 = vrot.slane %v4728_v7, 2 }
  0x30   : > { %633 = vmatprep.subr.mxu1 %v3536_v50  ;;  %837 = vmatprep.subr.mxu0 %v488_v51  ;;  %v4756_v16 = vld [vmem:[%s4626_s16 + $0x18] sm:$0xff]  ;;  %v3558_v18 = vld [vmem:[%s7034_s1 + $0x220] sm:$0xff]  ;;  %v3622_v20 = vld [vmem:[%s7034_s1 + $0x350] sm:$0xff]  ;;  %v1039_v50 = vrot.slane %v4650_v47, 2 }
  0x31   : > { %634 = vmatpush1.msra.mxu1 %v3535_v52  ;;  %838 = vmatpush1.msra.mxu0 %v487_v53  ;;  %v3624_v19 = vld [vmem:[%s7034_s1 + $0x360] sm:$0xff]  ;;  %v580_v21 = vrot.slane %v4756_v16, 1  ;;  %v3555_v22 = vld [vmem:[%s7034_s1 + $0x208] sm:$0xff]  ;;  %v3619_v24 = vld [vmem:[%s7034_s1 + $0x338] sm:$0xff] }
  0x32   : > { %635 = vmatprep.subr.mxu1 %v3533_v56  ;;  %839 = vmatprep.subr.mxu0 %v485_v57  ;;  %v3621_v23 = vld [vmem:[%s7034_s1 + $0x348] sm:$0xff]  ;;  %v4791_v25 = vld [vmem:[%s4626_s16 + $0x20] sm:$0xf]  ;;  %v3552_v27 = vld [vmem:[%s7034_s1 + $0x1f0] sm:$0xff]  ;;  %v4893_v53 = vsel %vm1037_vm3, %v1038_v49, %v1039_v50  ;;  %v4912_v57 = vsel %vm1037_vm3, %v1039_v50, %v1041_v55  ;;  %s459_s16 = sand.u32 1, %s4354_s30  }
  0x33   : > { %636 = vmatpush1.msra.mxu1 %v3532_v58  ;;  %669 = vmatprep.mubr.f32.mxu1 %v4364_v61  ;;  %v4794_v26 = vsel %vm574_vm1, %v578_v12, %v580_v21  ;;  %v3618_v28 = vld [vmem:[%s7034_s1 + $0x330] sm:$0xff]  ;;  %v3616_v29 = vld [vmem:[%s7034_s1 + $0x320] sm:$0xff]  ;;  %v4809_v30 = vrot.slane %v4791_v25, 1  ;;  %v3549_v31 = vld [vmem:[%s7034_s1 + $0x1d8] sm:$0xff]  ;;  %s3528_s24 = sshll.u32 %s459_s16, 6  ;;  %s6984_s28 = scalar_lea.sflag [#allocation3], %s459_s16 }
  0x34   : > { %840 = vmatpush1.msra.mxu0 %v484_v59  ;;  %873 = vmatprep.mubr.f32.mxu0 %v4364_v61  ;;  %v3615_v32 = vld [vmem:[%s7034_s1 + $0x318] sm:$0xff]  ;;  %v3613_v33 = vld [vmem:[%s7034_s1 + $0x308] sm:$0xff]  ;;  %v3546_v35 = vld [vmem:[%s7034_s1 + $0x1c0] sm:$0xff]  ;;  %v1043_v59 = vrot.slane %v4756_v16, 2  ;;  %s5955_s15 = scalar_lea.vmem [#allocation2], %s3528_s24 }
  0x35   : > { %3576 = vmatmul.mubr.msk.f32.vlgmr.msra.gmra.mxu1 %vm584_vm2, %v4687_v60  ;;  %4129 = vmatprep.subr.mxu1 %v4364_v61  ;;  %v4827_v34 = vsel %vm574_vm1, %v580_v21, %v4809_v30  ;;  %v3612_v36 = vld [vmem:[%s7034_s1 + $0x300] sm:$0xff]  ;;  %v3610_v37 = vld [vmem:[%s7034_s1 + $0x2f0] sm:$0xff]  ;;  %v3543_v38 = vld [vmem:[%s7034_s1 + $0x1a8] sm:$0xff]  ;;  %s3434_s20 = sshll.u32 %s5955_s15, 4  ;;  %s6980_s20 = int_to_ptr.vmem [resolvable:$true] %s3434_s20 }
  0x36   : > { %3589 = vmatmul.mubr.msk.f32.vlgmr.msra.gmra.mxu0 %vm584_vm2, %v4647_v46  ;;  %3642 = vmatprep.subr.msk.mxu0 %vm595_vm0, %v3640_v62  ;;  %v3609_v39 = vld [vmem:[%s7034_s1 + $0x2e8] sm:$0xff]  ;;  %v3607_v40 = vld [vmem:[%s7034_s1 + $0x2d8] sm:$0xff]  ;;  %v3540_v41 = vld [vmem:[%s7034_s1 + $0x190] sm:$0xff]  ;;  %v4931_v62 = vsel %vm1037_vm3, %v1041_v55, %v1043_v59  ;;  %s4302_s29 = scalar_lea.vmem %s6980_s20, 1024 }
  0x37   : > { %4130 = vmatpush3.msk.msra.mxu1 %vm595_vm0, %v3573_v63  ;;  %3643 = vmatpush1.msk.msra.mxu0 %vm595_vm0, %v3639_v0  ;;  %v3606_v42 = vld [vmem:[%s7034_s1 + $0x2d0] sm:$0xff]  ;;  %v3604_v43 = vld [vmem:[%s7034_s1 + $0x2c0] sm:$0xff]  ;;  %v3537_v44 = vld [vmem:[%s7034_s1 + $0x178] sm:$0xff]  ;;  %v4937_v0 = vrot.slane %v4791_v25, 2  ;;  %p4303_p11 = scmp.ne.s32.totalorder %s6980_s20, %s4302_s29 }
  0x38   : > { %4131 = vmatprep.subr.mxu1 %v4364_v61  ;;  %1072 = vmatprep.subr.mxu0 %v3637_v1  ;;  %v3603_v45 = vld [vmem:[%s7034_s1 + $0x2b8] sm:$0xff]  ;;  %v3601_v48 = vld [vmem:[%s7034_s1 + $0x2a8] sm:$0xff]  ;;  %v3534_v51 = vld [vmem:[%s7034_s1 + $0x160] sm:$0xff] }
  0x39   : > { %4132 = vmatpush3.msra.mxu1 %v3570_v2  ;;  %1073 = vmatpush1.msra.mxu0 %v3636_v3  ;;  %v3600_v52 = vld [vmem:[%s7034_s1 + $0x2a0] sm:$0xff]  ;;  %v525_v54 = vld [vmem:[%s7034_s1 + $0x148] sm:$0xf]  ;;  %v522_v56 = vld [vmem:[%s7034_s1 + $0x130] sm:$0xff]  ;;  %v4953_v2 = vsel %vm1037_vm3, %v1043_v59, %v4937_v0  ;;  %p4304_p12 = pnand %p4303_p11, %p4482_p5 }
  0x3a   : > { %4133 = vmatprep.subr.mxu1 %v4364_v61  ;;  %1074 = vmatprep.subr.mxu0 %v3634_v4  ;;  %v519_v58 = vld [vmem:[%s7034_s1 + $0x118] sm:$0xff]  ;;  %v513_v63 = vld [vmem:[%s7034_s1 + $0xe8] sm:$0xff]  ;;  %v510_v1 = vld [vmem:[%s7034_s1 + $0xd0] sm:$0xff] }
  0x3b   : > { %4134 = vmatpush3.msra.mxu1 %v3567_v5  ;;  %1075 = vmatpush1.msra.mxu0 %v3633_v6  ;;  %v507_v3 = vld [vmem:[%s7034_s1 + $0xb8] sm:$0xff]  ;;  %v504_v4 = vld [vmem:[%s7034_s1 + $0xa0] sm:$0xff]  ;;  %v501_v5 = vld [vmem:[%s7034_s1 + $0x88] sm:$0xff]  ;;  %p4305_p13 = pneg %p4304_p12 }
  0x3c   : > { %4135 = vmatprep.subr.mxu1 %v4364_v61  ;;  %1076 = vmatprep.subr.mxu0 %v3631_v8  ;;  %v498_v6 = vld [vmem:[%s7034_s1 + $0x70] sm:$0xff]  ;;  %v3686_v8 = vld [vmem:[%s7036_s3 + $0x318] sm:$0xff]  ;;  %v3683_v12 = vld [vmem:[%s7036_s3 + $0x300] sm:$0xff] }
  0x3d   : > { %4136 = vmatpush3.msra.mxu1 %v3564_v9  ;;  %1077 = vmatpush1.msra.mxu0 %v3630_v10  ;;  %v3685_v9 = vld [vmem:[%s7036_s3 + $0x310] sm:$0xff]  ;;  %v495_v10 = vld [vmem:[%s7034_s1 + $0x58] sm:$0xff] }
  0x3e   : > { %4137 = vmatprep.subr.mxu1 %v4364_v61  ;;  %1078 = vmatprep.subr.mxu0 %v3628_v11  ;;  %v3684_v11 = vld [vmem:[%s7036_s3 + $0x308] sm:$0xff]  ;;  %v3678_v21 = vld [vmem:[%s7036_s3 + $0x2d8] sm:$0xff]  ;;  %v3661_v49 = vld [vmem:[%s7036_s3 + $0x250] sm:$0xff] }
  0x3f   : > { %4138 = vmatpush3.msra.mxu1 %v3561_v13  ;;  %1079 = vmatpush1.msra.mxu0 %v3627_v14  ;;  %v492_v13 = vld [vmem:[%s7034_s1 + $0x40] sm:$0xff]  ;;  %v3682_v14 = vld [vmem:[%s7036_s3 + $0x2f8] sm:$0xff]  ;;  %v3602_v50 = vld [vmem:[%s7034_s1 + $0x2b0] sm:$0xff] }
  0x40   : > { %675 = vmatprep.mubr.f32.mxu1 %v4364_v61  ;;  %4139 = vmatprep.subr.mxu1 %v4364_v61  ;;  %v3657_v55 = vld [vmem:[%s7036_s3 + $0x230] sm:$0xff]  ;;  %v3718_v59 = vld [vmem:[%s7036_s3 + $0x418] sm:$0xff] }
  0x41   : > { %879 = vmatprep.mubr.f32.mxu0 %v4364_v61  ;;  %1080 = vmatprep.subr.mxu0 %v3625_v15  ;;  %v3681_v15 = vld [vmem:[%s7036_s3 + $0x2f0] sm:$0xff] }
  0x42   : > { %3577 = vmatmul.mubr.msk.f32.gmra.mxu1 %vm584_vm2, %v4761_v17  ;;  %3590 = vmatmul.mubr.msk.f32.gmra.mxu0 %vm584_vm2, %v4650_v47 }
  0x43   : > { %4140 = vmatpush3.msra.mxu1 %v3558_v18  ;;  %1081 = vmatpush1.msra.mxu0 %v3624_v19  ;;  %v3680_v18 = vld [vmem:[%s7036_s3 + $0x2e8] sm:$0xff]  ;;  %v3679_v19 = vld [vmem:[%s7036_s3 + $0x2e0] sm:$0xff] }
  0x44   : > { %4141 = vmatprep.subr.mxu1 %v4364_v61  ;;  %1082 = vmatprep.subr.mxu0 %v3622_v20  ;;  %v486_v20 = vld [vmem:[%s7034_s1 + $0x10] sm:$0xff] }
  0x45   : > { %4142 = vmatpush3.msra.mxu1 %v3555_v22  ;;  %1083 = vmatpush1.msra.mxu0 %v3621_v23  ;;  %v3641_v22 = vld [vmem:[%s7034_s1 + $0x3e8] sm:$0xf]  ;;  %v3677_v23 = vld [vmem:[%s7036_s3 + $0x2d0] sm:$0xff] }
  0x46   : > { %681 = vmatprep.mubr.f32.mxu1 %v4364_v61  ;;  %4143 = vmatprep.subr.mxu1 %v4364_v61 }
  0x47   : > { %885 = vmatprep.mubr.f32.mxu0 %v4364_v61  ;;  %1084 = vmatprep.subr.mxu0 %v3619_v24  ;;  %v3638_v24 = vld [vmem:[%s7034_s1 + $0x3d0] sm:$0xff] }
  0x48   : > { %3578 = vmatmul.mubr.msk.f32.gmra.mxu1 %vm584_vm2, %v4794_v26  ;;  %3591 = vmatmul.mubr.msk.f32.gmra.mxu0 %vm584_vm2, %v4728_v7 }
  0x49   : > { %4144 = vmatpush3.msra.mxu1 %v3552_v27  ;;  %1085 = vmatpush1.msra.mxu0 %v3618_v28  ;;  %v3675_v27 = vld [vmem:[%s7036_s3 + $0x2c0] sm:$0xff] }
  0x4a   : > { %4145 = vmatprep.subr.mxu1 %v4364_v61  ;;  %1086 = vmatprep.subr.mxu0 %v3616_v29  ;;  %v3632_v28 = vld [vmem:[%s7034_s1 + $0x3a0] sm:$0xff]  ;;  %v3674_v29 = vld [vmem:[%s7036_s3 + $0x2b8] sm:$0xff] }
  0x4b   : > { %4146 = vmatpush3.msra.mxu1 %v3549_v31  ;;  %1087 = vmatpush1.msra.mxu0 %v3615_v32  ;;  %v3626_v31 = vld [vmem:[%s7034_s1 + $0x370] sm:$0xff]  ;;  %v3672_v32 = vld [vmem:[%s7036_s3 + $0x2a8] sm:$0xff] }
  0x4c   : > { %687 = vmatprep.mubr.f32.mxu1 %v4364_v61  ;;  %4147 = vmatprep.subr.mxu1 %v4364_v61 }
  0x4d   : > { %891 = vmatprep.mubr.f32.mxu0 %v4364_v61  ;;  %1088 = vmatprep.subr.mxu0 %v3613_v33  ;;  %v3671_v33 = vld [vmem:[%s7036_s3 + $0x2a0] sm:$0xff] }
  0x4e   : > { %3579 = vmatmul.mubr.msk.f32.gmra.mxu1 %vm584_vm2, %v4827_v34  ;;  %3592 = vmatmul.mubr.msk.f32.gmra.mxu0 %vm584_vm2, %v4756_v16 }
  0x4f   : > { %4148 = vmatpush3.msra.mxu1 %v3546_v35  ;;  %1089 = vmatpush1.msra.mxu0 %v3612_v36  ;;  %v3670_v35 = vld [vmem:[%s7036_s3 + $0x298] sm:$0xff]  ;;  %v3669_v36 = vld [vmem:[%s7036_s3 + $0x290] sm:$0xff] }
  0x50   : > { %4149 = vmatprep.subr.mxu1 %v4364_v61  ;;  %1090 = vmatprep.subr.mxu0 %v3610_v37  ;;  %v3614_v37 = vld [vmem:[%s7034_s1 + $0x310] sm:$0xff] }
  0x51   : > { %4150 = vmatpush3.msra.mxu1 %v3543_v38  ;;  %1091 = vmatpush1.msra.mxu0 %v3609_v39  ;;  %v3668_v38 = vld [vmem:[%s7036_s3 + $0x288] sm:$0xff]  ;;  %v3667_v39 = vld [vmem:[%s7036_s3 + $0x280] sm:$0xff] }
  0x52   : > { %693 = vmatprep.mubr.f32.mxu1 %v4364_v61  ;;  %4151 = vmatprep.subr.mxu1 %v4364_v61 }
  0x53   : > { %897 = vmatprep.mubr.f32.mxu0 %v4364_v61  ;;  %1092 = vmatprep.subr.mxu0 %v3607_v40  ;;  %v3666_v40 = vld [vmem:[%s7036_s3 + $0x278] sm:$0xff] }
  0x54   : > { %3580 = vmatmul.mubr.msk.f32.gmra.mxu1 %vm584_vm2, %v4809_v30  ;;  %3593 = vmatmul.mubr.msk.f32.gmra.mxu0 %vm584_vm2, %v4791_v25 }
  0x55   : > { %4152 = vmatpush3.msra.mxu1 %v3540_v41  ;;  %1093 = vmatpush1.msra.mxu0 %v3606_v42  ;;  %v3665_v41 = vld [vmem:[%s7036_s3 + $0x270] sm:$0xff]  ;;  %v3608_v42 = vld [vmem:[%s7034_s1 + $0x2e0] sm:$0xff] }
  0x56   : > { %4153 = vmatprep.subr.mxu1 %v4364_v61  ;;  %1094 = vmatprep.subr.mxu0 %v3604_v43  ;;  %v3664_v43 = vld [vmem:[%s7036_s3 + $0x268] sm:$0xff] }
  0x57   : > { %4154 = vmatpush3.msra.mxu1 %v3537_v44  ;;  %1095 = vmatpush1.msra.mxu0 %v3603_v45  ;;  %v3663_v44 = vld [vmem:[%s7036_s3 + $0x260] sm:$0xff]  ;;  %v3605_v45 = vld [vmem:[%s7034_s1 + $0x2c8] sm:$0xff] }
  0x58   : > { %4155 = vmatprep.subr.mxu1 %v4364_v61  ;;  %1096 = vmatprep.subr.mxu0 %v3601_v48  ;;  %v3662_v48 = vld [vmem:[%s7036_s3 + $0x258] sm:$0xff] }
  0x59   : > { %4156 = vmatpush3.msra.mxu1 %v3534_v51  ;;  %4157 = vmatprep.mubr.msk.f32.mxu1 %vm4365_vm4, %v4364_v61  ;;  %v3660_v51 = vld [vmem:[%s7036_s3 + $0x248] sm:$0xff] }
  0x5a   : > { %1097 = vmatpush1.msra.mxu0 %v3600_v52  ;;  %1130 = vmatprep.mubr.f32.mxu0 %v4364_v61  ;;  %v3659_v52 = vld [vmem:[%s7036_s3 + $0x240] sm:$0xff] }
  0x5b   : > { %4158 = vmatmul.mubr.msk.f32.vlgmr.msra.gmra.mxu1 %vm584_vm2, %v4687_v60  ;;  %4172 = vmatprep.subr.mxu1 %v4364_v61  ;;  %v516_v60 = vld [vmem:[%s7034_s1 + $0x100] sm:$0xff] }
  0x5c   : > { %3644 = vmatmul.mubr.msk.f32.vlgmr.msra.gmra.mxu0 %vm584_vm2, %v4893_v53  ;;  %4173 = vmatpush3.msk.msra.mxu1 %vm595_vm0, %v525_v54  ;;  %v3658_v54 = vld [vmem:[%s7036_s3 + $0x238] sm:$0xff] }
  0x5d   : > { %4174 = vmatprep.subr.mxu1 %v4364_v61  ;;  %1136 = vmatprep.mubr.f32.mxu0 %v4364_v61 }
  0x5e   : > { %4175 = vmatpush3.msra.mxu1 %v522_v56  ;;  %4160 = vmatprep.mubr.msk.f32.mxu1 %vm4365_vm4, %v4364_v61  ;;  %v3656_v56 = vld [vmem:[%s7036_s3 + $0x228] sm:$0xff] }
  0x5f   : > { %4176 = vmatprep.subr.mxu1 %v4364_v61  ;;  %4161 = vmatmul.mubr.msk.f32.gmra.mxu1 %vm584_vm2, %v4761_v17  ;;  %v489_v17 = vld [vmem:[%s7034_s1 + $0x28] sm:$0xff] }
  0x60   : > { %3645 = vmatmul.mubr.msk.f32.gmra.mxu0 %vm584_vm2, %v4912_v57  ;;  %4177 = vmatpush3.msra.mxu1 %v519_v58  ;;  %v3655_v58 = vld [vmem:[%s7036_s3 + $0x220] sm:$0xff] }
  0x61   : > { %4178 = vmatprep.subr.mxu1 %v4364_v61  ;;  %1142 = vmatprep.mubr.f32.mxu0 %v4364_v61 }
  0x62   : > { %4179 = vmatpush3.msra.mxu1 %v516_v60  ;;  %4163 = vmatprep.mubr.msk.f32.mxu1 %vm4365_vm4, %v4364_v61  ;;  %v3716_v60 = vld [vmem:[%s7036_s3 + $0x408] sm:$0xff] }
  0x63   : > { %4180 = vmatprep.subr.mxu1 %v4364_v61  ;;  %4164 = vmatmul.mubr.msk.f32.gmra.mxu1 %vm584_vm2, %v4794_v26  ;;  %v3676_v26 = vld [vmem:[%s7036_s3 + $0x2c8] sm:$0xff] }
  0x64   : > { %3646 = vmatmul.mubr.msk.f32.gmra.mxu0 %vm584_vm2, %v4931_v62  ;;  %4181 = vmatpush3.msra.mxu1 %v513_v63  ;;  %v3715_v63 = vld [vmem:[%s7036_s3 + $0x400] sm:$0xff] }
  0x65   : > { %4182 = vmatprep.subr.mxu1 %v4364_v61  ;;  %1148 = vmatprep.mubr.f32.mxu0 %v4364_v61 }
  0x66   : > { %4183 = vmatpush3.msra.mxu1 %v510_v1  ;;  %4166 = vmatprep.mubr.msk.f32.mxu1 %vm4365_vm4, %v4364_v61  ;;  %v3714_v1 = vld [vmem:[%s7036_s3 + $0x3f8] sm:$0xff] }
  0x67   : > { %4184 = vmatprep.subr.mxu1 %v4364_v61  ;;  %4167 = vmatmul.mubr.msk.f32.gmra.mxu1 %vm584_vm2, %v4827_v34  ;;  %v3620_v34 = vld [vmem:[%s7034_s1 + $0x340] sm:$0xff] }
  0x68   : > { %3647 = vmatmul.mubr.msk.f32.gmra.mxu0 %vm584_vm2, %v4953_v2  ;;  %4185 = vmatpush3.msra.mxu1 %v507_v3  ;;  %v3712_v3 = vld [vmem:[%s7036_s3 + $0x3e8] sm:$0xff] }
  0x69   : > { %4186 = vmatprep.subr.mxu1 %v4364_v61  ;;  %1154 = vmatprep.mubr.f32.mxu0 %v4364_v61 }
  0x6a   : > { %4187 = vmatpush3.msra.mxu1 %v504_v4  ;;  %4169 = vmatprep.mubr.msk.f32.mxu1 %vm4365_vm4, %v4364_v61  ;;  %v3711_v4 = vld [vmem:[%s7036_s3 + $0x3e0] sm:$0xff] }
  0x6b   : > { %4188 = vmatprep.subr.mxu1 %v4364_v61  ;;  %4170 = vmatmul.mubr.msk.f32.gmra.mxu1 %vm584_vm2, %v4809_v30  ;;  %v3673_v30 = vld [vmem:[%s7036_s3 + $0x2b0] sm:$0xff] }
  0x6c   : > { %3648 = vmatmul.mubr.msk.f32.gmra.mxu0 %vm584_vm2, %v4937_v0  ;;  %4189 = vmatpush3.msra.mxu1 %v501_v5  ;;  %v3710_v5 = vld [vmem:[%s7036_s3 + $0x3d8] sm:$0xff] }
  0x6d   : > { %4190 = vmatprep.subr.mxu1 %v4364_v61  ;;  %4200 = vmatprep.mubr.msk.f32.mxu1 %vm4365_vm4, %v4364_v61 }
  0x6e   : > { %4191 = vmatpush3.msra.mxu1 %v498_v6  ;;  %1509 = vmatprep.subr.mxu0 %v3686_v8  ;;  %v3708_v6 = vld [vmem:[%s7036_s3 + $0x3c8] sm:$0xff]  ;;  %v3707_v8 = vld [vmem:[%s7036_s3 + $0x3c0] sm:$0xff] }
  0x6f   : > { %4192 = vmatprep.subr.mxu1 %v4364_v61  ;;  %1510 = vmatpush1.msra.mxu0 %v3685_v9  ;;  %v3706_v9 = vld [vmem:[%s7036_s3 + $0x3b8] sm:$0xff] }
  0x70   : > { %4193 = vmatpush3.msra.mxu1 %v495_v10  ;;  %1511 = vmatprep.subr.mxu0 %v3684_v11  ;;  %v3704_v10 = vld [vmem:[%s7036_s3 + $0x3a8] sm:$0xff]  ;;  %v3703_v11 = vld [vmem:[%s7036_s3 + $0x3a0] sm:$0xff] }
  0x71   : > { %4194 = vmatprep.subr.mxu1 %v4364_v61  ;;  %1512 = vmatpush1.msra.mxu0 %v3683_v12  ;;  %v3702_v12 = vld [vmem:[%s7036_s3 + $0x398] sm:$0xff] }
  0x72   : > { %4195 = vmatpush3.msra.mxu1 %v492_v13  ;;  %1513 = vmatprep.subr.mxu0 %v3682_v14  ;;  %v3700_v13 = vld [vmem:[%s7036_s3 + $0x388] sm:$0xff]  ;;  %v3699_v14 = vld [vmem:[%s7036_s3 + $0x380] sm:$0xff] }
  0x73   : > { %4196 = vmatprep.subr.mxu1 %v4364_v61  ;;  %1514 = vmatpush1.msra.mxu0 %v3681_v15  ;;  %v3698_v15 = vld [vmem:[%s7036_s3 + $0x378] sm:$0xff] }
  0x74   : > { %4197 = vmatpush3.msra.mxu1 %v489_v17  ;;  %1515 = vmatprep.subr.mxu0 %v3680_v18  ;;  %v3697_v17 = vld [vmem:[%s7036_s3 + $0x370] sm:$0xff]  ;;  %v3696_v18 = vld [vmem:[%s7036_s3 + $0x368] sm:$0xff] }
  0x75   : > { %4198 = vmatprep.subr.mxu1 %v4364_v61  ;;  %1516 = vmatpush1.msra.mxu0 %v3679_v19  ;;  %v3695_v19 = vld [vmem:[%s7036_s3 + $0x360] sm:$0xff] }
  0x76   : > { %4199 = vmatpush3.msra.mxu1 %v486_v20  ;;  %1517 = vmatprep.subr.mxu0 %v3678_v21  ;;  %v3694_v20 = vld [vmem:[%s7036_s3 + $0x358] sm:$0xff]  ;;  %v3693_v21 = vld [vmem:[%s7036_s3 + $0x350] sm:$0xff] }
  0x77   : > { %4201 = vmatmul.mubr.msk.f32.vlgmr.msra.gmra.mxu1 %vm584_vm2, %v4647_v46  ;;  %4215 = vmatprep.subr.mxu1 %v4364_v61  ;;  %v3635_v46 = vld [vmem:[%s7034_s1 + $0x3b8] sm:$0xff] }
  0x78   : > { %4216 = vmatpush3.msk.msra.mxu1 %vm595_vm0, %v3641_v22  ;;  %4203 = vmatprep.mubr.msk.f32.mxu1 %vm4365_vm4, %v4364_v61  ;;  %v3692_v22 = vld [vmem:[%s7036_s3 + $0x348] sm:$0xff] }
  0x79   : > { %4217 = vmatprep.subr.mxu1 %v4364_v61  ;;  %1518 = vmatpush1.msra.mxu0 %v3677_v23  ;;  %v3691_v23 = vld [vmem:[%s7036_s3 + $0x340] sm:$0xff] }
  0x7a   : > { %4218 = vmatpush3.msra.mxu1 %v3638_v24  ;;  %1519 = vmatprep.subr.mxu0 %v3676_v26  ;;  %v3690_v24 = vld [vmem:[%s7036_s3 + $0x338] sm:$0xff]  ;;  %v3689_v26 = vld [vmem:[%s7036_s3 + $0x330] sm:$0xff] }
  0x7b   : > { %4204 = vmatmul.mubr.msk.f32.gmra.mxu1 %vm584_vm2, %v4650_v47  ;;  %4219 = vmatprep.subr.mxu1 %v4364_v61  ;;  %v3629_v47 = vld [vmem:[%s7034_s1 + $0x388] sm:$0xff] }
  0x7c   : > { %4220 = vmatpush3.msra.mxu1 %v3635_v46  ;;  %4206 = vmatprep.mubr.msk.f32.mxu1 %vm4365_vm4, %v4364_v61  ;;  %v3688_v46 = vld [vmem:[%s7036_s3 + $0x328] sm:$0xff] }
  0x7d   : > { %4221 = vmatprep.subr.mxu1 %v4364_v61  ;;  %1520 = vmatpush1.msra.mxu0 %v3675_v27  ;;  %v3687_v27 = vld [vmem:[%s7036_s3 + $0x320] sm:$0xff] }
  0x7e   : > { %4222 = vmatpush3.msra.mxu1 %v3632_v28  ;;  %1521 = vmatprep.subr.mxu0 %v3674_v29  ;;  %v1380_v28 = vld [vmem:[%s7036_s3 + $0x218] sm:$0xff] }
  0x7f   : > { %4207 = vmatmul.mubr.msk.f32.gmra.mxu1 %vm584_vm2, %v4728_v7  ;;  %4223 = vmatprep.subr.mxu1 %v4364_v61  ;;  %v3623_v7 = vld [vmem:[%s7034_s1 + $0x358] sm:$0xff] }
  0x80   : > { %4224 = vmatpush3.msra.mxu1 %v3629_v47  ;;  %4209 = vmatprep.mubr.msk.f32.mxu1 %vm4365_vm4, %v4364_v61  ;;  %v3722_v29 = vld [vmem:[%s7036_s3 + $0x438] sm:$0xff]  ;;  %v3721_v47 = vld [vmem:[%s7036_s3 + $0x430] sm:$0xff] }
  0x81   : > { %4225 = vmatprep.subr.mxu1 %v4364_v61  ;;  %1522 = vmatpush1.msra.mxu0 %v3673_v30  ;;  %v3720_v30 = vld [vmem:[%s7036_s3 + $0x428] sm:$0xff] }
  0x82   : > { %4226 = vmatpush3.msra.mxu1 %v3626_v31  ;;  %1523 = vmatprep.subr.mxu0 %v3672_v32  ;;  %v3719_v31 = vld [vmem:[%s7036_s3 + $0x420] sm:$0xff]  ;;  %v1344_v32 = vld [vmem:[%s7036_s3 + $0xf8] sm:$0xff] }
  0x83   : > { %4210 = vmatmul.mubr.msk.f32.gmra.mxu1 %vm584_vm2, %v4756_v16  ;;  %4227 = vmatprep.subr.mxu1 %v4364_v61  ;;  %v3617_v16 = vld [vmem:[%s7034_s1 + $0x328] sm:$0xff] }
  0x84   : > { %4228 = vmatpush3.msra.mxu1 %v3623_v7  ;;  %4212 = vmatprep.mubr.msk.f32.mxu1 %vm4365_vm4, %v4364_v61 }
  0x85   : > { %4229 = vmatprep.subr.mxu1 %v4364_v61  ;;  %1524 = vmatpush1.msra.mxu0 %v3671_v33 }
  0x86   : > { %4230 = vmatpush3.msra.mxu1 %v3620_v34  ;;  %1525 = vmatprep.subr.mxu0 %v3670_v35 }
  0x87   : > { %4213 = vmatmul.mubr.msk.f32.gmra.mxu1 %vm584_vm2, %v4791_v25  ;;  %4231 = vmatprep.subr.mxu1 %v4364_v61  ;;  %v3611_v25 = vld [vmem:[%s7034_s1 + $0x2f8] sm:$0xff] }
  0x88   : > { %4232 = vmatpush3.msra.mxu1 %v3617_v16  ;;  %4243 = vmatprep.mubr.msk.f32.mxu1 %vm4365_vm4, %v4364_v61 }
  0x89   : > { %4233 = vmatprep.subr.mxu1 %v4364_v61  ;;  %1526 = vmatpush1.msra.mxu0 %v3669_v36 }
  0x8a   : > { %4234 = vmatpush3.msra.mxu1 %v3614_v37  ;;  %1527 = vmatprep.subr.mxu0 %v3668_v38 }
  0x8b   : > { %4235 = vmatprep.subr.mxu1 %v4364_v61  ;;  %1528 = vmatpush1.msra.mxu0 %v3667_v39 }
  0x8c   : > { %4236 = vmatpush3.msra.mxu1 %v3611_v25  ;;  %1529 = vmatprep.subr.mxu0 %v3666_v40 }
  0x8d   : > { %4237 = vmatprep.subr.mxu1 %v4364_v61  ;;  %1530 = vmatpush1.msra.mxu0 %v3665_v41 }
  0x8e   : > { %4238 = vmatpush3.msra.mxu1 %v3608_v42  ;;  %1531 = vmatprep.subr.mxu0 %v3664_v43 }
  0x8f   : > { %4239 = vmatprep.subr.mxu1 %v4364_v61  ;;  %1532 = vmatpush1.msra.mxu0 %v3663_v44 }
  0x90   : > { %4240 = vmatpush3.msra.mxu1 %v3605_v45  ;;  %1533 = vmatprep.subr.mxu0 %v3662_v48  ;;  %v1268_v48 = vlaneseq }
  0x91   : > { %4241 = vmatprep.subr.mxu1 %v4364_v61  ;;  %1534 = vmatpush1.msra.mxu0 %v3661_v49 }
  0x92   : > { %4242 = vmatpush3.msra.mxu1 %v3602_v50  ;;  %1535 = vmatprep.subr.mxu0 %v3660_v51  ;;  %v5308_v51 = vshrl.u32 %v1268_v48, 7 }
  0x93   : > { %4244 = vmatmul.mubr.msk.f32.vlgmr.msra.gmra.mxu1 %vm584_vm2, %v4893_v53  ;;  %1536 = vmatpush1.msra.mxu0 %v3659_v52  ;;  %v3717_v53 = vld [vmem:[%s7036_s3 + $0x410] sm:$0xff] }
  0x94   : > { %4246 = vmatprep.mubr.msk.f32.mxu1 %vm4365_vm4, %v4364_v61  ;;  %1537 = vmatprep.subr.mxu0 %v3658_v54 }
  0x95   : > { %1538 = vmatpush1.msra.mxu0 %v3657_v55  ;;  %1626 = vmatprep.subr.mxu1 %v3722_v29  ;;  %v5311_v55 = vsub.s32 0, %v5308_v51 }
  0x96   : > { %1539 = vmatprep.subr.mxu0 %v3656_v56  ;;  %1627 = vmatpush1.msra.mxu1 %v3721_v47  ;;  %v5314_v56 = vsub.s32 1, %v5308_v51 }
  0x97   : > { %4247 = vmatmul.mubr.msk.f32.gmra.mxu1 %vm584_vm2, %v4912_v57  ;;  %1540 = vmatpush1.msra.mxu0 %v3655_v58  ;;  %v3713_v57 = vld [vmem:[%s7036_s3 + $0x3f0] sm:$0xff] }
  0x98   : > { %4249 = vmatprep.mubr.msk.f32.mxu1 %vm4365_vm4, %v4364_v61  ;;  %1541 = vmatprep.subr.mxu0 %v3718_v59  ;;  %v5321_v59 = vld [vmem:[%s7035_s2] sm:$0x7] }
  0x99   : > { %1542 = vmatpush2.msra.mxu0 %v3717_v53  ;;  %1628 = vmatprep.subr.mxu1 %v3720_v30 }
  0x9a   : > { %1543 = vmatprep.subr.mxu0 %v3716_v60  ;;  %1629 = vmatpush1.msra.mxu1 %v3719_v31 }
  0x9b   : > { %4250 = vmatmul.mubr.msk.f32.gmra.mxu1 %vm584_vm2, %v4931_v62  ;;  %1544 = vmatpush2.msra.mxu0 %v3715_v63  ;;  %v3709_v62 = vld [vmem:[%s7036_s3 + $0x3d0] sm:$0xff] }
  0x9c   : > { %4252 = vmatprep.mubr.msk.f32.mxu1 %vm4365_vm4, %v4364_v61  ;;  %1545 = vmatprep.subr.mxu0 %v3714_v1 }
  0x9d   : > { %1546 = vmatpush2.msra.mxu0 %v3713_v57  ;;  %1695 = vmatprep.subr.mxu1 %v1344_v32 }
  0x9e   : > { %1547 = vmatprep.subr.mxu0 %v3712_v3  ;;  %v5325_v3 = vrot.slane %v5321_v59, %v5311_v55 }
  0x9f   : > { %4253 = vmatmul.mubr.msk.f32.gmra.mxu1 %vm584_vm2, %v4953_v2  ;;  %1548 = vmatpush2.msra.mxu0 %v3711_v4  ;;  %v3705_v2 = vld [vmem:[%s7036_s3 + $0x3b0] sm:$0xff] }
  0xa0   : > { %4255 = vmatprep.mubr.msk.f32.mxu1 %vm4365_vm4, %v4364_v61  ;;  %1549 = vmatprep.subr.mxu0 %v3710_v5  ;;  %v5329_v5 = vrot.slane %v5321_v59, %v5314_v56 }
  0xa1   : > { %1550 = vmatpush2.msra.mxu0 %v3709_v62 }
  0xa2   : > { %1551 = vmatprep.subr.mxu0 %v3708_v6 }
  0xa3   : > { %4256 = vmatmul.mubr.msk.f32.gmra.mxu1 %vm584_vm2, %v4937_v0  ;;  %1552 = vmatpush2.msra.mxu0 %v3707_v8  ;;  %v3701_v0 = vld [vmem:[%s7036_s3 + $0x390] sm:$0xff] }
  0xa4   : > { %1553 = vmatprep.subr.mxu0 %v3706_v9  ;;  %1662 = vmatprep.mubr.f32.mxu1 %v4364_v61 }
  0xa5   : > { %1554 = vmatpush2.msra.mxu0 %v3705_v2 }
  0xa6   : > { %1555 = vmatprep.subr.mxu0 %v3704_v10 }
  0xa7   : > { %1556 = vmatpush2.msra.mxu0 %v3703_v11 }
  0xa8   : > { %1557 = vmatprep.subr.mxu0 %v3702_v12 }
  0xa9   : > { %1558 = vmatpush2.msra.mxu0 %v3701_v0 }
  0xaa   : > { %1559 = vmatprep.subr.mxu0 %v3700_v13 }
  0xab   : > { %1560 = vmatpush2.msra.mxu0 %v3699_v14 }
  0xac   : > { %1561 = vmatprep.subr.mxu0 %v3698_v15 }
  0xad   : > { %1562 = vmatpush2.msra.mxu0 %v3697_v17 }
  0xae   : > { %1563 = vmatprep.subr.mxu0 %v3696_v18 }
  0xaf   : > { %1564 = vmatpush2.msra.mxu0 %v3695_v19 }
  0xb0   : > { %1565 = vmatprep.subr.mxu0 %v3694_v20 }
  0xb1   : > { %1566 = vmatpush2.msra.mxu0 %v3693_v21 }
  0xb2   : > { %1567 = vmatprep.subr.mxu0 %v3692_v22 }
  0xb3   : > { %1568 = vmatpush2.msra.mxu0 %v3691_v23 }
  0xb4   : > { %1569 = vmatprep.subr.mxu0 %v3690_v24 }
  0xb5   : > { %1570 = vmatpush2.msra.mxu0 %v3689_v26 }
  0xb6   : > { %1571 = vmatprep.subr.mxu0 %v3688_v46 }
  0xb7   : > { %1572 = vmatpush2.msra.mxu0 %v3687_v27 }
  0xb8   : > { %1812 = vmatprep.subr.mxu0 %v1380_v28 }
  0xf5   : > { %v671_v7 = vpop.f32.mrf.mxu1 }
  0xf6   : > { %v875_v33 = vpop.f32.mrf.mxu0 }
  0xf7   : > { %v673_v34 = vpop.f32.mrf.mxu1  ;;  %v876_v53 = vadd.f32 %v875_v33, %v671_v7 }
  0xf8   : > { %v877_v35 = vpop.f32.mrf.mxu0 }
  0xf9   : > { %v878_v63 = vadd.f32 %v877_v35, %v673_v34 }
 0x102   : > { %v677_v16 = vpop.f32.mrf.mxu1  ;;  %v881_v36 = vpop.f32.mrf.mxu0 }
 0x103   : > { %v882_v62 = vadd.f32 %v881_v36, %v677_v16 }
 0x104   : > { %v679_v37 = vpop.f32.mrf.mxu1  ;;  %v883_v38 = vpop.f32.mrf.mxu0 }
 0x105   : > { %v884_v11 = vadd.f32 %v883_v38, %v679_v37 }
 0x108   : > { %v683_v39 = vpop.f32.mrf.mxu1  ;;  %v887_v25 = vpop.f32.mrf.mxu0 }
 0x109   : > { %v888_v14 = vadd.f32 %v887_v25, %v683_v39 }
 0x10a   : > { %v685_v40 = vpop.f32.mrf.mxu1  ;;  %v889_v41 = vpop.f32.mrf.mxu0 }
 0x10b   : > { %v890_v20 = vadd.f32 %v889_v41, %v685_v40 }
 0x10e   : > { %v689_v42 = vpop.f32.mrf.mxu1  ;;  %v893_v43 = vpop.f32.mrf.mxu0 }
 0x10f   : > { %v894_v28 = vadd.f32 %v893_v43, %v689_v42 }
 0x110   : > { %v691_v44 = vpop.f32.mrf.mxu1  ;;  %v895_v45 = vpop.f32.mrf.mxu0 }
 0x111   : > { %v896_v33 = vadd.f32 %v895_v45, %v691_v44 }
 0x114   : > { %v695_v49 = vpop.f32.mrf.mxu1  ;;  %v899_v50 = vpop.f32.mrf.mxu0 }
 0x115   : > { %v900_v40 = vadd.f32 %v899_v50, %v695_v49 }
 0x116   : > { %v697_v52 = vpop.f32.mrf.mxu1  ;;  %v901_v54 = vpop.f32.mrf.mxu0 }
 0x117   : > { %v902_v45 = vadd.f32 %v901_v54, %v697_v52  ;;  %v1378_v54 = vld [vmem:[%s7036_s3 + $0x208] sm:$0xff] }
 0x11b   : > { %v5316_v58 = vpop.f32.mrf.mxu1 }
 0x11c   : > { %v1132_v60 = vpop.f32.mrf.mxu0 }
 0x11d   : > { %v4159_v1 = vpop.f32.mrf.mxu1  ;;  %v1251_v57 = vadd.f32 %v1132_v60, %v876_v53 }
 0x11e   : > { %v1134_v4 = vpop.f32.mrf.mxu0  ;;  %v1379_v1 = vld [vmem:[%s7036_s3 + $0x210] sm:$0xff] }
 0x11f   : > { %v1252_v6 = vadd.f32 %v1134_v4, %v878_v63  ;;  %v5331_v8 = vpop.f32.mrf.mxu1  ;;  %v1283_v12 = vadd.f32 %v5325_v3, %v1251_v57 }
 0x120   : > { %v1138_v9 = vpop.f32.mrf.mxu0 }
 0x121   : > { %v1254_v2 = vadd.f32 %v1138_v9, %v882_v62  ;;  %v4162_v10 = vpop.f32.mrf.mxu1  ;;  %v1284_v0 = vadd.f32 %v5329_v5, %v1252_v6  ;;  %v5340_v24 = vmax.f32 %v1283_v12, 0.0  ;;  %v1377_v6 = vld [vmem:[%s7036_s3 + $0x200] sm:$0xff]  ;;  %v3762_v12 = vld [vmem:[%s7036_s3 + $0x538] sm:$0xff] }
 0x122   : > { %v1140_v13 = vpop.f32.mrf.mxu0 }
 0x123   : > { %v1286_v15 = vadd.f32 %v5325_v3, %v1254_v2  ;;  %v5336_v17 = vpop.f32.mrf.mxu1  ;;  %v1255_v18 = vadd.f32 %v1140_v13, %v884_v11  ;;  %v5342_v26 = vmax.f32 %v1284_v0, 0.0  ;;  %v1465_v37 = vrot.slane %v5340_v24, 1 }
 0x124   : > { %v1144_v19 = vpop.f32.mrf.mxu0 }
 0x125   : > { %v5338_v21 = vmax.f32 %v1286_v15, 0.0  ;;  %v1257_v22 = vadd.f32 %v1144_v19, %v888_v14  ;;  %v4165_v23 = vpop.f32.mrf.mxu1  ;;  %v1287_v46 = vadd.f32 %v5329_v5, %v1255_v18  ;;  %v1468_v39 = vrot.slane %v5342_v26, 1 }
 0x126   : > { %v1146_v27 = vpop.f32.mrf.mxu0 }
 0x127   : > { %v1289_v29 = vadd.f32 %v5325_v3, %v1257_v22  ;;  %v1258_v47 = vadd.f32 %v1146_v27, %v890_v20  ;;  %v5346_v30 = vpop.f32.mrf.mxu1  ;;  %v1466_v31 = vrot.slane %v5338_v21, 1  ;;  %v5349_v32 = vmax.f32 %v1287_v46, 0.0 }
 0x128   : > { %v1150_v7 = vpop.f32.mrf.mxu0 }
 0x129   : > { %v5351_v34 = vmax.f32 %v1289_v29, 0.0  ;;  %v1290_v35 = vadd.f32 %v5329_v5, %v1258_v47  ;;  %v1260_v16 = vadd.f32 %v1150_v7, %v894_v28  ;;  %v4168_v36 = vpop.f32.mrf.mxu1  ;;  %v1469_v25 = vrot.slane %v5349_v32, 1 }
 0x12a   : > { %v1152_v38 = vpop.f32.mrf.mxu0  ;;  %v1467_v60 = vsel %vm574_vm1, %v1465_v37, %v1466_v31  ;;  %v1278_v37 = vsub.s32 2, %v5308_v51  ;;  %v3761_v51 = vld [vmem:[%s7036_s3 + $0x530] sm:$0xff] }
 0x12b   : > { %v5357_v41 = vmax.f32 %v1290_v35, 0.0  ;;  %v1292_v42 = vadd.f32 %v5325_v3, %v1260_v16  ;;  %v1261_v43 = vadd.f32 %v1152_v38, %v896_v33  ;;  %v5360_v44 = vpop.f32.mrf.mxu1  ;;  %v1470_v53 = vsel %vm574_vm1, %v1468_v39, %v1469_v25 }
 0x12c   : > { %v1156_v48 = vpop.f32.mrf.mxu0  ;;  %v1474_v63 = vrot.slane %v5351_v34, 1  ;;  %1573 = vmatprep.mubr.f32.mxu0 %v1470_v53  ;;  %v5407_v39 = vrot.slane %v5321_v59, %v1278_v37 }
 0x12d   : > { %v5368_v49 = vmax.f32 %v1292_v42, 0.0  ;;  %v1293_v50 = vadd.f32 %v5329_v5, %v1261_v43  ;;  %v1263_v57 = vadd.f32 %v1156_v48, %v900_v40  ;;  %v1476_v4 = vrot.slane %v5357_v41, 1  ;;  %v4171_v52 = vpop.f32.mrf.mxu1  ;;  %1574 = vmatmul.mubr.f32.vlgmr.msra.gmra.mxu0 %v1467_v60 }
 0x12e   : > { %v1158_v62 = vpop.f32.mrf.mxu0  ;;  %1813 = vmatpush1.msra.mxu0 %v1379_v1  ;;  %v1475_v0 = vsel %vm574_vm1, %v1466_v31, %v1474_v63 }
 0x12f   : > { %v5378_v9 = vmax.f32 %v1293_v50, 0.0  ;;  %v5381_v2 = vadd.f32 %v5325_v3, %v1263_v57  ;;  %v1264_v10 = vadd.f32 %v1158_v62, %v902_v45  ;;  %v1477_v11 = vsel %vm574_vm1, %v1469_v25, %v1476_v4  ;;  %1814 = vmatprep.subr.mxu0 %v1378_v54  ;;  %v3758_v57 = vld [vmem:[%s7036_s3 + $0x518] sm:$0xff] }
 0x130   : > { %1579 = vmatprep.mubr.f32.mxu0 %v1477_v11  ;;  %v1480_v15 = vrot.slane %v5368_v49, 1  ;;  %1815 = vmatpush1.msra.mxu0 %v1377_v6 }
 0x131   : > { %v1310_v13 = vmax.f32 %v5381_v2, 0.0  ;;  %v5390_v14 = vadd.f32 %v5329_v5, %v1264_v10  ;;  %v1482_v3 = vrot.slane %v5378_v9, 1  ;;  %1580 = vmatmul.mubr.f32.gmra.mxu0 %v1475_v0  ;;  %1985 = vmatprep.subr.mxu0 %v3762_v12  ;;  %v3756_v10 = vld [vmem:[%s7036_s3 + $0x508] sm:$0xff]  ;;  %v2509_v2 = vld [vmem:[%s7045_s12 + $0xe0] sm:$0xff] }
 0x132   : > { %v1481_v5 = vsel %vm574_vm1, %v1474_v63, %v1480_v15 }
 0x133   : > { %v1311_v18 = vmax.f32 %v5390_v14, 0.0  ;;  %v1483_v19 = vsel %vm574_vm1, %v1476_v4, %v1482_v3  ;;  %v1486_v20 = vrot.slane %v1310_v13, 1  ;;  %v3795_v14 = vld [vmem:[%s7036_s3 + $0x640] sm:$0xff] }
 0x134   : > { %1585 = vmatprep.mubr.f32.mxu0 %v1483_v19  ;;  %v1343_v19 = vld [vmem:[%s7036_s3 + $0xf0] sm:$0xff] }
 0x135   : > { %v1488_v22 = vrot.slane %v1311_v18, 1  ;;  %1586 = vmatmul.mubr.f32.gmra.mxu0 %v1481_v5  ;;  %v1487_v27 = vsel %vm574_vm1, %v1480_v15, %v1486_v20  ;;  %v3755_v15 = vld [vmem:[%s7036_s3 + $0x500] sm:$0xff]  ;;  %v3754_v20 = vld [vmem:[%s7036_s3 + $0x4f8] sm:$0xff] }
 0x137   : > { %v970_v23 = vpop.f32.mrf.mxu1  ;;  %v1489_v46 = vsel %vm574_vm1, %v1482_v3, %v1488_v22 }
 0x138   : > { %1591 = vmatprep.mubr.f32.mxu0 %v1489_v46  ;;  %v971_v38 = vadd.f32 %v970_v23, %v5316_v58  ;;  %v3760_v58 = vld [vmem:[%s7036_s3 + $0x528] sm:$0xff] }
 0x139   : > { %v4202_v28 = vpop.f32.mrf.mxu1  ;;  %1592 = vmatmul.mubr.f32.gmra.mxu0 %v1487_v27  ;;  %v1342_v46 = vld [vmem:[%s7036_s3 + $0xe8] sm:$0xff] }
 0x13a   : > { %1848 = vmatprep.mubr.f32.mxu0 %v4364_v61 }
 0x13b   : > { %v975_v29 = vpop.f32.mrf.mxu1 }
 0x13c   : > { %v976_v43 = vadd.f32 %v975_v29, %v5331_v8  ;;  %v3759_v8 = vld [vmem:[%s7036_s3 + $0x520] sm:$0xff]  ;;  %v3753_v29 = vld [vmem:[%s7036_s3 + $0x4f0] sm:$0xff] }
 0x13d   : > { %v4205_v47 = vpop.f32.mrf.mxu1 }
 0x13e   : > { %v1341_v47 = vld [vmem:[%s7036_s3 + $0xe0] sm:$0xff] }
 0x13f   : > { %v980_v31 = vpop.f32.mrf.mxu1 }
 0x140   : > { %v981_v59 = vadd.f32 %v980_v31, %v5336_v17  ;;  %v3757_v17 = vld [vmem:[%s7036_s3 + $0x510] sm:$0xff] }
 0x141   : > { %v4208_v7 = vpop.f32.mrf.mxu1 }
 0x143   : > { %v985_v33 = vpop.f32.mrf.mxu1 }
 0x144   : > { %v986_v54 = vadd.f32 %v985_v33, %v5346_v30 }
 0x145   : > { %v4211_v35 = vpop.f32.mrf.mxu1 }
 0x147   : > { %v990_v16 = vpop.f32.mrf.mxu1 }
 0x148   : > { %v991_v31 = vadd.f32 %v990_v16, %v5360_v44  ;;  %v3751_v44 = vld [vmem:[%s7036_s3 + $0x4e0] sm:$0xff] }
 0x149   : > { %v4214_v36 = vpop.f32.mrf.mxu1 }
 0x14a   : > { %v3752_v36 = vld [vmem:[%s7036_s3 + $0x4e8] sm:$0xff] }
 0x153   : > { %v1227_v25 = vpop.f32.mrf.mxu1 }
 0x154   : > { %v1253_v40 = vadd.f32 %v1227_v25, %v971_v38  ;;  %v1340_v38 = vld [vmem:[%s7036_s3 + $0xd8] sm:$0xff] }
 0x155   : > { %v4245_v42 = vpop.f32.mrf.mxu1 }
 0x156   : > { %v1285_v45 = vadd.f32 %v5407_v39, %v1253_v40 }
 0x157   : > { %v1232_v48 = vpop.f32.mrf.mxu1 }
 0x158   : > { %v1300_v53 = vmax.f32 %v1285_v45, 0.0  ;;  %v1256_v60 = vadd.f32 %v1232_v48, %v976_v43  ;;  %v1339_v43 = vld [vmem:[%s7036_s3 + $0xd0] sm:$0xff]  ;;  %v3750_v45 = vld [vmem:[%s7036_s3 + $0x4d8] sm:$0xff] }
 0x159   : > { %v4248_v63 = vpop.f32.mrf.mxu1 }
 0x15a   : > { %v1288_v1 = vadd.f32 %v5407_v39, %v1256_v60  ;;  %3727 = vmatmul.mubr.msk.f32.vlgmr.msra.gmra.mxu0 %vm1500_vm5, %v1300_v53  ;;  %v1471_v62 = vrot.slane %v1300_v53, 1  ;;  %v1948_v11 = vrot.slane %v1300_v53, 2  ;;  %v1338_v63 = vld [vmem:[%s7036_s3 + $0xc8] sm:$0xff] }
 0x15b   : > { %1986 = vmatpush1.msra.mxu0 %v3761_v51  ;;  %v1237_v50 = vpop.f32.mrf.mxu1  ;;  %1854 = vmatprep.mubr.f32.mxu0 %v4364_v61 }
 0x15c   : > { %v1303_v4 = vmax.f32 %v1288_v1, 0.0  ;;  %v1259_v52 = vadd.f32 %v1237_v50, %v981_v59  ;;  %1987 = vmatprep.subr.mxu0 %v3760_v58  ;;  %v1946_v58 = vrot.slane %v5349_v32, 2  ;;  %v3749_v59 = vld [vmem:[%s7036_s3 + $0x4d0] sm:$0xff]  ;;  %v1945_v50 = vrot.slane %v5342_v26, 2 }
 0x15d   : > { %1988 = vmatpush1.msra.mxu0 %v3759_v8  ;;  %v4251_v6 = vpop.f32.mrf.mxu1  ;;  %v3748_v8 = vld [vmem:[%s7036_s3 + $0x4c8] sm:$0xff] }
 0x15e   : > { %v1472_v12 = vrot.slane %v1303_v4, 1  ;;  %v1949_v0 = vrot.slane %v1303_v4, 2  ;;  %v1291_v3 = vadd.f32 %v5407_v39, %v1259_v52  ;;  %1989 = vmatprep.subr.mxu0 %v3758_v57  ;;  %3728 = vmatmul.mubr.msk.f32.gmra.mxu0 %vm1500_vm5, %v1303_v4  ;;  %v1336_v4 = vld [vmem:[%s7036_s3 + $0xb8] sm:$0xff] }
 0x15f   : > { %1990 = vmatpush1.msra.mxu0 %v3757_v17  ;;  %v1242_v30 = vpop.f32.mrf.mxu1  ;;  %1860 = vmatprep.mubr.f32.mxu0 %v4364_v61  ;;  %v1947_v17 = vsel %vm1037_vm3, %v1945_v50, %v1946_v58  ;;  %v3792_v50 = vld [vmem:[%s7036_s3 + $0x628] sm:$0xff] }
 0x160   : > { %v1306_v22 = vmax.f32 %v1291_v3, 0.0  ;;  %v1262_v5 = vadd.f32 %v1242_v30, %v986_v54  ;;  %1991 = vmatprep.subr.mxu0 %v3756_v10  ;;  %v1473_v23 = vsel %vm574_vm1, %v1471_v62, %v1472_v12  ;;  %v5451_v27 = vsel %vm1037_vm3, %v1948_v11, %v1949_v0  ;;  %v3747_v54 = vld [vmem:[%s7036_s3 + $0x4c0] sm:$0xff]  ;;  %v1335_v10 = vld [vmem:[%s7036_s3 + $0xb0] sm:$0xff]  ;;  %v3746_v11 = vld [vmem:[%s7036_s3 + $0x4b8] sm:$0xff] }
 0x161   : > { %1992 = vmatpush1.msra.mxu0 %v3755_v15  ;;  %v4254_v28 = vpop.f32.mrf.mxu1  ;;  %3723 = vmatmul.mubr.msk.f32.vlgmr.msra.gmra.mxu1 %vm1500_vm5, %v1473_v23  ;;  %v1333_v15 = vld [vmem:[%s7036_s3 + $0xa0] sm:$0xff]  ;;  %v3744_v30 = vld [vmem:[%s7036_s3 + $0x4a8] sm:$0xff]  ;;  %v3742_v23 = vld [vmem:[%s7036_s3 + $0x498] sm:$0xff] }
 0x162   : > { %v1478_v7 = vrot.slane %v1306_v22, 1  ;;  %v1955_v33 = vrot.slane %v1306_v22, 2  ;;  %v1294_v35 = vadd.f32 %v5407_v39, %v1262_v5  ;;  %1696 = vmatpush1.msra.mxu1 %v1343_v19  ;;  %1993 = vmatprep.subr.mxu0 %v3754_v20  ;;  %v1332_v19 = vld [vmem:[%s7036_s3 + $0x98] sm:$0xff]  ;;  %v3743_v20 = vld [vmem:[%s7036_s3 + $0x4a0] sm:$0xff]  ;;  %v1331_v5 = vld [vmem:[%s7036_s3 + $0x90] sm:$0xff] }
 0x163   : > { %1697 = vmatprep.subr.mxu1 %v1342_v46  ;;  %3729 = vmatmul.mubr.msk.f32.gmra.mxu0 %vm1500_vm5, %v1306_v22  ;;  %v1247_v37 = vpop.f32.mrf.mxu1  ;;  %v1330_v46 = vld [vmem:[%s7036_s3 + $0x88] sm:$0xff]  ;;  %v3741_v28 = vld [vmem:[%s7036_s3 + $0x490] sm:$0xff] }
 0x164   : > { %v1309_v16 = vmax.f32 %v1294_v35, 0.0  ;;  %1994 = vmatpush1.msra.mxu0 %v3753_v29  ;;  %v1265_v25 = vadd.f32 %v1247_v37, %v991_v31  ;;  %1698 = vmatpush1.msra.mxu1 %v1341_v47  ;;  %v1479_v40 = vsel %vm574_vm1, %v1472_v12, %v1478_v7  ;;  %v5474_v42 = vsel %vm1037_vm3, %v1949_v0, %v1955_v33  ;;  %v1334_v12 = vld [vmem:[%s7036_s3 + $0xa8] sm:$0xff]  ;;  %v3745_v0 = vld [vmem:[%s7036_s3 + $0x4b0] sm:$0xff]  ;;  %v1329_v29 = vld [vmem:[%s7036_s3 + $0x80] sm:$0xff] }
 0x165   : > { %1995 = vmatprep.subr.mxu0 %v3752_v36  ;;  %1668 = vmatprep.mubr.f32.mxu1 %v4364_v61  ;;  %v4257_v48 = vpop.f32.mrf.mxu1  ;;  %v3740_v47 = vld [vmem:[%s7036_s3 + $0x488] sm:$0xff]  ;;  %v1328_v31 = vld [vmem:[%s7036_s3 + $0x78] sm:$0xff]  ;;  %v1325_v37 = vld [vmem:[%s7036_s3 + $0x60] sm:$0xff] }
 0x166   : > { %v1484_v53 = vrot.slane %v1309_v16, 1  ;;  %v1961_v60 = vrot.slane %v1309_v16, 2  ;;  %v1297_v51 = vadd.f32 %v5407_v39, %v1265_v25  ;;  %1699 = vmatprep.subr.mxu1 %v1340_v38  ;;  %1996 = vmatpush1.msra.mxu0 %v3751_v44  ;;  %v1337_v39 = vld [vmem:[%s7036_s3 + $0xc0] sm:$0xff]  ;;  %v3738_v35 = vld [vmem:[%s7036_s3 + $0x478] sm:$0xff]  ;;  %v1326_v36 = vld [vmem:[%s7036_s3 + $0x68] sm:$0xff] }
 0x167   : > { %3724 = vmatmul.mubr.msk.f32.gmra.mxu1 %vm1500_vm5, %v1479_v40  ;;  %1866 = vmatprep.mubr.f32.mxu0 %v4364_v61  ;;  %v3736_v38 = vld [vmem:[%s7036_s3 + $0x468] sm:$0xff]  ;;  %v1324_v44 = vld [vmem:[%s7036_s3 + $0x58] sm:$0xff]  ;;  %v1323_v25 = vld [vmem:[%s7036_s3 + $0x50] sm:$0xff] }
 0x168   : > { %v1312_v1 = vmax.f32 %v1297_v51, 0.0  ;;  %1700 = vmatpush1.msra.mxu1 %v1339_v43  ;;  %1997 = vmatprep.subr.mxu0 %v3750_v45  ;;  %v5501_v57 = vsel %vm1037_vm3, %v1955_v33, %v1961_v60  ;;  %v1485_v62 = vsel %vm574_vm1, %v1478_v7, %v1484_v53  ;;  %v3739_v7 = vld [vmem:[%s7036_s3 + $0x480] sm:$0xff]  ;;  %v1327_v33 = vld [vmem:[%s7036_s3 + $0x70] sm:$0xff]  ;;  %v3734_v40 = vld [vmem:[%s7036_s3 + $0x458] sm:$0xff] }
 0x169   : > { %1701 = vmatprep.subr.mxu1 %v1338_v63  ;;  %3730 = vmatmul.mubr.msk.f32.gmra.mxu0 %vm1500_vm5, %v1309_v16  ;;  %v3735_v16 = vld [vmem:[%s7036_s3 + $0x460] sm:$0xff]  ;;  %v1322_v43 = vld [vmem:[%s7036_s3 + $0x48] sm:$0xff]  ;;  %v3733_v45 = vld [vmem:[%s7036_s3 + $0x450] sm:$0xff] }
 0x16a   : > { %v1967_v52 = vrot.slane %v1312_v1, 2  ;;  %1998 = vmatpush1.msra.mxu0 %v3749_v59  ;;  %1702 = vmatpush1.msra.mxu1 %v1337_v39  ;;  %v1490_v6 = vrot.slane %v1312_v1, 1  ;;  %v1321_v48 = vld [vmem:[%s7036_s3 + $0x40] sm:$0xff]  ;;  %v1319_v63 = vld [vmem:[%s7036_s3 + $0x30] sm:$0xff]  ;;  %v3794_v59 = vld [vmem:[%s7036_s3 + $0x638] sm:$0xff] }
 0x16b   : > { %1999 = vmatprep.subr.mxu0 %v3748_v8  ;;  %2049 = vmatprep.mubr.f32.mxu0 %v1947_v17  ;;  %v3731_v51 = vld [vmem:[%s7036_s3 + $0x440] sm:$0xff]  ;;  %v1318_v39 = vld [vmem:[%s7036_s3 + $0x28] sm:$0xff]  ;;  %v3793_v1 = vld [vmem:[%s7036_s3 + $0x630] sm:$0xff] }
 0x16c   : > { %1674 = vmatprep.mubr.f32.mxu1 %v4364_v61  ;;  %1703 = vmatprep.subr.mxu1 %v1336_v4  ;;  %v5528_v3 = vsel %vm1037_vm3, %v1961_v60, %v1967_v52  ;;  %v1491_v22 = vsel %vm574_vm1, %v1484_v53, %v1490_v6  ;;  %v3732_v53 = vld [vmem:[%s7036_s3 + $0x448] sm:$0xff]  ;;  %v1320_v60 = vld [vmem:[%s7036_s3 + $0x38] sm:$0xff]  ;;  %v1317_v8 = vld [vmem:[%s7036_s3 + $0x20] sm:$0xff] }
 0x16d   : > { %2000 = vmatpush1.msra.mxu0 %v3747_v54  ;;  %3725 = vmatmul.mubr.msk.f32.gmra.mxu1 %vm1500_vm5, %v1485_v62  ;;  %v1316_v4 = vld [vmem:[%s7036_s3 + $0x18] sm:$0xff]  ;;  %v3791_v52 = vld [vmem:[%s7036_s3 + $0x620] sm:$0xff]  ;;  %v1315_v17 = vld [vmem:[%s7036_s3 + $0x10] sm:$0xff] }
 0x16e   : > { %1704 = vmatpush1.msra.mxu1 %v1335_v10  ;;  %2001 = vmatprep.subr.mxu0 %v3746_v11  ;;  %v3790_v54 = vld [vmem:[%s7036_s3 + $0x618] sm:$0xff]  ;;  %v1314_v62 = vld [vmem:[%s7036_s3 + $0x8] sm:$0xff]  ;;  %v3789_v6 = vld [vmem:[%s7036_s3 + $0x610] sm:$0xff] }
 0x16f   : > { %1705 = vmatprep.subr.mxu1 %v1334_v12  ;;  %2002 = vmatpush1.msra.mxu0 %v3745_v0  ;;  %v1313_v10 = vld [vmem:[%s7036_s3] sm:$0xff]  ;;  %v3788_v11 = vld [vmem:[%s7036_s3 + $0x608] sm:$0xff]  ;;  %v1376_v12 = vld [vmem:[%s7036_s3 + $0x1f8] sm:$0xff] }
 0x170   : > { %1706 = vmatpush1.msra.mxu1 %v1333_v15  ;;  %2003 = vmatprep.subr.mxu0 %v3744_v30  ;;  %v3787_v0 = vld [vmem:[%s7036_s3 + $0x600] sm:$0xff]  ;;  %v1375_v15 = vld [vmem:[%s7036_s3 + $0x1f0] sm:$0xff]  ;;  %v3786_v30 = vld [vmem:[%s7036_s3 + $0x5f8] sm:$0xff] }
 0x171   : > { %1680 = vmatprep.mubr.f32.mxu1 %v4364_v61  ;;  %1707 = vmatprep.subr.mxu1 %v1332_v19  ;;  %v1374_v19 = vld [vmem:[%s7036_s3 + $0x1e8] sm:$0xff] }
 0x172   : > { %2004 = vmatpush1.msra.mxu0 %v3743_v20  ;;  %3726 = vmatmul.mubr.msk.f32.gmra.mxu1 %vm1500_vm5, %v1491_v22  ;;  %v3785_v20 = vld [vmem:[%s7036_s3 + $0x5f0] sm:$0xff]  ;;  %v1373_v22 = vld [vmem:[%s7036_s3 + $0x1e0] sm:$0xff] }
 0x173   : > { %1708 = vmatpush1.msra.mxu1 %v1331_v5  ;;  %2005 = vmatprep.subr.mxu0 %v3742_v23  ;;  %v3784_v5 = vld [vmem:[%s7036_s3 + $0x5e8] sm:$0xff]  ;;  %v1372_v23 = vld [vmem:[%s7036_s3 + $0x1d8] sm:$0xff] }
 0x174   : > { %1709 = vmatprep.subr.mxu1 %v1330_v46  ;;  %1759 = vmatprep.mubr.f32.mxu1 %v5342_v26  ;;  %v3737_v26 = vld [vmem:[%s7036_s3 + $0x470] sm:$0xff]  ;;  %v3783_v46 = vld [vmem:[%s7036_s3 + $0x5e0] sm:$0xff] }
 0x175   : > { %2006 = vmatpush1.msra.mxu0 %v3741_v28  ;;  %1710 = vmatpush1.msra.mxu1 %v1329_v29  ;;  %v1371_v28 = vld [vmem:[%s7036_s3 + $0x1d0] sm:$0xff]  ;;  %v3782_v29 = vld [vmem:[%s7036_s3 + $0x5d8] sm:$0xff] }
 0x176   : > { %2007 = vmatprep.subr.mxu0 %v3740_v47  ;;  %1711 = vmatprep.subr.mxu1 %v1328_v31  ;;  %v1370_v47 = vld [vmem:[%s7036_s3 + $0x1c8] sm:$0xff]  ;;  %v3781_v31 = vld [vmem:[%s7036_s3 + $0x5d0] sm:$0xff] }
 0x177   : > { %2008 = vmatpush1.msra.mxu0 %v3739_v7  ;;  %1712 = vmatpush1.msra.mxu1 %v1327_v33  ;;  %v1369_v7 = vld [vmem:[%s7036_s3 + $0x1c0] sm:$0xff]  ;;  %v3780_v33 = vld [vmem:[%s7036_s3 + $0x5c8] sm:$0xff] }
 0x178   : > { %2009 = vmatprep.subr.mxu0 %v3738_v35  ;;  %1713 = vmatprep.subr.mxu1 %v1326_v36  ;;  %v1368_v35 = vld [vmem:[%s7036_s3 + $0x1b8] sm:$0xff]  ;;  %v3779_v36 = vld [vmem:[%s7036_s3 + $0x5c0] sm:$0xff] }
 0x179   : > { %2010 = vmatpush1.msra.mxu0 %v3737_v26  ;;  %1714 = vmatpush1.msra.mxu1 %v1325_v37  ;;  %v1367_v26 = vld [vmem:[%s7036_s3 + $0x1b0] sm:$0xff]  ;;  %v3778_v37 = vld [vmem:[%s7036_s3 + $0x5b8] sm:$0xff] }
 0x17a   : > { %2011 = vmatprep.subr.mxu0 %v3736_v38  ;;  %1715 = vmatprep.subr.mxu1 %v1324_v44  ;;  %v1366_v38 = vld [vmem:[%s7036_s3 + $0x1a8] sm:$0xff]  ;;  %v3777_v44 = vld [vmem:[%s7036_s3 + $0x5b0] sm:$0xff] }
 0x17b   : > { %2012 = vmatpush1.msra.mxu0 %v3735_v16  ;;  %1716 = vmatpush1.msra.mxu1 %v1323_v25  ;;  %v1365_v16 = vld [vmem:[%s7036_s3 + $0x1a0] sm:$0xff]  ;;  %v3776_v25 = vld [vmem:[%s7036_s3 + $0x5a8] sm:$0xff] }
 0x17c   : > { %2013 = vmatprep.subr.mxu0 %v3734_v40  ;;  %1717 = vmatprep.subr.mxu1 %v1322_v43  ;;  %v1364_v40 = vld [vmem:[%s7036_s3 + $0x198] sm:$0xff]  ;;  %v3775_v43 = vld [vmem:[%s7036_s3 + $0x5a0] sm:$0xff] }
 0x17d   : > { %2014 = vmatpush1.msra.mxu0 %v3733_v45  ;;  %1718 = vmatpush1.msra.mxu1 %v1321_v48  ;;  %v1363_v45 = vld [vmem:[%s7036_s3 + $0x190] sm:$0xff]  ;;  %v3774_v48 = vld [vmem:[%s7036_s3 + $0x598] sm:$0xff] }
 0x17e   : > { %2015 = vmatprep.subr.mxu0 %v3732_v53  ;;  %1719 = vmatprep.subr.mxu1 %v1320_v60  ;;  %v1362_v53 = vld [vmem:[%s7036_s3 + $0x188] sm:$0xff]  ;;  %v3773_v60 = vld [vmem:[%s7036_s3 + $0x590] sm:$0xff] }
 0x17f   : > { %2016 = vmatpush1.msra.mxu0 %v3731_v51  ;;  %1720 = vmatpush1.msra.mxu1 %v1319_v63  ;;  %v1361_v51 = vld [vmem:[%s7036_s3 + $0x180] sm:$0xff]  ;;  %v3772_v63 = vld [vmem:[%s7036_s3 + $0x588] sm:$0xff] }
 0x180   : > { %2017 = vmatprep.subr.mxu0 %v3794_v59  ;;  %1721 = vmatprep.subr.mxu1 %v1318_v39  ;;  %v1360_v59 = vld [vmem:[%s7036_s3 + $0x178] sm:$0xff]  ;;  %v3771_v39 = vld [vmem:[%s7036_s3 + $0x580] sm:$0xff] }
 0x181   : > { %2018 = vmatpush2.msra.mxu0 %v3793_v1  ;;  %1722 = vmatpush1.msra.mxu1 %v1317_v8  ;;  %v1359_v1 = vld [vmem:[%s7036_s3 + $0x170] sm:$0xff]  ;;  %v3770_v8 = vld [vmem:[%s7036_s3 + $0x578] sm:$0xff] }
 0x182   : > { %2019 = vmatprep.subr.mxu0 %v3792_v50  ;;  %1723 = vmatprep.subr.mxu1 %v1316_v4  ;;  %v1358_v50 = vld [vmem:[%s7036_s3 + $0x168] sm:$0xff]  ;;  %v3769_v4 = vld [vmem:[%s7036_s3 + $0x570] sm:$0xff] }
 0x183   : > { %2020 = vmatpush2.msra.mxu0 %v3791_v52  ;;  %1724 = vmatpush1.msra.mxu1 %v1315_v17  ;;  %v1357_v52 = vld [vmem:[%s7036_s3 + $0x160] sm:$0xff]  ;;  %v3768_v17 = vld [vmem:[%s7036_s3 + $0x568] sm:$0xff] }
 0x184   : > { %2021 = vmatprep.subr.mxu0 %v3790_v54  ;;  %1725 = vmatprep.subr.mxu1 %v1314_v62  ;;  %v1356_v54 = vld [vmem:[%s7036_s3 + $0x158] sm:$0xff]  ;;  %v3767_v62 = vld [vmem:[%s7036_s3 + $0x560] sm:$0xff] }
 0x185   : > { %2022 = vmatpush2.msra.mxu0 %v3789_v6  ;;  %1726 = vmatpush1.msra.mxu1 %v1313_v10  ;;  %v1355_v6 = vld [vmem:[%s7036_s3 + $0x150] sm:$0xff]  ;;  %v3766_v10 = vld [vmem:[%s7036_s3 + $0x558] sm:$0xff] }
 0x186   : > { %2023 = vmatprep.subr.mxu0 %v3788_v11  ;;  %1727 = vmatprep.subr.mxu1 %v1376_v12  ;;  %v1354_v11 = vld [vmem:[%s7036_s3 + $0x148] sm:$0xff]  ;;  %v3765_v12 = vld [vmem:[%s7036_s3 + $0x550] sm:$0xff] }
 0x187   : > { %2024 = vmatpush2.msra.mxu0 %v3787_v0  ;;  %1728 = vmatpush2.msra.mxu1 %v1375_v15  ;;  %v1353_v0 = vld [vmem:[%s7036_s3 + $0x140] sm:$0xff]  ;;  %v1943_v15 = vrot.slane %v5338_v21, 2 }
 0x188   : > { %2025 = vmatprep.subr.mxu0 %v3786_v30  ;;  %1729 = vmatprep.subr.mxu1 %v1374_v19  ;;  %v3764_v30 = vld [vmem:[%s7036_s3 + $0x548] sm:$0xff]  ;;  %v1352_v19 = vld [vmem:[%s7036_s3 + $0x138] sm:$0xff] }
 0x189   : > { %2026 = vmatpush2.msra.mxu0 %v3785_v20  ;;  %1730 = vmatpush2.msra.mxu1 %v1373_v22  ;;  %v3763_v20 = vld [vmem:[%s7036_s3 + $0x540] sm:$0xff]  ;;  %v1351_v22 = vld [vmem:[%s7036_s3 + $0x130] sm:$0xff] }
 0x18a   : > { %2027 = vmatprep.subr.mxu0 %v3784_v5  ;;  %1731 = vmatprep.subr.mxu1 %v1372_v23  ;;  %v1953_v5 = vrot.slane %v5357_v41, 2  ;;  %v1942_v23 = vrot.slane %v5340_v24, 2 }
 0x18b   : > { %2028 = vmatpush2.msra.mxu0 %v3783_v46  ;;  %1732 = vmatpush2.msra.mxu1 %v1371_v28  ;;  %v1350_v46 = vld [vmem:[%s7036_s3 + $0x128] sm:$0xff]  ;;  %v1349_v28 = vld [vmem:[%s7036_s3 + $0x120] sm:$0xff] }
 0x18c   : > { %2029 = vmatprep.subr.mxu0 %v3782_v29  ;;  %1733 = vmatprep.subr.mxu1 %v1370_v47  ;;  %v1944_v29 = vsel %vm1037_vm3, %v1942_v23, %v1943_v15  ;;  %v1348_v47 = vld [vmem:[%s7036_s3 + $0x118] sm:$0xff] }
 0x18d   : > { %2030 = vmatpush2.msra.mxu0 %v3781_v31  ;;  %1734 = vmatpush2.msra.mxu1 %v1369_v7  ;;  %v1951_v31 = vrot.slane %v5351_v34, 2  ;;  %v1954_v7 = vsel %vm1037_vm3, %v1946_v58, %v1953_v5 }
 0x18e   : > { %2031 = vmatprep.subr.mxu0 %v3780_v33  ;;  %1735 = vmatprep.subr.mxu1 %v1368_v35  ;;  %v1347_v33 = vld [vmem:[%s7036_s3 + $0x110] sm:$0xff]  ;;  %v1959_v35 = vrot.slane %v5378_v9, 2 }
 0x18f   : > { %2032 = vmatpush2.msra.mxu0 %v3779_v36  ;;  %1736 = vmatpush2.msra.mxu1 %v1367_v26  ;;  %v1346_v36 = vld [vmem:[%s7036_s3 + $0x108] sm:$0xff]  ;;  %v1345_v26 = vld [vmem:[%s7036_s3 + $0x100] sm:$0xff]  ;;  %v1952_v58 = vsel %vm1037_vm3, %v1943_v15, %v1951_v31 }
 0x190   : > { %2033 = vmatprep.subr.mxu0 %v3778_v37  ;;  %1737 = vmatprep.subr.mxu1 %v1366_v38  ;;  %v1957_v37 = vrot.slane %v5368_v49, 2  ;;  %v3798_v38 = vld [vmem:[%s7036_s3 + $0x658] sm:$0xff] }
 0x191   : > { %2034 = vmatpush2.msra.mxu0 %v3777_v44  ;;  %1738 = vmatpush2.msra.mxu1 %v1365_v16  ;;  %v1965_v44 = vrot.slane %v1311_v18, 2  ;;  %v1960_v16 = vsel %vm1037_vm3, %v1953_v5, %v1959_v35  ;;  %v1963_v18 = vrot.slane %v1310_v13, 2  ;;  %v2493_v13 = vld [vmem:[%s7045_s12 + $0x60] sm:$0xff] }
 0x192   : > { %2035 = vmatprep.subr.mxu0 %v3776_v25  ;;  %1739 = vmatprep.subr.mxu1 %v1364_v40  ;;  %v3797_v25 = vld [vmem:[%s7036_s3 + $0x650] sm:$0xff]  ;;  %v3796_v40 = vld [vmem:[%s7036_s3 + $0x648] sm:$0xff] }
 0x193   : > { %2036 = vmatpush2.msra.mxu0 %v3775_v43  ;;  %1740 = vmatpush2.msra.mxu1 %v1363_v45  ;;  %v1958_v43 = vsel %vm1037_vm3, %v1951_v31, %v1957_v37  ;;  %v1966_v45 = vsel %vm1037_vm3, %v1959_v35, %v1965_v44 }
 0x194   : > { %2037 = vmatprep.subr.mxu0 %v3774_v48  ;;  %1741 = vmatprep.subr.mxu1 %v1362_v53  ;;  %v2506_v48 = vld [vmem:[%s7045_s12 + $0xc8] sm:$0xff] }
 0x195   : > { %2038 = vmatpush2.msra.mxu0 %v3773_v60  ;;  %1742 = vmatpush2.msra.mxu1 %v1361_v51  ;;  %v2490_v53 = vld [vmem:[%s7045_s12 + $0x48] sm:$0xff]  ;;  %v2505_v60 = vld [vmem:[%s7045_s12 + $0xc0] sm:$0xff] }
 0x196   : > { %2039 = vmatprep.subr.mxu0 %v3772_v63  ;;  %1743 = vmatprep.subr.mxu1 %v1360_v59  ;;  %v2489_v63 = vld [vmem:[%s7045_s12 + $0x40] sm:$0xff]  ;;  %v2504_v59 = vld [vmem:[%s7045_s12 + $0xb8] sm:$0xff] }
 0x197   : > { %2040 = vmatpush2.msra.mxu0 %v3771_v39  ;;  %1744 = vmatpush2.msra.mxu1 %v1359_v1  ;;  %v2488_v39 = vld [vmem:[%s7045_s12 + $0x38] sm:$0xff] }
 0x198   : > { %2041 = vmatprep.subr.mxu0 %v3770_v8  ;;  %1745 = vmatprep.subr.mxu1 %v1358_v50 }
 0x199   : > { %2042 = vmatpush2.msra.mxu0 %v3769_v4  ;;  %1746 = vmatpush2.msra.mxu1 %v1357_v52 }
 0x19a   : > { %2043 = vmatprep.subr.mxu0 %v3768_v17  ;;  %1747 = vmatprep.subr.mxu1 %v1356_v54 }
 0x19b   : > { %2044 = vmatpush2.msra.mxu0 %v3767_v62  ;;  %1748 = vmatpush2.msra.mxu1 %v1355_v6 }
 0x19c   : > { %2045 = vmatprep.subr.mxu0 %v3766_v10  ;;  %1749 = vmatprep.subr.mxu1 %v1354_v11 }
 0x19d   : > { %2046 = vmatpush2.msra.mxu0 %v3765_v12  ;;  %1750 = vmatpush2.msra.mxu1 %v1353_v0 }
 0x19e   : > { %2047 = vmatprep.subr.mxu0 %v3764_v30  ;;  %1751 = vmatprep.subr.mxu1 %v1352_v19 }
 0x19f   : > { %2048 = vmatpush2.msra.mxu0 %v3763_v20  ;;  %1752 = vmatpush2.msra.mxu1 %v1351_v22 }
 0x1a0   : > { %2050 = vmatmul.mubr.f32.vlgmr.msra.gmra.mxu0 %v1944_v29  ;;  %1753 = vmatprep.subr.mxu1 %v1350_v46 }
 0x1a1   : > { %2055 = vmatprep.mubr.f32.mxu0 %v1954_v7  ;;  %1754 = vmatpush2.msra.mxu1 %v1349_v28 }
 0x1a2   : > { %1755 = vmatprep.subr.mxu1 %v1348_v47 }
 0x1a3   : > { %1756 = vmatpush2.msra.mxu1 %v1347_v33 }
 0x1a4   : > { %2056 = vmatmul.mubr.f32.gmra.mxu0 %v1952_v58  ;;  %1757 = vmatprep.subr.mxu1 %v1346_v36 }
 0x1a5   : > { %2061 = vmatprep.mubr.f32.mxu0 %v1960_v16  ;;  %1758 = vmatpush2.msra.mxu1 %v1345_v26 }
 0x1a6   : > { %1760 = vmatmul.mubr.f32.vlgmr.msra.gmra.mxu1 %v5340_v24  ;;  %2102 = vmatprep.subr.mxu1 %v3798_v38  ;;  %v1964_v24 = vsel %vm1037_vm3, %v1957_v37, %v1963_v18 }
 0x1a7   : > { %1765 = vmatprep.mubr.f32.mxu1 %v5349_v32  ;;  %2103 = vmatpush1.msra.mxu1 %v3797_v25  ;;  %v2496_v32 = vld [vmem:[%s7045_s12 + $0x78] sm:$0xff] }
 0x1a8   : > { %2062 = vmatmul.mubr.f32.gmra.mxu0 %v1958_v43  ;;  %2104 = vmatprep.subr.mxu1 %v3796_v40  ;;  %v2171_v40 = vld [vmem:[%s7037_s4] sm:$0x3] }
 0x1a9   : > { %2067 = vmatprep.mubr.f32.mxu0 %v1966_v45  ;;  %2105 = vmatpush1.msra.mxu1 %v3795_v14 }
 0x1aa   : > { %1766 = vmatmul.mubr.f32.gmra.mxu1 %v5338_v21  ;;  %v2512_v21 = vld [vmem:[%s7045_s12 + $0xf8] sm:$0xff] }
 0x1ab   : > { %1771 = vmatprep.mubr.f32.mxu1 %v5357_v41  ;;  %4091 = vmatprep.subr.mxu0 %v2512_v21  ;;  %v2495_v41 = vld [vmem:[%s7045_s12 + $0x70] sm:$0xff]  ;;  %v2176_v21 = vrot.slane %v2171_v40, %v5311_v55 }
 0x1ac   : > { %2068 = vmatmul.mubr.f32.gmra.mxu0 %v1964_v24 }
 0x1ad   : > { %4092 = vmatpush3.msra.mxu0 %v2496_v32 }
 0x1ae   : > { %1772 = vmatmul.mubr.f32.gmra.mxu1 %v5351_v34  ;;  %v2511_v34 = vld [vmem:[%s7045_s12 + $0xf0] sm:$0xff] }
 0x1af   : > { %1777 = vmatprep.mubr.f32.mxu1 %v5378_v9  ;;  %4093 = vmatprep.subr.mxu0 %v2511_v34  ;;  %v2494_v9 = vld [vmem:[%s7045_s12 + $0x68] sm:$0xff] }
 0x1b0   : > { %4094 = vmatpush3.msra.mxu0 %v2495_v41 }
 0x1b2   : > { %1778 = vmatmul.mubr.f32.gmra.mxu1 %v5368_v49  ;;  %v2510_v49 = vld [vmem:[%s7045_s12 + $0xe8] sm:$0xff] }
 0x1b3   : > { %2138 = vmatprep.mubr.f32.mxu1 %v4364_v61  ;;  %4095 = vmatprep.subr.mxu0 %v2510_v49 }
 0x1b4   : > { %4096 = vmatpush3.msra.mxu0 %v2494_v9 }
 0x1b5   : > { %4097 = vmatprep.subr.mxu0 %v2509_v2 }
 0x1b6   : > { %3799 = vmatmul.mubr.msk.f32.vlgmr.msra.gmra.mxu1 %vm1500_vm5, %v5451_v27  ;;  %v2508_v27 = vld [vmem:[%s7045_s12 + $0xd8] sm:$0xff]  ;;  %4098 = vmatpush3.msra.mxu0 %v2493_v13 }
 0x1b7   : > { %2144 = vmatprep.mubr.f32.mxu1 %v4364_v61  ;;  %4099 = vmatprep.subr.mxu0 %v2508_v27  ;;  %v2180_v27 = vrot.slane %v2171_v40, %v5314_v56 }
 0x1ba   : > { %3800 = vmatmul.mubr.msk.f32.gmra.mxu1 %vm1500_vm5, %v5474_v42  ;;  %v2492_v42 = vld [vmem:[%s7045_s12 + $0x58] sm:$0xff] }
 0x1bb   : > { %2150 = vmatprep.mubr.f32.mxu1 %v4364_v61  ;;  %4100 = vmatpush3.msra.mxu0 %v2492_v42 }
 0x1be   : > { %3801 = vmatmul.mubr.msk.f32.gmra.mxu1 %vm1500_vm5, %v5501_v57  ;;  %v2507_v57 = vld [vmem:[%s7045_s12 + $0xd0] sm:$0xff] }
 0x1bf   : > { %2156 = vmatprep.mubr.f32.mxu1 %v4364_v61  ;;  %4101 = vmatprep.subr.mxu0 %v2507_v57 }
 0x1c2   : > { %3802 = vmatmul.mubr.msk.f32.gmra.mxu1 %vm1500_vm5, %v5528_v3  ;;  %v2491_v3 = vld [vmem:[%s7045_s12 + $0x50] sm:$0xff] }
 0x1c3   : > { %2272 = vmatprep.mubr.f32.mxu1 %v4364_v61  ;;  %4102 = vmatpush3.msra.mxu0 %v2491_v3 }
 0x1c4   : > { %4103 = vmatprep.subr.mxu0 %v2506_v48 }
 0x1c5   : > { %4104 = vmatpush3.msra.mxu0 %v2490_v53 }
 0x1c6   : > { %4105 = vmatprep.subr.mxu0 %v2505_v60 }
 0x1c7   : > { %4106 = vmatpush3.msra.mxu0 %v2489_v63 }
 0x1c8   : > { %4107 = vmatprep.subr.mxu0 %v2504_v59 }
 0x1c9   : > { %4108 = vmatpush3.msra.mxu0 %v2488_v39 }
 0x1ed   : > { %v1575_v51 = vpop.f32.mrf.mxu0 }
 0x1ef   : > { %v1577_v1 = vpop.f32.mrf.mxu0 }
 0x1f1   : > { %v1581_v8 = vpop.f32.mrf.mxu0 }
 0x1f3   : > { %v1583_v50 = vpop.f32.mrf.mxu0 }
 0x1f5   : > { %v1587_v4 = vpop.f32.mrf.mxu0 }
 0x1f7   : > { %v1589_v52 = vpop.f32.mrf.mxu0 }
 0x1f9   : > { %v1593_v17 = vpop.f32.mrf.mxu0 }
 0x1fb   : > { %v5937_v54 = vpop.f32.mrf.mxu0 }
 0x21a   : > { %v1850_v6 = vpop.f32.mrf.mxu0 }
 0x21c   : > { %v1852_v11 = vpop.f32.mrf.mxu0 }
 0x21e   : > { %v1856_v0 = vpop.f32.mrf.mxu0 }
 0x220   : > { %v1858_v30 = vpop.f32.mrf.mxu0 }
 0x221   : > { %v1664_v62 = vpop.f32.mrf.mxu1 }
 0x222   : > { %v1665_v38 = vadd.f32 %v1664_v62, %v1575_v51 }
 0x223   : > { %v1666_v10 = vpop.f32.mrf.mxu1  ;;  %v1862_v20 = vpop.f32.mrf.mxu0 }
 0x224   : > { %v1667_v16 = vadd.f32 %v1666_v10, %v1577_v1 }
 0x225   : > { %v5939_v5 = vpop.f32.mrf.mxu0 }
 0x227   : > { %v1670_v12 = vpop.f32.mrf.mxu1 }
 0x228   : > { %v1671_v43 = vadd.f32 %v1670_v12, %v1581_v8 }
 0x229   : > { %v1672_v15 = vpop.f32.mrf.mxu1  ;;  %v5941_v46 = vpop.f32.mrf.mxu0 }
 0x22a   : > { %v1673_v32 = vadd.f32 %v1672_v15, %v1583_v50 }
 0x22b   : > { %v5943_v29 = vpop.f32.mrf.mxu0 }
 0x22d   : > { %v1676_v19 = vpop.f32.mrf.mxu1 }
 0x22e   : > { %v1677_v9 = vadd.f32 %v1676_v19, %v1587_v4 }
 0x22f   : > { %v1678_v22 = vpop.f32.mrf.mxu1 }
 0x230   : > { %v1679_v53 = vadd.f32 %v1678_v22, %v1589_v52 }
 0x232   : > { %v1682_v23 = vpop.f32.mrf.mxu1 }
 0x233   : > { %v1683_v8 = vadd.f32 %v1682_v23, %v1593_v17 }
 0x234   : > { %v1684_v28 = vpop.f32.mrf.mxu1 }
 0x235   : > { %v1685_v12 = vadd.f32 %v1684_v28, %v5937_v54 }
 0x260   : > { %v2051_v31 = vpop.f32.mrf.mxu0 }
 0x262   : > { %v2053_v35 = vpop.f32.mrf.mxu0 }
 0x264   : > { %v2057_v58 = vpop.f32.mrf.mxu0 }
 0x266   : > { %v1761_v47 = vpop.f32.mrf.mxu1  ;;  %v2059_v14 = vpop.f32.mrf.mxu0 }
 0x267   : > { %v1762_v25 = vadd.f32 %v1761_v47, %v1665_v38 }
 0x268   : > { %v1763_v7 = vpop.f32.mrf.mxu1  ;;  %v2063_v2 = vpop.f32.mrf.mxu0 }
 0x269   : > { %v1764_v45 = vadd.f32 %v1763_v7, %v1667_v16  ;;  %v1851_v34 = vadd.f32 %v1850_v6, %v1762_v25 }
 0x26a   : > { %v1767_v33 = vpop.f32.mrf.mxu1  ;;  %v2065_v50 = vpop.f32.mrf.mxu0 }
 0x26b   : > { %v1768_v41 = vadd.f32 %v1767_v33, %v1671_v43  ;;  %v1853_v42 = vadd.f32 %v1852_v11, %v1764_v45  ;;  %v2285_v43 = vld [vmem:[%s7043_s10] sm:$0xff]  ;;  %v2405_v45 = vld [vmem:[%s7044_s11 + $0xf8] sm:$0xff] }
 0x26c   : > { %v1769_v36 = vpop.f32.mrf.mxu1 }
 0x26d   : > { %v1770_v57 = vadd.f32 %v1769_v36, %v1673_v32  ;;  %v1857_v63 = vadd.f32 %v1856_v0, %v1768_v41  ;;  %v2388_v32 = vld [vmem:[%s7044_s11 + $0x70] sm:$0xff]  ;;  %v2403_v41 = vld [vmem:[%s7044_s11 + $0xe8] sm:$0xff] }
 0x26e   : > { %v1773_v26 = vpop.f32.mrf.mxu1 }
 0x26f   : > { %v1774_v60 = vadd.f32 %v1773_v26, %v1677_v9  ;;  %v1859_v6 = vadd.f32 %v1858_v30, %v1770_v57  ;;  %v2069_v30 = vpop.f32.mrf.mxu0  ;;  %v2402_v9 = vld [vmem:[%s7044_s11 + $0xe0] sm:$0xff]  ;;  %v2384_v57 = vld [vmem:[%s7044_s11 + $0x50] sm:$0xff] }
 0x270   : > { %v1775_v37 = vpop.f32.mrf.mxu1 }
 0x271   : > { %v1776_v62 = vadd.f32 %v1775_v37, %v1679_v53  ;;  %v1863_v0 = vadd.f32 %v1862_v20, %v1774_v60  ;;  %v2071_v37 = vpop.f32.mrf.mxu0  ;;  %v2398_v53 = vld [vmem:[%s7044_s11 + $0xc0] sm:$0xff] }
 0x272   : > { %v1779_v44 = vpop.f32.mrf.mxu1  ;;  %v2382_v60 = vld [vmem:[%s7044_s11 + $0x40] sm:$0xff] }
 0x273   : > { %v1780_v19 = vadd.f32 %v1779_v44, %v1683_v8  ;;  %v1865_v47 = vadd.f32 %v5939_v5, %v1776_v62  ;;  %v2487_v8 = vld [vmem:[%s7045_s12 + $0x30] sm:$0xff]  ;;  %v2502_v62 = vld [vmem:[%s7045_s12 + $0xa8] sm:$0xff] }
 0x274   : > { %v1781_v18 = vpop.f32.mrf.mxu1 }
 0x275   : > { %v1782_v7 = vadd.f32 %v1781_v18, %v1685_v12  ;;  %v1869_v20 = vadd.f32 %v5941_v46, %v1780_v19  ;;  %v2199_v46 = vld [vmem:[%s7042_s9] sm:$0xff]  ;;  %v2377_v19 = vld [vmem:[%s7044_s11 + $0x18] sm:$0xff] }
 0x276   : > { %v2140_v24 = vpop.f32.mrf.mxu1  ;;  %v2485_v12 = vld [vmem:[%s7045_s12 + $0x20] sm:$0xff] }
 0x277   : > { %v2141_v49 = vadd.f32 %v2140_v24, %v2051_v31  ;;  %v1871_v5 = vadd.f32 %v5943_v29, %v1782_v7  ;;  %v2200_v29 = vld [vmem:[%s7042_s9 + $0x8] sm:$0xff]  ;;  %v2389_v24 = vld [vmem:[%s7044_s11 + $0x78] sm:$0xff] }
 0x278   : > { %v2142_v13 = vpop.f32.mrf.mxu1  ;;  %v2498_v7 = vld [vmem:[%s7045_s12 + $0x88] sm:$0xff] }
 0x279   : > { %v2163_v3 = vadd.f32 %v2141_v49, %v1851_v34  ;;  %v2143_v48 = vadd.f32 %v2142_v13, %v2053_v35  ;;  %v2286_v34 = vld [vmem:[%s7043_s10 + $0x8] sm:$0xff]  ;;  %v2401_v13 = vld [vmem:[%s7044_s11 + $0xd8] sm:$0xff] }
 0x27a   : > { %v2146_v51 = vpop.f32.mrf.mxu1  ;;  %v2387_v49 = vld [vmem:[%s7044_s11 + $0x68] sm:$0xff] }
 0x27b   : > { %v5953_v59 = vadd.f32 %v2176_v21, %v2163_v3  ;;  %v2164_v39 = vadd.f32 %v2143_v48, %v1853_v42  ;;  %v2147_v1 = vadd.f32 %v2146_v51, %v2057_v58  ;;  %v2400_v42 = vld [vmem:[%s7044_s11 + $0xd0] sm:$0xff]  ;;  %v2399_v3 = vld [vmem:[%s7044_s11 + $0xc8] sm:$0xff]  ;;  %v2397_v51 = vld [vmem:[%s7044_s11 + $0xb8] sm:$0xff] }
 0x27c   : > { %v2148_v4 = vpop.f32.mrf.mxu1  ;;  %v2383_v48 = vld [vmem:[%s7044_s11 + $0x48] sm:$0xff] }
 0x27d   : > { %2191 = vst [vmem:[%s5955_s15] sm:$0xff] %v5953_v59  ;;  %v2165_v52 = vadd.f32 %v2147_v1, %v1857_v63  ;;  %v2149_v10 = vadd.f32 %v2148_v4, %v2059_v14  ;;  %v2184_v11 = vadd.f32 %v2180_v27, %v2164_v39  ;;  %v2381_v63 = vld [vmem:[%s7044_s11 + $0x38] sm:$0xff]  ;;  %v2503_v39 = vld [vmem:[%s7045_s12 + $0xb0] sm:$0xff]  ;;  %v2379_v4 = vld [vmem:[%s7044_s11 + $0x28] sm:$0xff] }
 0x27e   : > { %v2152_v15 = vpop.f32.mrf.mxu1  ;;  %v2380_v1 = vld [vmem:[%s7044_s11 + $0x30] sm:$0xff]  ;;  %4109 = vmatprep.subr.mxu0 %v2503_v39  ;;  %v2610_v39 = vld [vmem:[%s7038_s5 + $0xa0] sm:$0xff] }
 0x27f   : > { %v2185_v17 = vadd.f32 %v2176_v21, %v2165_v52  ;;  %v2166_v22 = vadd.f32 %v2149_v10, %v1859_v6  ;;  %v2153_v23 = vadd.f32 %v2152_v15, %v2063_v2  ;;  %2192 = vst [vmem:[%s5955_s15 + $0x8] sm:$0xff] %v2184_v11  ;;  %v2386_v2 = vld [vmem:[%s7044_s11 + $0x60] sm:$0xff]  ;;  %4110 = vmatpush3.msra.mxu0 %v2487_v8  ;;  %v2486_v6 = vld [vmem:[%s7045_s12 + $0x28] sm:$0xff]  ;;  %v2500_v15 = vld [vmem:[%s7045_s12 + $0x98] sm:$0xff] }
 0x280   : > { %v2154_v31 = vpop.f32.mrf.mxu1  ;;  %4111 = vmatprep.subr.mxu0 %v2502_v62  ;;  %v2394_v52 = vld [vmem:[%s7044_s11 + $0xa0] sm:$0xff]  ;;  %v2609_v8 = vld [vmem:[%s7038_s5 + $0x98] sm:$0xff]  ;;  %v2608_v62 = vld [vmem:[%s7038_s5 + $0x90] sm:$0xff] }
 0x281   : > { %2193 = vst [vmem:[%s5955_s15 + $0x10] sm:$0xff] %v2185_v17  ;;  %v2167_v33 = vadd.f32 %v2153_v23, %v1863_v0  ;;  %v2155_v35 = vadd.f32 %v2154_v31, %v2065_v50  ;;  %v2186_v36 = vadd.f32 %v2180_v27, %v2166_v22  ;;  %v2395_v50 = vld [vmem:[%s7044_s11 + $0xa8] sm:$0xff]  ;;  %4112 = vmatpush3.msra.mxu0 %v2486_v6  ;;  %v2501_v10 = vld [vmem:[%s7045_s12 + $0xa0] sm:$0xff]  ;;  %v2393_v0 = vld [vmem:[%s7044_s11 + $0x98] sm:$0xff] }
 0x282   : > { %v2158_v54 = vpop.f32.mrf.mxu1  ;;  %4113 = vmatprep.subr.mxu0 %v2501_v10  ;;  %v2392_v22 = vld [vmem:[%s7044_s11 + $0x90] sm:$0xff]  ;;  %v2391_v31 = vld [vmem:[%s7044_s11 + $0x88] sm:$0xff]  ;;  %v2606_v10 = vld [vmem:[%s7038_s5 + $0x80] sm:$0xff] }
 0x283   : > { %v2187_v28 = vadd.f32 %v2176_v21, %v2167_v33  ;;  %v2168_v26 = vadd.f32 %v2155_v35, %v1865_v47  ;;  %v2159_v58 = vadd.f32 %v2158_v54, %v2069_v30  ;;  %2194 = vst [vmem:[%s5955_s15 + $0x18] sm:$0xff] %v2186_v36  ;;  %4114 = vmatpush3.msra.mxu0 %v2485_v12  ;;  %v2499_v23 = vld [vmem:[%s7045_s12 + $0x90] sm:$0xff]  ;;  %v2375_v33 = vld [vmem:[%s7044_s11 + $0x8] sm:$0xff]  ;;  %v2497_v54 = vld [vmem:[%s7045_s12 + $0x80] sm:$0xff] }
 0x284   : > { %v2160_v38 = vpop.f32.mrf.mxu1  ;;  %4115 = vmatprep.subr.mxu0 %v2500_v15  ;;  %v2376_v30 = vld [vmem:[%s7044_s11 + $0x10] sm:$0xff]  ;;  %v2482_v35 = vld [vmem:[%s7045_s12 + $0x8] sm:$0xff]  ;;  %v2605_v12 = vld [vmem:[%s7038_s5 + $0x78] sm:$0xff] }
 0x285   : > { %2195 = vst [vmem:[%s5955_s15 + $0x20] sm:$0xff] %v2187_v28  ;;  %v2169_v44 = vadd.f32 %v2159_v58, %v1869_v20  ;;  %v2161_v16 = vadd.f32 %v2160_v38, %v2071_v37  ;;  %v2188_v25 = vadd.f32 %v2180_v27, %v2168_v26  ;;  %v2483_v47 = vld [vmem:[%s7045_s12 + $0x10] sm:$0xff]  ;;  %v2374_v20 = vld [vmem:[%s7044_s11] sm:$0xff]  ;;  %v2621_v26 = vld [vmem:[%s7038_s5 + $0xf8] sm:$0xff] }
 0x286   : > { %v3838_v58 = vld [vmem:[%s7038_s5 + $0x1f8] sm:$0xff]  ;;  %v2607_v6 = vld [vmem:[%s7038_s5 + $0x88] sm:$0xff]  ;;  %v2604_v15 = vld [vmem:[%s7038_s5 + $0x70] sm:$0xff] }
 0x287   : > { %v2189_v40 = vadd.f32 %v2176_v21, %v2169_v44  ;;  %v2170_v14 = vadd.f32 %v2161_v16, %v1871_v5  ;;  %2196 = vst [vmem:[%s5955_s15 + $0x28] sm:$0xff] %v2188_v25  ;;  %v2404_v21 = vld [vmem:[%s7044_s11 + $0xf0] sm:$0xff] }
 0x289   : > { %2197 = vst [vmem:[%s5955_s15 + $0x30] sm:$0xff] %v2189_v40  ;;  %v2190_v18 = vadd.f32 %v2180_v27, %v2170_v14  ;;  %v2385_v27 = vld [vmem:[%s7044_s11 + $0x58] sm:$0xff] }
 0x28b   : > { %2198 = vst [vmem:[%s5955_s15 + $0x38] sm:$0xff] %v2190_v18  ;;  %2232 = vmatprep.subr.mxu1 %v2190_v18  ;;  %s4306_s15 = sshll.u32 %s4366_s17, 4  ;;  %s4307_s15 = int_to_ptr.vmem [resolvable:$false] %s4306_s15 }
 0x28c   : > { %2233 = vmatpush1.msra.mxu1 %v2189_v40  ;;  %s4308_s18 = scalar_lea.vmem %s4307_s15, 2048  ;;  %p4309_p0 = scmp.lt.s32.totalorder %s6980_s20, %s4307_s15 }
 0x28d   : > { %2234 = vmatprep.subr.mxu1 %v2188_v25  ;;  %p4310_p1 = scmp.lt.s32.totalorder %s4308_s18, %s4302_s29 }
 0x28e   : > { %2235 = vmatpush1.msra.mxu1 %v2187_v28 }
 0x28f   : > { %2236 = vmatprep.subr.mxu1 %v2186_v36  ;;  %p4311_p2 = por %p4310_p1, %p4309_p0 }
 0x290   : > { %2237 = vmatpush1.msra.mxu1 %v2185_v17 }
 0x291   : > { %2238 = vmatprep.subr.mxu1 %v2184_v11  ;;  %p4312_p3 = pnand %p4311_p2, %p4305_p13 }
 0x292   : > { %2239 = vmatpush1.msra.mxu1 %v5953_v59 }
 0x293   : > { %3803 = vmatmul.mubr.msk.f32.vlgmr.msra.gmra.mxu1 %vm2201_vm6, %v2199_v46  ;;  %2317 = vmatprep.subr.mxu1 %v2190_v18  ;;  %v2620_v46 = vld [vmem:[%s7038_s5 + $0xf0] sm:$0xff] }
 0x294   : > { %2318 = vmatpush1.msra.mxu1 %v2189_v40  ;;  %2278 = vmatprep.mubr.f32.mxu1 %v4364_v61 }
 0x295   : > { %2319 = vmatprep.subr.mxu1 %v2188_v25 }
 0x296   : > { %2320 = vmatpush1.msra.mxu1 %v2187_v28  ;;  %v2481_v28 = vld [vmem:[%s7045_s12] sm:$0xff] }
 0x297   : > { %3804 = vmatmul.mubr.msk.f32.gmra.mxu1 %vm2201_vm6, %v2200_v29  ;;  %2321 = vmatprep.subr.mxu1 %v2186_v36  ;;  %v2390_v36 = vld [vmem:[%s7044_s11 + $0x80] sm:$0xff]  ;;  %v3837_v29 = vld [vmem:[%s7038_s5 + $0x1f0] sm:$0xff] }
 0x298   : > { %2322 = vmatpush1.msra.mxu1 %v2185_v17  ;;  %2357 = vmatprep.mubr.f32.mxu1 %v4364_v61  ;;  %v2484_v17 = vld [vmem:[%s7045_s12 + $0x18] sm:$0xff] }
 0x299   : > { %2323 = vmatprep.subr.mxu1 %v2184_v11  ;;  %v2378_v11 = vld [vmem:[%s7044_s11 + $0x20] sm:$0xff]  ;;  %4116 = vmatpush3.msra.mxu0 %v2484_v17  ;;  %v2603_v17 = vld [vmem:[%s7038_s5 + $0x68] sm:$0xff] }
 0x29a   : > { %2324 = vmatpush1.msra.mxu1 %v5953_v59  ;;  %v2396_v59 = vld [vmem:[%s7044_s11 + $0xb0] sm:$0xff]  ;;  %4117 = vmatprep.subr.mxu0 %v2499_v23  ;;  %v2602_v23 = vld [vmem:[%s7038_s5 + $0x60] sm:$0xff] }
 0x29b   : > { %3805 = vmatmul.mubr.msk.f32.vlgmr.msra.gmra.mxu1 %vm2201_vm6, %v2285_v43  ;;  %4053 = vmatprep.subr.mxu1 %v2405_v45  ;;  %v2619_v43 = vld [vmem:[%s7038_s5 + $0xe8] sm:$0xff] }
 0x29c   : > { %2363 = vmatprep.mubr.f32.mxu1 %v4364_v61  ;;  %4054 = vmatpush3.msra.mxu1 %v2389_v24  ;;  %v3836_v45 = vld [vmem:[%s7038_s5 + $0x1e8] sm:$0xff] }
 0x29d   : > { %4055 = vmatprep.subr.mxu1 %v2404_v21  ;;  %4118 = vmatpush3.msra.mxu0 %v2483_v47  ;;  %v2600_v47 = vld [vmem:[%s7038_s5 + $0x50] sm:$0xff] }
 0x29e   : > { %4056 = vmatpush3.msra.mxu1 %v2388_v32  ;;  %4119 = vmatprep.subr.mxu0 %v2498_v7  ;;  %v2598_v7 = vld [vmem:[%s7038_s5 + $0x40] sm:$0xff] }
 0x29f   : > { %3806 = vmatmul.mubr.msk.f32.gmra.mxu1 %vm2201_vm6, %v2286_v34  ;;  %4057 = vmatprep.subr.mxu1 %v2403_v41  ;;  %v2618_v34 = vld [vmem:[%s7038_s5 + $0xe0] sm:$0xff] }
 0x2a0   : > { %4058 = vmatpush3.msra.mxu1 %v2387_v49  ;;  %4120 = vmatpush3.msra.mxu0 %v2482_v35  ;;  %v3835_v41 = vld [vmem:[%s7038_s5 + $0x1e0] sm:$0xff]  ;;  %v2617_v49 = vld [vmem:[%s7038_s5 + $0xd8] sm:$0xff] }
 0x2a1   : > { %4059 = vmatprep.subr.mxu1 %v2402_v9  ;;  %4121 = vmatprep.subr.mxu0 %v2497_v54  ;;  %v3834_v9 = vld [vmem:[%s7038_s5 + $0x1d8] sm:$0xff]  ;;  %v3819_v35 = vld [vmem:[%s7038_s5 + $0x160] sm:$0xff] }
 0x2a2   : > { %4060 = vmatpush3.msra.mxu1 %v2386_v2  ;;  %4122 = vmatpush3.msra.mxu0 %v2481_v28  ;;  %v2616_v2 = vld [vmem:[%s7038_s5 + $0xd0] sm:$0xff]  ;;  %v3818_v54 = vld [vmem:[%s7038_s5 + $0x158] sm:$0xff] }
 0x2a3   : > { %4061 = vmatprep.subr.mxu1 %v2401_v13  ;;  %2739 = vmatprep.subr.mxu0 %v2621_v26  ;;  %v3833_v13 = vld [vmem:[%s7038_s5 + $0x1d0] sm:$0xff]  ;;  %v2594_v26 = vld [vmem:[%s7038_s5 + $0x20] sm:$0xff] }
 0x2a4   : > { %4062 = vmatpush3.msra.mxu1 %v2385_v27  ;;  %v2615_v27 = vld [vmem:[%s7038_s5 + $0xc8] sm:$0xff]  ;;  %v3817_v28 = vld [vmem:[%s7038_s5 + $0x150] sm:$0xff] }
 0x2a5   : > { %4063 = vmatprep.subr.mxu1 %v2400_v42  ;;  %v3832_v42 = vld [vmem:[%s7038_s5 + $0x1c8] sm:$0xff] }
 0x2a6   : > { %4064 = vmatpush3.msra.mxu1 %v2384_v57  ;;  %v2614_v57 = vld [vmem:[%s7038_s5 + $0xc0] sm:$0xff] }
 0x2a7   : > { %4065 = vmatprep.subr.mxu1 %v2399_v3  ;;  %v3831_v3 = vld [vmem:[%s7038_s5 + $0x1c0] sm:$0xff] }
 0x2a8   : > { %4066 = vmatpush3.msra.mxu1 %v2383_v48  ;;  %v2613_v48 = vld [vmem:[%s7038_s5 + $0xb8] sm:$0xff] }
 0x2a9   : > { %4067 = vmatprep.subr.mxu1 %v2398_v53  ;;  %v3830_v53 = vld [vmem:[%s7038_s5 + $0x1b8] sm:$0xff] }
 0x2aa   : > { %4068 = vmatpush3.msra.mxu1 %v2382_v60  ;;  %v2612_v60 = vld [vmem:[%s7038_s5 + $0xb0] sm:$0xff] }
 0x2ab   : > { %4069 = vmatprep.subr.mxu1 %v2397_v51  ;;  %v3829_v51 = vld [vmem:[%s7038_s5 + $0x1b0] sm:$0xff] }
 0x2ac   : > { %4070 = vmatpush3.msra.mxu1 %v2381_v63  ;;  %v2611_v63 = vld [vmem:[%s7038_s5 + $0xa8] sm:$0xff] }
 0x2ad   : > { %4071 = vmatprep.subr.mxu1 %v2396_v59  ;;  %v3828_v59 = vld [vmem:[%s7038_s5 + $0x1a8] sm:$0xff] }
 0x2ae   : > { %4072 = vmatpush3.msra.mxu1 %v2380_v1  ;;  %v3827_v1 = vld [vmem:[%s7038_s5 + $0x1a0] sm:$0xff] }
 0x2af   : > { %4073 = vmatprep.subr.mxu1 %v2395_v50  ;;  %v3826_v50 = vld [vmem:[%s7038_s5 + $0x198] sm:$0xff] }
 0x2b0   : > { %4074 = vmatpush3.msra.mxu1 %v2379_v4  ;;  %v3825_v4 = vld [vmem:[%s7038_s5 + $0x190] sm:$0xff] }
 0x2b1   : > { %4075 = vmatprep.subr.mxu1 %v2394_v52  ;;  %v3824_v52 = vld [vmem:[%s7038_s5 + $0x188] sm:$0xff] }
 0x2b2   : > { %4076 = vmatpush3.msra.mxu1 %v2378_v11  ;;  %v3823_v11 = vld [vmem:[%s7038_s5 + $0x180] sm:$0xff] }
 0x2b3   : > { %4077 = vmatprep.subr.mxu1 %v2393_v0  ;;  %v3822_v0 = vld [vmem:[%s7038_s5 + $0x178] sm:$0xff] }
 0x2b4   : > { %4078 = vmatpush3.msra.mxu1 %v2377_v19  ;;  %v3821_v19 = vld [vmem:[%s7038_s5 + $0x170] sm:$0xff] }
 0x2b5   : > { %4079 = vmatprep.subr.mxu1 %v2392_v22  ;;  %v3820_v22 = vld [vmem:[%s7038_s5 + $0x168] sm:$0xff] }
 0x2b6   : > { %4080 = vmatpush3.msra.mxu1 %v2376_v30  ;;  %v2601_v30 = vld [vmem:[%s7038_s5 + $0x58] sm:$0xff] }
 0x2b7   : > { %4081 = vmatprep.subr.mxu1 %v2391_v31  ;;  %v2599_v31 = vld [vmem:[%s7038_s5 + $0x48] sm:$0xff] }
 0x2b8   : > { %4082 = vmatpush3.msra.mxu1 %v2375_v33  ;;  %v2597_v33 = vld [vmem:[%s7038_s5 + $0x38] sm:$0xff] }
 0x2b9   : > { %4083 = vmatprep.subr.mxu1 %v2390_v36  ;;  %v2596_v36 = vld [vmem:[%s7038_s5 + $0x30] sm:$0xff] }
 0x2ba   : > { %4084 = vmatpush3.msra.mxu1 %v2374_v20  ;;  %v2595_v20 = vld [vmem:[%s7038_s5 + $0x28] sm:$0xff] }
 0x2bb   : > { %2662 = vmatprep.subr.mxu1 %v3838_v58  ;;  %v3816_v58 = vld [vmem:[%s7038_s5 + $0x148] sm:$0xff] }
 0x353   : > { %v2274_v37 = vpop.f32.mrf.mxu1 }
 0x355   : > { %v2276_v38 = vpop.f32.mrf.mxu1 }
 0x357   : > { %v2280_v5 = vpop.f32.mrf.mxu1 }
 0x359   : > { %v2282_v44 = vpop.f32.mrf.mxu1 }
 0x35b   : > { %v2359_v16 = vpop.f32.mrf.mxu1 }
 0x35c   : > { %v2370_v14 = vmax.f32 %v2274_v37, %v2359_v16  ;;  %v2593_v37 = vld [vmem:[%s7038_s5 + $0x18] sm:$0xff]  ;;  %v2591_v16 = vld [vmem:[%s7038_s5 + $0x8] sm:$0xff] }
 0x35d   : > { %v2361_v25 = vpop.f32.mrf.mxu1 }
 0x35e   : > { %v2371_v40 = vmax.f32 %v2276_v38, %v2361_v25  ;;  %v3815_v38 = vld [vmem:[%s7038_s5 + $0x140] sm:$0xff]  ;;  %v3813_v25 = vld [vmem:[%s7038_s5 + $0x130] sm:$0xff] }
 0x35f   : > { %v2365_v18 = vpop.f32.mrf.mxu1 }
 0x360   : > { %2470 = vmatprep.mubr.f32.mxu1 %v2371_v40  ;;  %2577 = vmatprep.mubr.f32.mxu0 %v2371_v40  ;;  %v2372_v32 = vmax.f32 %v2280_v5, %v2365_v18  ;;  %v2592_v5 = vld [vmem:[%s7038_s5 + $0x10] sm:$0xff]  ;;  %v2590_v40 = vld [vmem:[%s7038_s5] sm:$0xff] }
 0x361   : > { %v2367_v24 = vpop.f32.mrf.mxu1  ;;  %2471 = vmatmul.mubr.f32.vlgmr.msra.gmra.mxu1 %v2370_v14  ;;  %2578 = vmatmul.mubr.f32.vlgmr.msra.gmra.mxu0 %v2370_v14  ;;  %v3812_v14 = vld [vmem:[%s7038_s5 + $0x128] sm:$0xff]  ;;  %v3811_v18 = vld [vmem:[%s7038_s5 + $0x120] sm:$0xff] }
 0x362   : > { %v2373_v21 = vmax.f32 %v2282_v44, %v2367_v24  ;;  %2740 = vmatpush1.msra.mxu0 %v2620_v46  ;;  %2663 = vmatpush1.msra.mxu1 %v3837_v29  ;;  %v3814_v44 = vld [vmem:[%s7038_s5 + $0x138] sm:$0xff]  ;;  %v3809_v29 = vld [vmem:[%s7038_s5 + $0x110] sm:$0xff] }
 0x363   : > { %2741 = vmatprep.subr.mxu0 %v2619_v43  ;;  %2664 = vmatprep.subr.mxu1 %v3836_v45  ;;  %v3810_v46 = vld [vmem:[%s7038_s5 + $0x118] sm:$0xff]  ;;  %v3808_v43 = vld [vmem:[%s7038_s5 + $0x108] sm:$0xff]  ;;  %v3807_v45 = vld [vmem:[%s7038_s5 + $0x100] sm:$0xff] }
 0x364   : > { %2475 = vmatprep.mubr.f32.mxu1 %v2373_v21  ;;  %2582 = vmatprep.mubr.f32.mxu0 %v2373_v21  ;;  %v3870_v24 = vld [vmem:[%s7038_s5 + $0x2f8] sm:$0xff] }
 0x365   : > { %2476 = vmatmul.mubr.f32.gmra.mxu1 %v2372_v32  ;;  %2583 = vmatmul.mubr.f32.gmra.mxu0 %v2372_v32  ;;  %v3902_v21 = vld [vmem:[%s7040_s7 + $0x2b8] sm:$0xff] }
 0x366   : > { %2742 = vmatpush1.msra.mxu0 %v2618_v34  ;;  %2665 = vmatpush1.msra.mxu1 %v3835_v41 }
 0x367   : > { %2743 = vmatprep.subr.mxu0 %v2617_v49  ;;  %2666 = vmatprep.subr.mxu1 %v3834_v9 }
 0x368   : > { %2744 = vmatpush1.msra.mxu0 %v2616_v2  ;;  %2667 = vmatpush1.msra.mxu1 %v3833_v13 }
 0x369   : > { %2745 = vmatprep.subr.mxu0 %v2615_v27  ;;  %2668 = vmatprep.subr.mxu1 %v3832_v42 }
 0x36a   : > { %2746 = vmatpush1.msra.mxu0 %v2614_v57  ;;  %2669 = vmatpush1.msra.mxu1 %v3831_v3  ;;  %v3901_v57 = vld [vmem:[%s7040_s7 + $0x2b0] sm:$0xff] }
 0x36b   : > { %2747 = vmatprep.subr.mxu0 %v2613_v48  ;;  %2670 = vmatprep.subr.mxu1 %v3830_v53 }
 0x36c   : > { %2748 = vmatpush1.msra.mxu0 %v2612_v60  ;;  %2671 = vmatpush1.msra.mxu1 %v3829_v51 }
 0x36d   : > { %2749 = vmatprep.subr.mxu0 %v2611_v63  ;;  %2672 = vmatprep.subr.mxu1 %v3828_v59 }
 0x36e   : > { %2750 = vmatpush1.msra.mxu0 %v2610_v39  ;;  %2673 = vmatpush1.msra.mxu1 %v3827_v1  ;;  %v3869_v39 = vld [vmem:[%s7038_s5 + $0x2f0] sm:$0xff] }
 0x36f   : > { %2751 = vmatprep.subr.mxu0 %v2609_v8  ;;  %2674 = vmatprep.subr.mxu1 %v3826_v50  ;;  %v3868_v8 = vld [vmem:[%s7038_s5 + $0x2e8] sm:$0xff]  ;;  %v3867_v50 = vld [vmem:[%s7038_s5 + $0x2e0] sm:$0xff] }
 0x370   : > { %2752 = vmatpush1.msra.mxu0 %v2608_v62  ;;  %2675 = vmatpush1.msra.mxu1 %v3825_v4  ;;  %v3866_v62 = vld [vmem:[%s7038_s5 + $0x2d8] sm:$0xff]  ;;  %v3865_v4 = vld [vmem:[%s7038_s5 + $0x2d0] sm:$0xff] }
 0x371   : > { %2753 = vmatprep.subr.mxu0 %v2607_v6  ;;  %2676 = vmatprep.subr.mxu1 %v3824_v52  ;;  %v3864_v6 = vld [vmem:[%s7038_s5 + $0x2c8] sm:$0xff]  ;;  %v3863_v52 = vld [vmem:[%s7038_s5 + $0x2c0] sm:$0xff] }
 0x372   : > { %2754 = vmatpush1.msra.mxu0 %v2606_v10  ;;  %2677 = vmatpush1.msra.mxu1 %v3823_v11  ;;  %v3862_v10 = vld [vmem:[%s7038_s5 + $0x2b8] sm:$0xff]  ;;  %v3861_v11 = vld [vmem:[%s7038_s5 + $0x2b0] sm:$0xff] }
 0x373   : > { %2755 = vmatprep.subr.mxu0 %v2605_v12  ;;  %2678 = vmatprep.subr.mxu1 %v3822_v0  ;;  %v3860_v12 = vld [vmem:[%s7038_s5 + $0x2a8] sm:$0xff]  ;;  %v3859_v0 = vld [vmem:[%s7038_s5 + $0x2a0] sm:$0xff] }
 0x374   : > { %2756 = vmatpush1.msra.mxu0 %v2604_v15  ;;  %2679 = vmatpush1.msra.mxu1 %v3821_v19  ;;  %v3858_v15 = vld [vmem:[%s7038_s5 + $0x298] sm:$0xff]  ;;  %v3857_v19 = vld [vmem:[%s7038_s5 + $0x290] sm:$0xff] }
 0x375   : > { %2757 = vmatprep.subr.mxu0 %v2603_v17  ;;  %2680 = vmatprep.subr.mxu1 %v3820_v22  ;;  %v3856_v17 = vld [vmem:[%s7038_s5 + $0x288] sm:$0xff]  ;;  %v3855_v22 = vld [vmem:[%s7038_s5 + $0x280] sm:$0xff] }
 0x376   : > { %2758 = vmatpush1.msra.mxu0 %v2602_v23  ;;  %2803 = vmatprep.mubr.f32.mxu0 %v4364_v61  ;;  %v3854_v23 = vld [vmem:[%s7038_s5 + $0x278] sm:$0xff] }
 0x377   : > { %2759 = vmatprep.subr.mxu0 %v2601_v30  ;;  %2726 = vmatprep.mubr.f32.mxu1 %v4364_v61  ;;  %v3853_v30 = vld [vmem:[%s7038_s5 + $0x270] sm:$0xff] }
 0x378   : > { %2760 = vmatpush1.msra.mxu0 %v2600_v47  ;;  %2681 = vmatpush1.msra.mxu1 %v3819_v35  ;;  %v3852_v47 = vld [vmem:[%s7038_s5 + $0x268] sm:$0xff] }
 0x379   : > { %2761 = vmatprep.subr.mxu0 %v2599_v31  ;;  %2682 = vmatprep.subr.mxu1 %v3818_v54  ;;  %v3851_v31 = vld [vmem:[%s7038_s5 + $0x260] sm:$0xff]  ;;  %v3848_v35 = vld [vmem:[%s7038_s5 + $0x248] sm:$0xff]  ;;  %v3846_v54 = vld [vmem:[%s7038_s5 + $0x238] sm:$0xff] }
 0x37a   : > { %2762 = vmatpush1.msra.mxu0 %v2598_v7  ;;  %2683 = vmatpush1.msra.mxu1 %v3817_v28  ;;  %v3850_v7 = vld [vmem:[%s7038_s5 + $0x258] sm:$0xff]  ;;  %v3844_v28 = vld [vmem:[%s7038_s5 + $0x228] sm:$0xff] }
 0x37b   : > { %2763 = vmatprep.subr.mxu0 %v2597_v33  ;;  %2684 = vmatprep.subr.mxu1 %v3816_v58  ;;  %v3849_v33 = vld [vmem:[%s7038_s5 + $0x250] sm:$0xff]  ;;  %v3842_v58 = vld [vmem:[%s7038_s5 + $0x218] sm:$0xff] }
 0x37c   : > { %2764 = vmatpush1.msra.mxu0 %v2596_v36  ;;  %2685 = vmatpush1.msra.mxu1 %v3815_v38  ;;  %v3847_v36 = vld [vmem:[%s7038_s5 + $0x240] sm:$0xff] }
 0x37d   : > { %2765 = vmatprep.subr.mxu0 %v2595_v20  ;;  %2686 = vmatprep.subr.mxu1 %v3814_v44  ;;  %v3845_v20 = vld [vmem:[%s7038_s5 + $0x230] sm:$0xff]  ;;  %v3839_v44 = vld [vmem:[%s7038_s5 + $0x200] sm:$0xff] }
 0x37e   : > { %2766 = vmatpush1.msra.mxu0 %v2594_v26  ;;  %2687 = vmatpush1.msra.mxu1 %v3813_v25  ;;  %v3843_v26 = vld [vmem:[%s7038_s5 + $0x220] sm:$0xff]  ;;  %v2986_v25 = vld [vmem:[%s7040_s7 + $0xf8] sm:$0xff] }
 0x37f   : > { %2767 = vmatprep.subr.mxu0 %v2593_v37  ;;  %2688 = vmatprep.subr.mxu1 %v3812_v14  ;;  %v3841_v37 = vld [vmem:[%s7038_s5 + $0x210] sm:$0xff] }
 0x380   : > { %2768 = vmatpush1.msra.mxu0 %v2592_v5  ;;  %2689 = vmatpush1.msra.mxu1 %v3811_v18  ;;  %v3840_v5 = vld [vmem:[%s7038_s5 + $0x208] sm:$0xff] }
 0x381   : > { %2769 = vmatprep.subr.mxu0 %v2591_v16  ;;  %2690 = vmatprep.subr.mxu1 %v3810_v46  ;;  %v2984_v18 = vld [vmem:[%s7040_s7 + $0xe8] sm:$0xff]  ;;  %v2983_v46 = vld [vmem:[%s7040_s7 + $0xe0] sm:$0xff] }
 0x382   : > { %2770 = vmatpush1.msra.mxu0 %v2590_v40  ;;  %2691 = vmatpush1.msra.mxu1 %v3809_v29  ;;  %v2985_v40 = vld [vmem:[%s7040_s7 + $0xf0] sm:$0xff]  ;;  %v2982_v29 = vld [vmem:[%s7040_s7 + $0xd8] sm:$0xff] }
 0x383   : > { %2692 = vmatprep.subr.mxu1 %v3808_v43  ;;  %3085 = vmatprep.subr.mxu0 %v3902_v21  ;;  %v2981_v43 = vld [vmem:[%s7040_s7 + $0xd0] sm:$0xff]  ;;  %v2978_v21 = vld [vmem:[%s7040_s7 + $0xb8] sm:$0xff] }
 0x384   : > { %2693 = vmatpush1.msra.mxu1 %v3807_v45  ;;  %v2980_v45 = vld [vmem:[%s7040_s7 + $0xc8] sm:$0xff] }
 0x385   : > { %2854 = vmatprep.subr.mxu1 %v3870_v24  ;;  %v3900_v24 = vld [vmem:[%s7040_s7 + $0x2a8] sm:$0xff] }
 0x421   : > { %v4085_v32 = vpop.f32.mrf.mxu1  ;;  %v4123_v34 = vpop.f32.mrf.mxu0 }
 0x423   : > { %v4086_v41 = vpop.f32.mrf.mxu1  ;;  %v4124_v49 = vpop.f32.mrf.mxu0 }
 0x424   : > { %v4087_v9 = vadd.f32 %v4086_v41, %v4085_v32  ;;  %v4125_v2 = vadd.f32 %v4124_v49, %v4123_v34  ;;  %v3899_v32 = vld [vmem:[%s7040_s7 + $0x2a0] sm:$0xff]  ;;  %v2977_v34 = vld [vmem:[%s7040_s7 + $0xb0] sm:$0xff]  ;;  %v3898_v41 = vld [vmem:[%s7040_s7 + $0x298] sm:$0xff] }
 0x425   : > { %v4088_v13 = vpop.f32.mrf.mxu1  ;;  %v4126_v27 = vpop.f32.mrf.mxu0  ;;  %v2976_v49 = vld [vmem:[%s7040_s7 + $0xa8] sm:$0xff] }
 0x426   : > { %v6329_v42 = vmax.f32 %v4087_v9, %v4125_v2  ;;  %v3897_v9 = vld [vmem:[%s7040_s7 + $0x290] sm:$0xff]  ;;  %v2975_v2 = vld [vmem:[%s7040_s7 + $0xa0] sm:$0xff] }
 0x427   : > { %v4089_v3 = vpop.f32.mrf.mxu1  ;;  %v4127_v48 = vpop.f32.mrf.mxu0 }
 0x428   : > { %v4090_v53 = vadd.f32 %v4089_v3, %v4088_v13  ;;  %v4128_v60 = vadd.f32 %v4127_v48, %v4126_v27  ;;  %2804 = vmatmul.mubr.f32.vlgmr.msra.gmra.mxu0 %v6329_v42  ;;  %v2657_v63 = vrot.slane %v6329_v42, 1  ;;  %v2849_v16 = vrot.slane %v6329_v42, 2  ;;  %v3896_v13 = vld [vmem:[%s7040_s7 + $0x288] sm:$0xff]  ;;  %v2974_v27 = vld [vmem:[%s7040_s7 + $0x98] sm:$0xff]  ;;  %v3895_v42 = vld [vmem:[%s7040_s7 + $0x280] sm:$0xff] }
 0x429   : > { %2809 = vmatprep.mubr.f32.mxu0 %v4364_v61  ;;  %3086 = vmatpush1.msra.mxu0 %v3901_v57  ;;  %v2973_v57 = vld [vmem:[%s7040_s7 + $0x90] sm:$0xff]  ;;  %v3894_v3 = vld [vmem:[%s7040_s7 + $0x278] sm:$0xff]  ;;  %v2972_v48 = vld [vmem:[%s7040_s7 + $0x88] sm:$0xff] }
 0x42a   : > { %v6336_v51 = vmax.f32 %v4090_v53, %v4128_v60  ;;  %3087 = vmatprep.subr.mxu0 %v3900_v24  ;;  %v3893_v53 = vld [vmem:[%s7040_s7 + $0x270] sm:$0xff]  ;;  %v2971_v60 = vld [vmem:[%s7040_s7 + $0x80] sm:$0xff] }
 0x42b   : > { %3088 = vmatpush1.msra.mxu0 %v3899_v32  ;;  %v3925_v24 = vld [vmem:[%s7040_s7 + $0x370] sm:$0xff]  ;;  %v3924_v32 = vld [vmem:[%s7040_s7 + $0x368] sm:$0xff] }
 0x42c   : > { %v2658_v59 = vrot.slane %v6336_v51, 1  ;;  %2810 = vmatmul.mubr.f32.gmra.mxu0 %v6336_v51  ;;  %v2850_v38 = vrot.slane %v6336_v51, 2  ;;  %3089 = vmatprep.subr.mxu0 %v3898_v41  ;;  %v3892_v51 = vld [vmem:[%s7040_s7 + $0x268] sm:$0xff]  ;;  %v3923_v41 = vld [vmem:[%s7040_s7 + $0x360] sm:$0xff] }
 0x42d   : > { %3090 = vmatpush1.msra.mxu0 %v3897_v9  ;;  %v3922_v9 = vld [vmem:[%s7040_s7 + $0x358] sm:$0xff] }
 0x42e   : > { %v2659_v1 = vsel %vm574_vm1, %v2657_v63, %v2658_v59  ;;  %v2851_v14 = vsel %vm1037_vm3, %v2849_v16, %v2850_v38  ;;  %3091 = vmatprep.subr.mxu0 %v3896_v13  ;;  %v2970_v63 = vld [vmem:[%s7040_s7 + $0x78] sm:$0xff]  ;;  %v3921_v13 = vld [vmem:[%s7040_s7 + $0x350] sm:$0xff] }
 0x42f   : > { %2727 = vmatmul.mubr.f32.vlgmr.msra.gmra.mxu1 %v2659_v1  ;;  %3092 = vmatpush1.msra.mxu0 %v3895_v42  ;;  %v3890_v1 = vld [vmem:[%s7040_s7 + $0x258] sm:$0xff]  ;;  %v3920_v42 = vld [vmem:[%s7040_s7 + $0x348] sm:$0xff] }
 0x430   : > { %2855 = vmatpush1.msra.mxu1 %v3869_v39  ;;  %2732 = vmatprep.mubr.f32.mxu1 %v4364_v61  ;;  %v2969_v39 = vld [vmem:[%s7040_s7 + $0x70] sm:$0xff]  ;;  %v3874_v16 = vld [vmem:[%s7040_s7 + $0x1d8] sm:$0xff] }
 0x431   : > { %2856 = vmatprep.subr.mxu1 %v3868_v8  ;;  %3093 = vmatprep.subr.mxu0 %v3894_v3  ;;  %v2968_v8 = vld [vmem:[%s7040_s7 + $0x68] sm:$0xff]  ;;  %v3919_v3 = vld [vmem:[%s7040_s7 + $0x340] sm:$0xff] }
 0x432   : > { %2857 = vmatpush1.msra.mxu1 %v3867_v50  ;;  %3094 = vmatpush1.msra.mxu0 %v3893_v53  ;;  %v3889_v50 = vld [vmem:[%s7040_s7 + $0x250] sm:$0xff]  ;;  %v3918_v53 = vld [vmem:[%s7040_s7 + $0x338] sm:$0xff] }
 0x433   : > { %2858 = vmatprep.subr.mxu1 %v3866_v62  ;;  %2733 = vmatmul.mubr.f32.gmra.mxu1 %v2658_v59  ;;  %v3891_v59 = vld [vmem:[%s7040_s7 + $0x260] sm:$0xff] }
 0x434   : > { %2859 = vmatpush1.msra.mxu1 %v3865_v4  ;;  %2918 = vmatprep.mubr.f32.mxu1 %v4364_v61  ;;  %v2967_v62 = vld [vmem:[%s7040_s7 + $0x60] sm:$0xff]  ;;  %v3888_v4 = vld [vmem:[%s7040_s7 + $0x248] sm:$0xff] }
 0x435   : > { %2860 = vmatprep.subr.mxu1 %v3864_v6  ;;  %3095 = vmatprep.subr.mxu0 %v3892_v51  ;;  %v2966_v6 = vld [vmem:[%s7040_s7 + $0x58] sm:$0xff]  ;;  %v3917_v51 = vld [vmem:[%s7040_s7 + $0x330] sm:$0xff] }
 0x436   : > { %2861 = vmatpush1.msra.mxu1 %v3863_v52  ;;  %3096 = vmatpush1.msra.mxu0 %v3891_v59  ;;  %v3887_v52 = vld [vmem:[%s7040_s7 + $0x240] sm:$0xff]  ;;  %v3916_v59 = vld [vmem:[%s7040_s7 + $0x328] sm:$0xff] }
 0x437   : > { %2862 = vmatprep.subr.mxu1 %v3862_v10  ;;  %3097 = vmatprep.subr.mxu0 %v3890_v1  ;;  %v2965_v10 = vld [vmem:[%s7040_s7 + $0x50] sm:$0xff]  ;;  %v3915_v1 = vld [vmem:[%s7040_s7 + $0x320] sm:$0xff] }
 0x438   : > { %2863 = vmatpush1.msra.mxu1 %v3861_v11  ;;  %3098 = vmatpush1.msra.mxu0 %v3889_v50  ;;  %v3886_v11 = vld [vmem:[%s7040_s7 + $0x238] sm:$0xff] }
 0x439   : > { %2864 = vmatprep.subr.mxu1 %v3860_v12  ;;  %3099 = vmatprep.subr.mxu0 %v3888_v4  ;;  %v2964_v12 = vld [vmem:[%s7040_s7 + $0x48] sm:$0xff]  ;;  %v3914_v50 = vld [vmem:[%s7040_s7 + $0x318] sm:$0xff]  ;;  %v3913_v4 = vld [vmem:[%s7040_s7 + $0x310] sm:$0xff] }
 0x43a   : > { %2865 = vmatpush1.msra.mxu1 %v3859_v0  ;;  %3100 = vmatpush1.msra.mxu0 %v3887_v52  ;;  %v3885_v0 = vld [vmem:[%s7040_s7 + $0x230] sm:$0xff]  ;;  %v3912_v52 = vld [vmem:[%s7040_s7 + $0x308] sm:$0xff] }
 0x43b   : > { %2866 = vmatprep.subr.mxu1 %v3858_v15  ;;  %3101 = vmatprep.subr.mxu0 %v3886_v11  ;;  %v2963_v15 = vld [vmem:[%s7040_s7 + $0x40] sm:$0xff] }
 0x43c   : > { %2867 = vmatpush1.msra.mxu1 %v3857_v19  ;;  %v3884_v19 = vld [vmem:[%s7040_s7 + $0x228] sm:$0xff]  ;;  %3102 = vmatpush1.msra.mxu0 %v3885_v0  ;;  %v3911_v11 = vld [vmem:[%s7040_s7 + $0x300] sm:$0xff]  ;;  %v3910_v0 = vld [vmem:[%s7040_s7 + $0x2f8] sm:$0xff] }
 0x43d   : > { %2868 = vmatprep.subr.mxu1 %v3856_v17  ;;  %v2962_v17 = vld [vmem:[%s7040_s7 + $0x38] sm:$0xff]  ;;  %3103 = vmatprep.subr.mxu0 %v3884_v19  ;;  %v3909_v19 = vld [vmem:[%s7040_s7 + $0x2f0] sm:$0xff] }
 0x43e   : > { %2869 = vmatpush1.msra.mxu1 %v3855_v22  ;;  %v3883_v22 = vld [vmem:[%s7040_s7 + $0x220] sm:$0xff] }
 0x43f   : > { %2870 = vmatprep.subr.mxu1 %v3854_v23  ;;  %v2961_v23 = vld [vmem:[%s7040_s7 + $0x30] sm:$0xff]  ;;  %3104 = vmatpush1.msra.mxu0 %v3883_v22  ;;  %v3908_v22 = vld [vmem:[%s7040_s7 + $0x2e8] sm:$0xff] }
 0x440   : > { %2871 = vmatpush1.msra.mxu1 %v3853_v30  ;;  %v3882_v30 = vld [vmem:[%s7040_s7 + $0x218] sm:$0xff] }
 0x441   : > { %2872 = vmatprep.subr.mxu1 %v3852_v47  ;;  %v2960_v47 = vld [vmem:[%s7040_s7 + $0x28] sm:$0xff]  ;;  %3105 = vmatprep.subr.mxu0 %v3882_v30  ;;  %v3906_v30 = vld [vmem:[%s7040_s7 + $0x2d8] sm:$0xff] }
 0x442   : > { %2873 = vmatpush1.msra.mxu1 %v3851_v31  ;;  %v3881_v31 = vld [vmem:[%s7040_s7 + $0x210] sm:$0xff] }
 0x443   : > { %2874 = vmatprep.subr.mxu1 %v3850_v7  ;;  %v2959_v7 = vld [vmem:[%s7040_s7 + $0x20] sm:$0xff]  ;;  %3106 = vmatpush1.msra.mxu0 %v3881_v31  ;;  %v3904_v31 = vld [vmem:[%s7040_s7 + $0x2c8] sm:$0xff] }
 0x444   : > { %2875 = vmatpush1.msra.mxu1 %v3849_v33  ;;  %v3880_v33 = vld [vmem:[%s7040_s7 + $0x208] sm:$0xff] }
 0x445   : > { %2876 = vmatprep.subr.mxu1 %v3848_v35  ;;  %v2958_v35 = vld [vmem:[%s7040_s7 + $0x18] sm:$0xff]  ;;  %3107 = vmatprep.subr.mxu0 %v3880_v33 }
 0x446   : > { %2877 = vmatpush1.msra.mxu1 %v3847_v36  ;;  %v3879_v36 = vld [vmem:[%s7040_s7 + $0x200] sm:$0xff]  ;;  %v3962_v33 = vld [vmem:[%s7040_s7 + $0x478] sm:$0xff] }
 0x447   : > { %2878 = vmatprep.subr.mxu1 %v3846_v54  ;;  %v2957_v54 = vld [vmem:[%s7040_s7 + $0x10] sm:$0xff]  ;;  %3108 = vmatpush1.msra.mxu0 %v3879_v36 }
 0x448   : > { %2879 = vmatpush1.msra.mxu1 %v3845_v20  ;;  %v3878_v20 = vld [vmem:[%s7040_s7 + $0x1f8] sm:$0xff] }
 0x449   : > { %2880 = vmatprep.subr.mxu1 %v3844_v28  ;;  %v2956_v28 = vld [vmem:[%s7040_s7 + $0x8] sm:$0xff]  ;;  %3109 = vmatprep.subr.mxu0 %v3878_v20 }
 0x44a   : > { %2881 = vmatpush1.msra.mxu1 %v3843_v26  ;;  %v3877_v26 = vld [vmem:[%s7040_s7 + $0x1f0] sm:$0xff] }
 0x44b   : > { %2882 = vmatprep.subr.mxu1 %v3842_v58  ;;  %v2955_v58 = vld [vmem:[%s7040_s7] sm:$0xff]  ;;  %3110 = vmatpush1.msra.mxu0 %v3877_v26 }
 0x44c   : > { %2883 = vmatpush1.msra.mxu1 %v3841_v37  ;;  %v3876_v37 = vld [vmem:[%s7040_s7 + $0x1e8] sm:$0xff]  ;;  %v2935_v26 = vld [vmem:[%s7039_s6] sm:$0x3] }
 0x44d   : > { %2884 = vmatprep.subr.mxu1 %v3840_v5  ;;  %v3875_v5 = vld [vmem:[%s7040_s7 + $0x1e0] sm:$0xff]  ;;  %3111 = vmatprep.subr.mxu0 %v3876_v37 }
 0x44e   : > { %2885 = vmatpush1.msra.mxu1 %v3839_v44  ;;  %v3009_v44 = vld [vmem:[%s7040_s7 + $0x1b0] sm:$0xff]  ;;  %3112 = vmatpush1.msra.mxu0 %v3875_v5  ;;  %v2940_v5 = vrot.slane %v2935_v26, %v5311_v55 }
 0x44f   : > { %2919 = vmatmul.mubr.f32.vlgmr.msra.gmra.mxu1 %v2851_v14  ;;  %3166 = vmatprep.subr.mxu1 %v2986_v25  ;;  %v3008_v25 = vld [vmem:[%s7040_s7 + $0x1a8] sm:$0xff]  ;;  %v3007_v14 = vld [vmem:[%s7040_s7 + $0x1a0] sm:$0xff] }
 0x450   : > { %2924 = vmatprep.mubr.f32.mxu1 %v4364_v61  ;;  %3167 = vmatpush1.msra.mxu1 %v2985_v40  ;;  %v2979_v61 = vld [vmem:[%s7040_s7 + $0xc0] sm:$0xff]  ;;  %v3873_v40 = vld [vmem:[%s7040_s7 + $0x1d0] sm:$0xff] }
 0x451   : > { %3168 = vmatprep.subr.mxu1 %v2984_v18  ;;  %v3872_v18 = vld [vmem:[%s7040_s7 + $0x1c8] sm:$0xff]  ;;  %3113 = vmatprep.subr.mxu0 %v3874_v16 }
 0x452   : > { %3169 = vmatpush1.msra.mxu1 %v2983_v46  ;;  %v3006_v46 = vld [vmem:[%s7040_s7 + $0x198] sm:$0xff]  ;;  %3114 = vmatpush1.msra.mxu0 %v3873_v40  ;;  %v2944_v40 = vrot.slane %v2935_v26, %v5314_v56 }
 0x453   : > { %2925 = vmatmul.mubr.f32.gmra.mxu1 %v2850_v38  ;;  %3170 = vmatprep.subr.mxu1 %v2982_v29  ;;  %v3010_v38 = vld [vmem:[%s7040_s7 + $0x1b8] sm:$0xff]  ;;  %v3871_v29 = vld [vmem:[%s7040_s7 + $0x1c0] sm:$0xff] }
 0x454   : > { %3171 = vmatpush1.msra.mxu1 %v2981_v43  ;;  %v3005_v43 = vld [vmem:[%s7040_s7 + $0x190] sm:$0xff]  ;;  %3115 = vmatprep.subr.mxu0 %v3872_v18  ;;  %v3934_v26 = vld [vmem:[%s7040_s7 + $0x398] sm:$0xff] }
 0x455   : > { %3172 = vmatprep.subr.mxu1 %v2980_v45  ;;  %v3926_v45 = vld [vmem:[%s7040_s7 + $0x378] sm:$0xff]  ;;  %3116 = vmatpush1.msra.mxu0 %v3871_v29 }
 0x456   : > { %3173 = vmatpush1.msra.mxu1 %v2979_v61  ;;  %v3004_v61 = vld [vmem:[%s7040_s7 + $0x188] sm:$0xff]  ;;  %3125 = vmatprep.subr.mxu0 %v3926_v45 }
 0x457   : > { %3174 = vmatprep.subr.mxu1 %v2978_v21  ;;  %v3003_v21 = vld [vmem:[%s7040_s7 + $0x180] sm:$0xff]  ;;  %3126 = vmatpush2.msra.mxu0 %v3925_v24 }
 0x458   : > { %3175 = vmatpush1.msra.mxu1 %v2977_v34  ;;  %v3002_v34 = vld [vmem:[%s7040_s7 + $0x178] sm:$0xff]  ;;  %3127 = vmatprep.subr.mxu0 %v3924_v32 }
 0x459   : > { %3176 = vmatprep.subr.mxu1 %v2976_v49  ;;  %v3001_v49 = vld [vmem:[%s7040_s7 + $0x170] sm:$0xff]  ;;  %3128 = vmatpush2.msra.mxu0 %v3923_v41 }
 0x45a   : > { %3177 = vmatpush1.msra.mxu1 %v2975_v2  ;;  %v3000_v2 = vld [vmem:[%s7040_s7 + $0x168] sm:$0xff]  ;;  %3129 = vmatprep.subr.mxu0 %v3922_v9 }
 0x45b   : > { %3178 = vmatprep.subr.mxu1 %v2974_v27  ;;  %v2999_v27 = vld [vmem:[%s7040_s7 + $0x160] sm:$0xff]  ;;  %3130 = vmatpush2.msra.mxu0 %v3921_v13 }
 0x45c   : > { %3179 = vmatpush1.msra.mxu1 %v2973_v57  ;;  %v2998_v57 = vld [vmem:[%s7040_s7 + $0x158] sm:$0xff]  ;;  %3131 = vmatprep.subr.mxu0 %v3920_v42 }
 0x45d   : > { %3180 = vmatprep.subr.mxu1 %v2972_v48  ;;  %v2997_v48 = vld [vmem:[%s7040_s7 + $0x150] sm:$0xff]  ;;  %3132 = vmatpush2.msra.mxu0 %v3919_v3 }
 0x45e   : > { %3181 = vmatpush1.msra.mxu1 %v2971_v60  ;;  %v2996_v60 = vld [vmem:[%s7040_s7 + $0x148] sm:$0xff]  ;;  %3133 = vmatprep.subr.mxu0 %v3918_v53 }
 0x45f   : > { %3182 = vmatprep.subr.mxu1 %v2970_v63  ;;  %v2995_v63 = vld [vmem:[%s7040_s7 + $0x140] sm:$0xff]  ;;  %3134 = vmatpush2.msra.mxu0 %v3917_v51 }
 0x460   : > { %3183 = vmatpush1.msra.mxu1 %v2969_v39  ;;  %v2994_v39 = vld [vmem:[%s7040_s7 + $0x138] sm:$0xff]  ;;  %3135 = vmatprep.subr.mxu0 %v3916_v59 }
 0x461   : > { %3184 = vmatprep.subr.mxu1 %v2968_v8  ;;  %v2993_v8 = vld [vmem:[%s7040_s7 + $0x130] sm:$0xff]  ;;  %3136 = vmatpush2.msra.mxu0 %v3915_v1  ;;  %v3958_v1 = vld [vmem:[%s7040_s7 + $0x458] sm:$0xff] }
 0x462   : > { %3185 = vmatpush1.msra.mxu1 %v2967_v62  ;;  %v2992_v62 = vld [vmem:[%s7040_s7 + $0x128] sm:$0xff]  ;;  %3137 = vmatprep.subr.mxu0 %v3914_v50  ;;  %v3957_v50 = vld [vmem:[%s7040_s7 + $0x450] sm:$0xff] }
 0x463   : > { %3186 = vmatprep.subr.mxu1 %v2966_v6  ;;  %v2991_v6 = vld [vmem:[%s7040_s7 + $0x120] sm:$0xff]  ;;  %3138 = vmatpush2.msra.mxu0 %v3913_v4 }
 0x464   : > { %3187 = vmatpush1.msra.mxu1 %v2965_v10  ;;  %v2990_v10 = vld [vmem:[%s7040_s7 + $0x118] sm:$0xff]  ;;  %3139 = vmatprep.subr.mxu0 %v3912_v52 }
 0x465   : > { %3188 = vmatprep.subr.mxu1 %v2964_v12  ;;  %v2989_v12 = vld [vmem:[%s7040_s7 + $0x110] sm:$0xff]  ;;  %3140 = vmatpush2.msra.mxu0 %v3911_v11  ;;  %v3954_v52 = vld [vmem:[%s7040_s7 + $0x438] sm:$0xff]  ;;  %v3952_v11 = vld [vmem:[%s7040_s7 + $0x428] sm:$0xff] }
 0x466   : > { %3189 = vmatpush1.msra.mxu1 %v2963_v15  ;;  %v2988_v15 = vld [vmem:[%s7040_s7 + $0x108] sm:$0xff]  ;;  %3141 = vmatprep.subr.mxu0 %v3910_v0  ;;  %v3950_v0 = vld [vmem:[%s7040_s7 + $0x418] sm:$0xff] }
 0x467   : > { %3190 = vmatprep.subr.mxu1 %v2962_v17  ;;  %v2987_v17 = vld [vmem:[%s7040_s7 + $0x100] sm:$0xff]  ;;  %3142 = vmatpush2.msra.mxu0 %v3909_v19  ;;  %v3948_v19 = vld [vmem:[%s7040_s7 + $0x408] sm:$0xff] }
 0x468   : > { %3191 = vmatpush1.msra.mxu1 %v2961_v23  ;;  %3143 = vmatprep.subr.mxu0 %v3908_v22  ;;  %v3907_v23 = vld [vmem:[%s7040_s7 + $0x2e0] sm:$0xff]  ;;  %v3946_v22 = vld [vmem:[%s7040_s7 + $0x3f8] sm:$0xff] }
 0x469   : > { %3192 = vmatprep.subr.mxu1 %v2960_v47  ;;  %3144 = vmatpush2.msra.mxu0 %v3907_v23  ;;  %v3905_v47 = vld [vmem:[%s7040_s7 + $0x2d0] sm:$0xff] }
 0x46a   : > { %3193 = vmatpush1.msra.mxu1 %v2959_v7  ;;  %3145 = vmatprep.subr.mxu0 %v3906_v30  ;;  %v3903_v7 = vld [vmem:[%s7040_s7 + $0x2c0] sm:$0xff]  ;;  %v3945_v23 = vld [vmem:[%s7040_s7 + $0x3f0] sm:$0xff]  ;;  %v3944_v30 = vld [vmem:[%s7040_s7 + $0x3e8] sm:$0xff] }
 0x46b   : > { %3194 = vmatprep.subr.mxu1 %v2958_v35  ;;  %3146 = vmatpush2.msra.mxu0 %v3905_v47  ;;  %v3943_v47 = vld [vmem:[%s7040_s7 + $0x3e0] sm:$0xff] }
 0x46c   : > { %3195 = vmatpush1.msra.mxu1 %v2957_v54  ;;  %3147 = vmatprep.subr.mxu0 %v3904_v31  ;;  %v3942_v31 = vld [vmem:[%s7040_s7 + $0x3d8] sm:$0xff] }
 0x46d   : > { %3196 = vmatprep.subr.mxu1 %v2956_v28  ;;  %3148 = vmatpush2.msra.mxu0 %v3903_v7  ;;  %v3941_v7 = vld [vmem:[%s7040_s7 + $0x3d0] sm:$0xff] }
 0x46e   : > { %3197 = vmatpush1.msra.mxu1 %v2955_v58  ;;  %3312 = vmatprep.subr.mxu0 %v3962_v33  ;;  %v3940_v33 = vld [vmem:[%s7040_s7 + $0x3c8] sm:$0xff] }
 0x46f   : > { %3206 = vmatprep.subr.mxu1 %v3010_v38 }
 0x470   : > { %3207 = vmatpush2.msra.mxu1 %v3009_v44 }
 0x471   : > { %3208 = vmatprep.subr.mxu1 %v3008_v25 }
 0x472   : > { %3209 = vmatpush2.msra.mxu1 %v3007_v14 }
 0x473   : > { %3210 = vmatprep.subr.mxu1 %v3006_v46 }
 0x474   : > { %3211 = vmatpush2.msra.mxu1 %v3005_v43 }
 0x475   : > { %3212 = vmatprep.subr.mxu1 %v3004_v61 }
 0x476   : > { %3213 = vmatpush2.msra.mxu1 %v3003_v21 }
 0x477   : > { %3214 = vmatprep.subr.mxu1 %v3002_v34 }
 0x478   : > { %3215 = vmatpush2.msra.mxu1 %v3001_v49 }
 0x479   : > { %3216 = vmatprep.subr.mxu1 %v3000_v2 }
 0x47a   : > { %3217 = vmatpush2.msra.mxu1 %v2999_v27 }
 0x47b   : > { %3218 = vmatprep.subr.mxu1 %v2998_v57 }
 0x47c   : > { %3219 = vmatpush2.msra.mxu1 %v2997_v48 }
 0x47d   : > { %3220 = vmatprep.subr.mxu1 %v2996_v60  ;;  %v3961_v60 = vld [vmem:[%s7040_s7 + $0x470] sm:$0xff] }
 0x47e   : > { %3221 = vmatpush2.msra.mxu1 %v2995_v63  ;;  %v3960_v63 = vld [vmem:[%s7040_s7 + $0x468] sm:$0xff] }
 0x47f   : > { %3222 = vmatprep.subr.mxu1 %v2994_v39  ;;  %v3959_v39 = vld [vmem:[%s7040_s7 + $0x460] sm:$0xff] }
 0x480   : > { %3223 = vmatpush2.msra.mxu1 %v2993_v8 }
 0x481   : > { %3224 = vmatprep.subr.mxu1 %v2992_v62  ;;  %v3956_v62 = vld [vmem:[%s7040_s7 + $0x448] sm:$0xff] }
 0x482   : > { %3225 = vmatpush2.msra.mxu1 %v2991_v6  ;;  %v3955_v6 = vld [vmem:[%s7040_s7 + $0x440] sm:$0xff] }
 0x483   : > { %3226 = vmatprep.subr.mxu1 %v2990_v10  ;;  %v3953_v10 = vld [vmem:[%s7040_s7 + $0x430] sm:$0xff] }
 0x484   : > { %3227 = vmatpush2.msra.mxu1 %v2989_v12  ;;  %v3951_v12 = vld [vmem:[%s7040_s7 + $0x420] sm:$0xff] }
 0x485   : > { %3228 = vmatprep.subr.mxu1 %v2988_v15  ;;  %v3949_v15 = vld [vmem:[%s7040_s7 + $0x410] sm:$0xff] }
 0x486   : > { %3229 = vmatpush2.msra.mxu1 %v2987_v17  ;;  %v3947_v17 = vld [vmem:[%s7040_s7 + $0x400] sm:$0xff] }
 0x4e8   : > { %v2805_v54 = vpop.f32.mrf.mxu0 }
 0x4ea   : > { %v2807_v28 = vpop.f32.mrf.mxu0 }
 0x4ec   : > { %v2811_v44 = vpop.f32.mrf.mxu0 }
 0x4ee   : > { %v2813_v45 = vpop.f32.mrf.mxu0 }
 0x4ef   : > { %v2728_v35 = vpop.f32.mrf.mxu1 }
 0x4f0   : > { %v2806_v37 = vadd.f32 %v2805_v54, %v2728_v35  ;;  %v3939_v35 = vld [vmem:[%s7040_s7 + $0x3c0] sm:$0xff]  ;;  %v3937_v54 = vld [vmem:[%s7040_s7 + $0x3b0] sm:$0xff] }
 0x4f1   : > { %v2730_v36 = vpop.f32.mrf.mxu1 }
 0x4f2   : > { %v2808_v16 = vadd.f32 %v2807_v28, %v2730_v36  ;;  %v3938_v36 = vld [vmem:[%s7040_s7 + $0x3b8] sm:$0xff]  ;;  %v3935_v28 = vld [vmem:[%s7040_s7 + $0x3a0] sm:$0xff] }
 0x4f3   : > { %v2734_v20 = vpop.f32.mrf.mxu1 }
 0x4f4   : > { %v2812_v18 = vadd.f32 %v2811_v44, %v2734_v20  ;;  %v3936_v20 = vld [vmem:[%s7040_s7 + $0x3a8] sm:$0xff]  ;;  %v3985_v44 = vld [vmem:[%s7040_s7 + $0x530] sm:$0xff] }
 0x4f5   : > { %v2736_v58 = vpop.f32.mrf.mxu1 }
 0x4f6   : > { %v2814_v21 = vadd.f32 %v2813_v45, %v2736_v58  ;;  %v3933_v58 = vld [vmem:[%s7040_s7 + $0x390] sm:$0xff]  ;;  %v3976_v45 = vld [vmem:[%s7040_s7 + $0x4e8] sm:$0xff] }
 0x50f   : > { %v2920_v38 = vpop.f32.mrf.mxu1 }
 0x510   : > { %v2931_v25 = vadd.f32 %v2920_v38, %v2806_v37  ;;  %v3932_v37 = vld [vmem:[%s7040_s7 + $0x388] sm:$0xff]  ;;  %v3931_v38 = vld [vmem:[%s7040_s7 + $0x380] sm:$0xff] }
 0x511   : > { %v2922_v14 = vpop.f32.mrf.mxu1 }
 0x512   : > { %v2932_v46 = vadd.f32 %v2922_v14, %v2808_v16  ;;  %v2947_v29 = vadd.f32 %v2940_v5, %v2931_v25  ;;  %v3984_v16 = vld [vmem:[%s7040_s7 + $0x528] sm:$0xff]  ;;  %v3983_v25 = vld [vmem:[%s7040_s7 + $0x520] sm:$0xff]  ;;  %v3981_v14 = vld [vmem:[%s7040_s7 + $0x510] sm:$0xff] }
 0x513   : > { %v2926_v43 = vpop.f32.mrf.mxu1 }
 0x514   : > { %v2948_v61 = vadd.f32 %v2944_v40, %v2932_v46  ;;  %v2933_v24 = vadd.f32 %v2926_v43, %v2812_v18  ;;  %v6779_v49 = vmax.f32 %v2947_v29, 0.0  ;;  %v3980_v18 = vld [vmem:[%s7040_s7 + $0x508] sm:$0xff]  ;;  %v3979_v46 = vld [vmem:[%s7040_s7 + $0x500] sm:$0xff]  ;;  %v3978_v29 = vld [vmem:[%s7040_s7 + $0x4f8] sm:$0xff] }
 0x515   : > { %v2928_v32 = vpop.f32.mrf.mxu1  ;;  %v3977_v43 = vld [vmem:[%s7040_s7 + $0x4f0] sm:$0xff] }
 0x516   : > { %v2952_v34 = vmax.f32 %v2948_v61, 0.0  ;;  %v2949_v41 = vadd.f32 %v2940_v5, %v2933_v24  ;;  %v2934_v9 = vadd.f32 %v2928_v32, %v2814_v21  ;;  %v3072_v48 = vrot.slane %v6779_v49, 1  ;;  %v3986_v5 = vld [vmem:[%s7040_s7 + $0x538] sm:$0xff]  ;;  %v3975_v61 = vld [vmem:[%s7040_s7 + $0x4e0] sm:$0xff]  ;;  %v3973_v21 = vld [vmem:[%s7040_s7 + $0x4d0] sm:$0xff] }
 0x517   : > { %v3974_v24 = vld [vmem:[%s7040_s7 + $0x4d8] sm:$0xff]  ;;  %v3972_v32 = vld [vmem:[%s7040_s7 + $0x4c8] sm:$0xff] }
 0x518   : > { %v6781_v2 = vmax.f32 %v2949_v41, 0.0  ;;  %3929 = vmatprep.mubr.msk.f32.mxu1 %vm3080_vm7, %v2952_v34  ;;  %v2950_v13 = vadd.f32 %v2944_v40, %v2934_v9  ;;  %v3075_v57 = vrot.slane %v2952_v34, 1  ;;  %v3303_v8 = vrot.slane %v2952_v34, 2  ;;  %v3982_v40 = vld [vmem:[%s7040_s7 + $0x518] sm:$0xff]  ;;  %v3971_v34 = vld [vmem:[%s7040_s7 + $0x4c0] sm:$0xff]  ;;  %v3969_v9 = vld [vmem:[%s7040_s7 + $0x4b0] sm:$0xff] }
 0x519   : > { %3231 = vmatmul.mubr.f32.vlgmr.msra.gmra.mxu1 %v6779_v49  ;;  %v3970_v41 = vld [vmem:[%s7040_s7 + $0x4b8] sm:$0xff] }
 0x51a   : > { %v6785_v27 = vmax.f32 %v2950_v13, 0.0  ;;  %v3073_v42 = vrot.slane %v6781_v2, 1  ;;  %v3968_v13 = vld [vmem:[%s7040_s7 + $0x4a8] sm:$0xff] }
 0x51c   : > { %v3076_v3 = vrot.slane %v6785_v27, 1  ;;  %3930 = vmatprep.mubr.msk.f32.mxu1 %vm3080_vm7, %v6785_v27  ;;  %v3074_v51 = vsel %vm574_vm1, %v3072_v48, %v3073_v42  ;;  %v3304_v59 = vrot.slane %v6785_v27, 2  ;;  %v3301_v48 = vrot.slane %v6781_v2, 2 }
 0x51d   : > { %3237 = vmatmul.mubr.f32.gmra.mxu1 %v6781_v2 }
 0x51e   : > { %v3077_v53 = vsel %vm574_vm1, %v3075_v57, %v3076_v3  ;;  %v3305_v4 = vsel %vm1037_vm3, %v3303_v8, %v3304_v59  ;;  %v3966_v57 = vld [vmem:[%s7040_s7 + $0x498] sm:$0xff] }
 0x51f   : > { %3927 = vmatprep.mubr.msk.f32.mxu0 %vm3080_vm7, %v3077_v53  ;;  %v3964_v53 = vld [vmem:[%s7040_s7 + $0x488] sm:$0xff] }
 0x520   : > { %3150 = vmatmul.mubr.f32.vlgmr.msra.gmra.mxu0 %v3074_v51  ;;  %v3300_v51 = vrot.slane %v6779_v49, 2 }
 0x521   : > { %3313 = vmatpush1.msra.mxu0 %v3961_v60  ;;  %3928 = vmatprep.mubr.msk.f32.mxu0 %vm3080_vm7, %v3076_v3  ;;  %v3965_v3 = vld [vmem:[%s7040_s7 + $0x490] sm:$0xff]  ;;  %v3963_v60 = vld [vmem:[%s7040_s7 + $0x480] sm:$0xff] }
 0x522   : > { %3314 = vmatprep.subr.mxu0 %v3960_v63  ;;  %v3302_v63 = vsel %vm1037_vm3, %v3300_v51, %v3301_v48 }
 0x523   : > { %3315 = vmatpush1.msra.mxu0 %v3959_v39 }
 0x524   : > { %3316 = vmatprep.subr.mxu0 %v3958_v1  ;;  %3156 = vmatmul.mubr.f32.gmra.mxu0 %v3073_v42  ;;  %v3967_v42 = vld [vmem:[%s7040_s7 + $0x4a0] sm:$0xff] }
 0x525   : > { %3317 = vmatpush1.msra.mxu0 %v3957_v50  ;;  %3987 = vmatprep.mubr.msk.f32.mxu0 %vm3080_vm7, %v3305_v4 }
 0x526   : > { %3318 = vmatprep.subr.mxu0 %v3956_v62 }
 0x527   : > { %3319 = vmatpush1.msra.mxu0 %v3955_v6 }
 0x528   : > { %3320 = vmatprep.subr.mxu0 %v3954_v52 }
 0x529   : > { %3321 = vmatpush1.msra.mxu0 %v3953_v10 }
 0x52a   : > { %3322 = vmatprep.subr.mxu0 %v3952_v11 }
 0x52b   : > { %3323 = vmatpush1.msra.mxu0 %v3951_v12 }
 0x52c   : > { %3324 = vmatprep.subr.mxu0 %v3950_v0 }
 0x52d   : > { %3325 = vmatpush1.msra.mxu0 %v3949_v15 }
 0x52e   : > { %3326 = vmatprep.subr.mxu0 %v3948_v19 }
 0x52f   : > { %3327 = vmatpush1.msra.mxu0 %v3947_v17 }
 0x530   : > { %3328 = vmatprep.subr.mxu0 %v3946_v22 }
 0x531   : > { %3329 = vmatpush1.msra.mxu0 %v3945_v23 }
 0x532   : > { %3330 = vmatprep.subr.mxu0 %v3944_v30 }
 0x533   : > { %3331 = vmatpush1.msra.mxu0 %v3943_v47 }
 0x534   : > { %3332 = vmatprep.subr.mxu0 %v3942_v31 }
 0x535   : > { %3333 = vmatpush1.msra.mxu0 %v3941_v7 }
 0x536   : > { %3334 = vmatprep.subr.mxu0 %v3940_v33 }
 0x537   : > { %3335 = vmatpush1.msra.mxu0 %v3939_v35 }
 0x538   : > { %3336 = vmatprep.subr.mxu0 %v3938_v36 }
 0x539   : > { %3337 = vmatpush1.msra.mxu0 %v3937_v54 }
 0x53a   : > { %3338 = vmatprep.subr.mxu0 %v3936_v20 }
 0x53b   : > { %3339 = vmatpush1.msra.mxu0 %v3935_v28 }
 0x53c   : > { %3340 = vmatprep.subr.mxu0 %v3934_v26 }
 0x53d   : > { %3341 = vmatpush1.msra.mxu0 %v3933_v58 }
 0x53e   : > { %3342 = vmatprep.subr.mxu0 %v3932_v37 }
 0x53f   : > { %3343 = vmatpush1.msra.mxu0 %v3931_v38 }
 0x540   : > { %3352 = vmatprep.subr.mxu0 %v3986_v5 }
 0x541   : > { %3353 = vmatpush2.msra.mxu0 %v3985_v44 }
 0x542   : > { %3354 = vmatprep.subr.mxu0 %v3984_v16 }
 0x543   : > { %3355 = vmatpush2.msra.mxu0 %v3983_v25 }
 0x544   : > { %3356 = vmatprep.subr.mxu0 %v3982_v40 }
 0x545   : > { %3357 = vmatpush2.msra.mxu0 %v3981_v14 }
 0x546   : > { %3358 = vmatprep.subr.mxu0 %v3980_v18 }
 0x547   : > { %3359 = vmatpush2.msra.mxu0 %v3979_v46 }
 0x548   : > { %3360 = vmatprep.subr.mxu0 %v3978_v29 }
 0x549   : > { %3361 = vmatpush2.msra.mxu0 %v3977_v43 }
 0x54a   : > { %3362 = vmatprep.subr.mxu0 %v3976_v45 }
 0x54b   : > { %3363 = vmatpush2.msra.mxu0 %v3975_v61 }
 0x54c   : > { %3364 = vmatprep.subr.mxu0 %v3974_v24 }
 0x54d   : > { %3365 = vmatpush2.msra.mxu0 %v3973_v21 }
 0x54e   : > { %3366 = vmatprep.subr.mxu0 %v3972_v32 }
 0x54f   : > { %3367 = vmatpush2.msra.mxu0 %v3971_v34 }
 0x550   : > { %3368 = vmatprep.subr.mxu0 %v3970_v41 }
 0x551   : > { %3369 = vmatpush2.msra.mxu0 %v3969_v9 }
 0x552   : > { %3370 = vmatprep.subr.mxu0 %v3968_v13 }
 0x553   : > { %3371 = vmatpush2.msra.mxu0 %v3967_v42 }
 0x554   : > { %3372 = vmatprep.subr.mxu0 %v3966_v57 }
 0x555   : > { %3373 = vmatpush2.msra.mxu0 %v3965_v3 }
 0x556   : > { %3374 = vmatprep.subr.mxu0 %v3964_v53 }
 0x557   : > { %3375 = vmatpush2.msra.mxu0 %v3963_v60 }
 0x558   : > { %3377 = vmatmul.mubr.f32.vlgmr.msra.gmra.mxu0 %v3302_v63 }
 0x559   : > { %3988 = vmatprep.mubr.msk.f32.mxu0 %vm3080_vm7, %v3304_v59 }
 0x55c   : > { %3383 = vmatmul.mubr.f32.gmra.mxu0 %v3301_v48 }
 0x55d   : > { %4315 = shalt.err (!%p4312_p3)
}
 0x55e   : > { %s4316_s16 = scalar_lea.hbm %s6978_s27, 1024  ;;  %s4320_s21 = scalar_lea.hbm %s7046_s13, 2048 }
 0x55f   : > { %p4317_p4 = scmp.ne.s32.totalorder %s6978_s27, %s4316_s16  ;;  %p4321_p9 = scmp.lt.s32.totalorder %s6978_s27, %s7046_s13 }
 0x560   : > { %p4322_p10 = scmp.lt.s32.totalorder %s4320_s21, %s4316_s16 }
 0x561   : > { %p4318_p7 = pnand %p4317_p4, %p4482_p5 }
 0x562   : > { %p4323_p11 = por %p4322_p10, %p4321_p9 }
 0x563   : > { %p4319_p8 = pneg %p4318_p7 }
 0x565   : > { %p4324_p12 = pnand %p4323_p11, %p4319_p8 }
 0x567   : > { %4327 = shalt.err (!%p4324_p12)
}
 0x568   : > { %s4367_s29 = smov 256   ;;  %s4368_s17 = smov 16   ;;  %v3393_v1 = vld [vmem:[%s7041_s8] sm:$0x3]  ;;  %vm3410_vm8 = vcmask 523264   ;;  %vm3413_vm9 = vcmask 519168  }
 0x569   : > { %4259 = dma.vmem_to_hbm [thread:$0]  (%p4482_p5), %s6980_s20, 1024, %s6978_s27, %s6984_s28, %s4367_s29, %s4367_s29, %s4368_s17   ;;  %v3398_v62 = vrot.slane %v3393_v1, %v5311_v55  ;;  %v3402_v11 = vrot.slane %v3393_v1, %v5314_v56 }
 0x56a   : > { %s3994_s16 = sshll.u32 %s4572_s19, 5 }
 0x56b   : > { %s478_s27 = scalar_lea.vmem %s7047_s14, %s3994_s16 }
 0x5d9   : > { %v3232_v27 = vpop.f32.mrf.mxu1 }
 0x5db   : > { %v3234_v39 = vpop.f32.mrf.mxu1 }
 0x5dd   : > { %v3238_v4 = vpop.f32.mrf.mxu1 }
 0x5df   : > { %v3240_v17 = vpop.f32.mrf.mxu1 }
 0x5e0   : > { %v3151_v49 = vpop.f32.mrf.mxu0 }
 0x5e1   : > { %v3233_v50 = vadd.f32 %v3232_v27, %v3151_v49 }
 0x5e2   : > { %v3153_v2 = vpop.f32.mrf.mxu0 }
 0x5e3   : > { %v3235_v52 = vadd.f32 %v3234_v39, %v3153_v2 }
 0x5e4   : > { %v3157_v59 = vpop.f32.mrf.mxu0 }
 0x5e5   : > { %v3239_v0 = vadd.f32 %v3238_v4, %v3157_v59 }
 0x5e6   : > { %v3159_v8 = vpop.f32.mrf.mxu0 }
 0x5e7   : > { %v3241_v23 = vadd.f32 %v3240_v17, %v3159_v8 }
 0x618   : > { %v3378_v6 = vpop.f32.mrf.mxu0 }
 0x619   : > { %v3389_v10 = vadd.f32 %v3378_v6, %v3233_v50 }
 0x61a   : > { %v3380_v12 = vpop.f32.mrf.mxu0 }
 0x61b   : > { %v3405_v15 = vadd.f32 %v3398_v62, %v3389_v10  ;;  %v3390_v19 = vadd.f32 %v3380_v12, %v3235_v52 }
 0x61c   : > { %v3384_v22 = vpop.f32.mrf.mxu0 }
 0x61d   : > { %3409 = vst [vmem:[%s478_s27] sm:$0xff] %v3405_v15  ;;  %v3406_v55 = vadd.f32 %v3402_v11, %v3390_v19  ;;  %v3391_v30 = vadd.f32 %v3384_v22, %v3239_v0 }
 0x61e   : > { %v3386_v47 = vpop.f32.mrf.mxu0 }
 0x61f   : > { %3411 = vst.msk [vmem:[%s478_s27 + $0x8] sm:$0xff] %vm3410_vm8, %v3406_v55  ;;  %v3407_v31 = vadd.f32 %v3398_v62, %v3391_v30  ;;  %v3392_v7 = vadd.f32 %v3386_v47, %v3241_v23 }
 0x621   : > { %3412 = vst [vmem:[%s478_s27 + $0x10] sm:$0xf] %v3407_v31  ;;  %v3408_v56 = vadd.f32 %v3402_v11, %v3392_v7 }
 0x623   : > { %3414 = vst.msk [vmem:[%s478_s27 + $0x18] sm:$0xf] %vm3413_vm9, %v3408_v56 }
 0x624 PF: > { %s7062_s19 = sld [smem:[#allocation7_spill]] }
 0x625   : > { %s7063_s28 = sld [smem:[#allocation5_spill]] }
 0x62a   : > { %p4265_p5 = scmp.ge.s32.totalorder %s7062_s19, 2 }
 0x62b   : > { %s3452_s24 = sand.u32 1, %s7063_s28  }
 0x62c   : > { %p4262_p13 = pnand %p4265_p5, %p4486_p6  ;;  %s3453_s21 = scalar_lea.sflag [#allocation3], %s3452_s24 }
 0x62e   : > { %p4263_p0 = pneg %p4262_p13 }
 0x630   : > { %4345 = dma.done.wait (%p4263_p0), %s3453_s21, 1024  }
 0x631   : > { %4347 = vsyncadd (%p4263_p0), %s3453_s21, 4294966272  ;;  %s7065_s16 = sld [smem:[#allocation8_spill]]  ;;  %s7068_s29 = smov %s4354_s30 }
 0x632   : > { %s7066_s25 = sld [smem:[#allocation6_spill]] }
 0x633   : > { %s7067_s15 = sld [smem:[#allocation9_spill]] }
 0x637   : > { %p25_p1 = scmp.ge.s32.totalorder %s7065_s16, 4  }
 0x638   : > { %s7069_s30 = smov %s7066_s25 }
 0x639   :  { %27 = sbr.rel (!%p25_p1) target bundleno = 3 (0x3), region = 127 }
 0x63e   :  { %3466 = vsyncpa [#allocation3], 1 }
 0x63f   :  { %3468 = vsyncpa [#allocation3 + $0x1], 1 }

</bundles_post_ra>
